<compile_context>
chip_gen: v7x
topology: tpu7x:2x2x1
jax: 0.10.0
libtpu: 0.0.40
codegen_flags: <defaults>
</compile_context>

<pallas_src>
import functools

import jax
import jax.numpy as jnp
from jax import lax
from jax.experimental import pallas as pl
from jax.experimental.pallas import tpu as pltpu

SC_PRIMITIVES = ["none", "skip"]
FF_PRIMITIVES = ["f_sum", "f_mean", "f_max"]
NA_PRIMITIVES = ["gcn"]
READOUT_PRIMITIVES = ["global_mean", "global_max", "global_add"]

_LANE = 128


def _round_up(v, m):
    return ((v + m - 1) // m) * m


def _edge_id(cell, cur, inp):            # cell_mode == 'full'
    return (cur + 1) * cur // 2 + inp


def _ff_id(cell, node, nnpc):            # cell_mode != 'repeat'
    return cell * (nnpc + 1) + node


# --------------------------- fused forward kernel --------------------------- #
def _network_fwd_kernel(
    a_ref,        # [N_PAD, N_PAD]  bf16   symmetrically-normalized dense adjacency
    x_ref,        # [N_PAD, IN_PAD] bf16   node features (zero padded)
    lin1_w_ref,   # [IN_PAD, H]     bf16
    lin1_b_ref,   # [1, H]          f32
    gcn_w_ref,    # [num_blocks, H, H] bf16
    gcn_b_ref,    # [num_blocks, 1, H] f32
    cell_w_ref,   # [num_cells, H, H]  bf16
    cell_b_ref,   # [num_cells, 1, H]  f32
    ro_w_ref,     # [H, H]          bf16
    ro_b_ref,     # [1, H]          f32
    cls_w_ref,    # [H, C_PAD]      bf16
    cls_b_ref,    # [1, C_PAD]      f32
    sc_ref,       # SMEM [num_edges]        f32  ('skip' weight per edge; 'none' weight * 0 == 0)
    ff_ref,       # SMEM [num_ff * 3]       f32  (flattened fuse-function weights)
    rw_ref,       # SMEM [3]                f32  (readout mix weights)
    out_ref,      # [G, C_PAD]      f32
    feat_ref,     # scratch VMEM [nnpc+1, N_PAD, H] f32  (persistent `features` list)
    *, num_cells, nnpc, num_graphs, nodes_per_graph, layer_norm,
):
    f32 = jnp.float32
    bf16 = jnp.bfloat16

    def mm(a, b):
        return jnp.dot(a, b, preferred_element_type=f32)

    # ---- x = relu(lin1(x)); dropout == identity (eval-mode semantics) ----
    h = mm(x_ref[...], lin1_w_ref[...]) + lin1_b_ref[...]
    h = jnp.maximum(h, 0.0)
    feat_ref[0] = h

    a_bf = a_ref[...]                      # hoisted: load the adjacency once, reuse

    for cell in range(num_cells):
        for node in range(nnpc + 1):
            k = node + 1
            # --- ScMixedOp (w_none*0 + w_skip*x) feeding LaMixedOp (sum/mean/max, relu, mixed) ---
            acc = None
            mx = None
            for i in range(k):
                v = sc_ref[_edge_id(cell, node, i)] * feat_ref[i]
                acc = v if acc is None else acc + v
                mx = v if mx is None else jnp.maximum(mx, v)
            mean = acc * (1.0 / k)
            f = _ff_id(cell, node, nnpc) * len(FF_PRIMITIVES)
            tmp = (ff_ref[f + 0] * jnp.maximum(acc, 0.0)
                   + ff_ref[f + 1] * jnp.maximum(mean, 0.0)
                   + ff_ref[f + 2] * jnp.maximum(mx, 0.0))

            if node == nnpc:
                # cell-output Linear -> relu (no norm)
                h = mm(tmp.astype(bf16), cell_w_ref[cell]) + cell_b_ref[cell]
                h = jnp.maximum(h, 0.0)
                feat_ref[0] = h          # becomes features[0] of the next cell
            else:
                agg_id = cell * nnpc + node
                # GCNConv (dense form): A_norm @ (X W) + b, relu, LayerNorm(affine=False)
                xw = mm(tmp.astype(bf16), gcn_w_ref[agg_id])
                h = mm(a_bf, xw.astype(bf16)) + gcn_b_ref[agg_id]
                h = jnp.maximum(h, 0.0)
                if layer_norm:
                    mu = jnp.mean(h, axis=-1, keepdims=True)
                    var = jnp.mean(jnp.square(h - mu), axis=-1, keepdims=True)
                    h = (h - mu) * lax.rsqrt(var + 1e-5)
                feat_ref[node + 1] = h

    # ---- ReadoutMixedOp: w0*global_mean + w1*global_max + w2*global_add ----
    # Graphs are contiguous and of equal size, so pool via reshape instead of a
    # [G,N,H] masked where (pure XLU sublane reductions, no -inf sentinel, no divide).
    # TODO(synk): ragged / non-contiguous `batch` vectors need a membership-matrix path.
    n_valid = num_graphs * nodes_per_graph
    xg = h[0:n_valid, :].reshape(num_graphs, nodes_per_graph, h.shape[-1])
    s = jnp.sum(xg, axis=1)                       # global_add   [G, H]
    mx = jnp.max(xg, axis=1)                      # global_max   [G, H]
    mean = s * (1.0 / nodes_per_graph)            # global_mean  [G, H]
    pooled = rw_ref[0] * mean + rw_ref[1] * mx + rw_ref[2] * s

    # ---- readout Linear -> relu -> classifier (output lanes padded to 128) ----
    g1 = jnp.maximum(mm(pooled.astype(bf16), ro_w_ref[...]) + ro_b_ref[...], 0.0)
    out_ref[...] = mm(g1.astype(bf16), cls_w_ref[...]) + cls_b_ref[...]


# ------------------------------- model glue -------------------------------- #
class Config:
    num_blocks = 2
    num_cells = 1
    cell_mode = "full"
    temp = 0.5
    algo = "darts"
    search_agg = False
    agg = "gcn"
    BN = False
    LN = True


def glorot(key, shape):
    lim = (6.0 / (shape[0] + shape[1])) ** 0.5
    return jax.random.uniform(key, shape, jnp.float32, -lim, lim)


def init_params(key, in_dim, hidden, out_dim, cfg):
    num_edges = (cfg.num_blocks + 2) * (cfg.num_blocks + 1) // 2      # cell_mode='full'
    num_ff = cfg.num_blocks + cfg.num_cells
    keys = jax.random.split(key, 16)
    p = {}
    p["lin1_w"] = glorot(keys[0], (in_dim, hidden))
    p["lin1_b"] = jnp.zeros((hidden,), jnp.float32)
    p["gcn_w"] = jnp.stack([glorot(keys[1 + i], (hidden, hidden)) for i in range(cfg.num_blocks)])
    p["gcn_b"] = jnp.zeros((cfg.num_blocks, hidden), jnp.float32)
    p["cell_w"] = jnp.stack([glorot(keys[5 + i], (hidden, hidden)) for i in range(cfg.num_cells)])
    p["cell_b"] = jnp.zeros((cfg.num_cells, hidden), jnp.float32)
    p["ro_w"] = glorot(keys[8], (hidden, hidden))
    p["ro_b"] = jnp.zeros((hidden,), jnp.float32)
    p["cls_w"] = glorot(keys[9], (hidden, out_dim))
    p["cls_b"] = jnp.zeros((out_dim,), jnp.float32)
    p["sc_alphas"] = 0.001 * jax.random.normal(keys[10], (num_edges, len(SC_PRIMITIVES)), jnp.float32)
    p["ff_alphas"] = 0.001 * jax.random.normal(keys[11], (num_ff, len(FF_PRIMITIVES)), jnp.float32)
    p["readout_alphas"] = 0.001 * jax.random.normal(keys[12], (1, len(READOUT_PRIMITIVES)), jnp.float32)
    return p


def forward_model(params, x, a_norm, cfg, num_graphs, nodes_per_graph):
    n_real, in_dim = x.shape
    hidden = params["lin1_w"].shape[1]
    out_dim = params["cls_w"].shape[1]
    nnpc = cfg.num_blocks // cfg.num_cells
    assert hidden % _LANE == 0, "hidden_size should be a multiple of 128 for lane-dense vregs"

    f32, bf16 = jnp.float32, jnp.bfloat16
    n_pad = _round_up(max(n_real, _LANE), _LANE)
    in_pad = _round_up(in_dim, _LANE)
    c_pad = _round_up(out_dim, _LANE)

    # architecture (DARTS) weights: softmax(alpha / temp)
    sc_skip = jax.nn.softmax(params["sc_alphas"] / cfg.temp, axis=-1)[:, SC_PRIMITIVES.index("skip")]
    ff_w = jax.nn.softmax(params["ff_alphas"] / cfg.temp, axis=-1).reshape(-1)
    ro_mix = jax.nn.softmax(params["readout_alphas"] / cfg.temp, axis=-1)[0]

    # zero-pad to lane-dense shapes; MXU operands in bf16 (f32 accumulation in-kernel)
    a_pad = jnp.zeros((n_pad, n_pad), f32).at[:n_real, :n_real].set(a_norm).astype(bf16)
    x_pad = jnp.zeros((n_pad, in_pad), f32).at[:n_real, :in_dim].set(x).astype(bf16)
    lin1_w = jnp.zeros((in_pad, hidden), f32).at[:in_dim, :].set(params["lin1_w"]).astype(bf16)
    cls_w = jnp.zeros((hidden, c_pad), f32).at[:, :out_dim].set(params["cls_w"]).astype(bf16)
    cls_b = jnp.zeros((1, c_pad), f32).at[0, :out_dim].set(params["cls_b"])

    kernel = functools.partial(
        _network_fwd_kernel,
        num_cells=cfg.num_cells, nnpc=nnpc,
        num_graphs=num_graphs, nodes_per_graph=nodes_per_graph,
        layer_norm=cfg.LN,
    )
    vm = pl.BlockSpec(memory_space=pltpu.MemorySpace.VMEM)
    sm = pl.BlockSpec(memory_space=pltpu.MemorySpace.SMEM)

    # TODO(synk): for large N, split the GCN A@(XW) into a gridded, row-tiled kernel
    # (tiled A_norm, "parallel" row axis for v7x's 2 TensorCores); at these sizes the
    # whole graph fits comfortably in VMEM so a single fused ungridded call is optimal.
    out = pl.pallas_call(
        kernel,
        out_shape=jax.ShapeDtypeStruct((num_graphs, c_pad), f32),
        in_specs=[vm] * 12 + [sm] * 3,
        out_specs=vm,
        scratch_shapes=[pltpu.VMEM((nnpc + 1, n_pad, hidden), f32)],
    )(
        a_pad, x_pad,
        lin1_w, params["lin1_b"].reshape(1, hidden),
        params["gcn_w"].astype(bf16), params["gcn_b"].reshape(cfg.num_blocks, 1, hidden),
        params["cell_w"].astype(bf16), params["cell_b"].reshape(cfg.num_cells, 1, hidden),
        params["ro_w"].astype(bf16), params["ro_b"].reshape(1, hidden),
        cls_w, cls_b,
        sc_skip, ff_w, ro_mix,
    )
    return out[:, :out_dim]


def build_graph(nodes_per_graph, num_graphs):
    edges, batch = [], []
    for g in range(num_graphs):
        off = g * nodes_per_graph
        for i in range(nodes_per_graph):
            j = (i + 1) % nodes_per_graph
            edges.append((off + i, off + j))
            edges.append((off + j, off + i))
            batch.append(g)
    edge_index = jnp.array(edges, dtype=jnp.int32).T        # [2, E]
    batch = jnp.array(batch, dtype=jnp.int32)                # [N]
    return edge_index, batch


def normalized_adjacency(edge_index, num_nodes):
    a = jnp.zeros((num_nodes, num_nodes), jnp.float32)
    a = a.at[edge_index[0], edge_index[1]].set(1.0)
    a = a + jnp.eye(num_nodes, dtype=jnp.float32)            # add self-loops
    deg = jnp.sum(a, axis=1)
    dinv = 1.0 / jnp.sqrt(deg)
    return a * dinv[:, None] * dinv[None, :]


if __name__ == "__main__":
    cfg = Config()
    in_dim, hidden, out_dim = 16, 128, 6          # hidden chosen lane-dense (128)
    nodes_per_graph, num_graphs = 8, 2
    n = nodes_per_graph * num_graphs

    key = jax.random.PRNGKey(0)
    k_x, k_p = jax.random.split(key)

    edge_index, batch = build_graph(nodes_per_graph, num_graphs)
    a_norm = normalized_adjacency(edge_index, n)

    x = jax.random.normal(k_x, (n, in_dim), jnp.float32)
    params = init_params(k_p, in_dim, hidden, out_dim, cfg)

    out = forward_model(params, x, a_norm, cfg, num_graphs, nodes_per_graph)
    out = jax.block_until_ready(out)
    assert out.shape == (num_graphs, out_dim)
    assert bool(jnp.all(jnp.isfinite(out)))
    print("KERNEL_OK")
</pallas_src>

<mosaic_0001>
module attributes {stable_mosaic.version = 11 : i64} {
  func.func @_network_fwd_kernel(%arg0: memref<128x128xbf16, #tpu.memory_space<vmem>>, %arg1: memref<128x128xbf16, #tpu.memory_space<vmem>>, %arg2: memref<128x128xbf16, #tpu.memory_space<vmem>>, %arg3: memref<1x128xf32, #tpu.memory_space<vmem>>, %arg4: memref<2x128x128xbf16, #tpu.memory_space<vmem>>, %arg5: memref<2x1x128xf32, #tpu.memory_space<vmem>>, %arg6: memref<1x128x128xbf16, #tpu.memory_space<vmem>>, %arg7: memref<1x1x128xf32, #tpu.memory_space<vmem>>, %arg8: memref<128x128xbf16, #tpu.memory_space<vmem>>, %arg9: memref<1x128xf32, #tpu.memory_space<vmem>>, %arg10: memref<128x128xbf16, #tpu.memory_space<vmem>>, %arg11: memref<1x128xf32, #tpu.memory_space<vmem>>, %arg12: memref<6xf32, #tpu.memory_space<smem>>, %arg13: memref<9xf32, #tpu.memory_space<smem>>, %arg14: memref<3xf32, #tpu.memory_space<smem>>, %arg15: memref<2x128xf32, #tpu.memory_space<vmem>>, %arg16: memref<3x128x128xf32, #tpu.memory_space<vmem>>) attributes {dimension_semantics = [], scalar_prefetch = 0 : i64, scratch_operands = 1 : i64, tpu.core_type = #tpu.core_type<tc>} {
    %c0 = arith.constant 0 : index
    %c0_0 = arith.constant 0 : index
    %0 = vector.load %arg1[%c0, %c0_0] : memref<128x128xbf16, #tpu.memory_space<vmem>>, vector<128x128xbf16>
    %c0_1 = arith.constant 0 : index
    %c0_2 = arith.constant 0 : index
    %1 = vector.load %arg2[%c0_1, %c0_2] : memref<128x128xbf16, #tpu.memory_space<vmem>>, vector<128x128xbf16>
    %cst = arith.constant dense<0.000000e+00> : vector<128x128xf32>
    %2 = tpu.matmul %0, %1, %cst {dimension_numbers = #tpu.dot_dimension_numbers<[1], [0], [0], [1], [0, 0, 1, 1], [], []>} : vector<128x128xbf16>, vector<128x128xbf16>, vector<128x128xf32> -> vector<128x128xf32>
    %c0_3 = arith.constant 0 : index
    %c0_4 = arith.constant 0 : index
    %3 = vector.load %arg3[%c0_3, %c0_4] : memref<1x128xf32, #tpu.memory_space<vmem>>, vector<1x128xf32>
    %4 = vector.broadcast %3 : vector<1x128xf32> to vector<128x128xf32>
    %5 = arith.addf %2, %4 : vector<128x128xf32>
    %cst_5 = arith.constant 0.000000e+00 : f32
    %6 = vector.broadcast %cst_5 : f32 to vector<128x128xf32>
    %7 = arith.maximumf %5, %6 : vector<128x128xf32>
    %c0_6 = arith.constant 0 : index
    %c0_7 = arith.constant 0 : index
    %c0_8 = arith.constant 0 : index
    %8 = vector.load %arg16[%c0_6, %c0_7, %c0_8] : memref<3x128x128xf32, #tpu.memory_space<vmem>>, vector<1x128x128xf32>
    %9 = vector.shape_cast %8 : vector<1x128x128xf32> to vector<128x128xf32>
    %10 = vector.shape_cast %7 : vector<128x128xf32> to vector<1x128x128xf32>
    tpu.vector_store %arg16[%c0_6, %c0_7, %c0_8], %10 {strides = array<i32>} : memref<3x128x128xf32, #tpu.memory_space<vmem>>, vector<1x128x128xf32>,
    %c0_9 = arith.constant 0 : index
    %c0_10 = arith.constant 0 : index
    %11 = vector.load %arg0[%c0_9, %c0_10] : memref<128x128xbf16, #tpu.memory_space<vmem>>, vector<128x128xbf16>
    %c0_11 = arith.constant 0 : index
    %12 = memref.load %arg12[%c0_11] : memref<6xf32, #tpu.memory_space<smem>>
    %c0_12 = arith.constant 0 : index
    %c0_13 = arith.constant 0 : index
    %c0_14 = arith.constant 0 : index
    %13 = vector.load %arg16[%c0_12, %c0_13, %c0_14] : memref<3x128x128xf32, #tpu.memory_space<vmem>>, vector<1x128x128xf32>
    %14 = vector.shape_cast %13 : vector<1x128x128xf32> to vector<128x128xf32>
    %15 = vector.broadcast %12 : f32 to vector<128x128xf32>
    %16 = arith.mulf %15, %14 : vector<128x128xf32>
    %cst_15 = arith.constant 1.000000e+00 : f32
    %17 = vector.broadcast %cst_15 : f32 to vector<128x128xf32>
    %18 = arith.mulf %16, %17 : vector<128x128xf32>
    %c0_16 = arith.constant 0 : index
    %19 = memref.load %arg13[%c0_16] : memref<9xf32, #tpu.memory_space<smem>>
    %cst_17 = arith.constant 0.000000e+00 : f32
    %20 = vector.broadcast %cst_17 : f32 to vector<128x128xf32>
    %21 = arith.maximumf %16, %20 : vector<128x128xf32>
    %22 = vector.broadcast %19 : f32 to vector<128x128xf32>
    %23 = arith.mulf %22, %21 : vector<128x128xf32>
    %c1 = arith.constant 1 : index
    %24 = memref.load %arg13[%c1] : memref<9xf32, #tpu.memory_space<smem>>
    %cst_18 = arith.constant 0.000000e+00 : f32
    %25 = vector.broadcast %cst_18 : f32 to vector<128x128xf32>
    %26 = arith.maximumf %18, %25 : vector<128x128xf32>
    %27 = vector.broadcast %24 : f32 to vector<128x128xf32>
    %28 = arith.mulf %27, %26 : vector<128x128xf32>
    %29 = arith.addf %23, %28 : vector<128x128xf32>
    %c2 = arith.constant 2 : index
    %30 = memref.load %arg13[%c2] : memref<9xf32, #tpu.memory_space<smem>>
    %cst_19 = arith.constant 0.000000e+00 : f32
    %31 = vector.broadcast %cst_19 : f32 to vector<128x128xf32>
    %32 = arith.maximumf %16, %31 : vector<128x128xf32>
    %33 = vector.broadcast %30 : f32 to vector<128x128xf32>
    %34 = arith.mulf %33, %32 : vector<128x128xf32>
    %35 = arith.addf %29, %34 : vector<128x128xf32>
    %36 = arith.truncf %35 : vector<128x128xf32> to vector<128x128xbf16>
    %c0_20 = arith.constant 0 : index
    %c0_21 = arith.constant 0 : index
    %c0_22 = arith.constant 0 : index
    %37 = vector.load %arg4[%c0_20, %c0_21, %c0_22] : memref<2x128x128xbf16, #tpu.memory_space<vmem>>, vector<1x128x128xbf16>
    %38 = vector.shape_cast %37 : vector<1x128x128xbf16> to vector<128x128xbf16>
    %cst_23 = arith.constant dense<0.000000e+00> : vector<128x128xf32>
    %39 = tpu.matmul %36, %38, %cst_23 {dimension_numbers = #tpu.dot_dimension_numbers<[1], [0], [0], [1], [0, 0, 1, 1], [], []>} : vector<128x128xbf16>, vector<128x128xbf16>, vector<128x128xf32> -> vector<128x128xf32>
    %40 = arith.truncf %39 : vector<128x128xf32> to vector<128x128xbf16>
    %cst_24 = arith.constant dense<0.000000e+00> : vector<128x128xf32>
    %41 = tpu.matmul %11, %40, %cst_24 {dimension_numbers = #tpu.dot_dimension_numbers<[1], [0], [0], [1], [0, 0, 1, 1], [], []>} : vector<128x128xbf16>, vector<128x128xbf16>, vector<128x128xf32> -> vector<128x128xf32>
    %c0_25 = arith.constant 0 : index
    %c0_26 = arith.constant 0 : index
    %c0_27 = arith.constant 0 : index
    %42 = vector.load %arg5[%c0_25, %c0_26, %c0_27] : memref<2x1x128xf32, #tpu.memory_space<vmem>>, vector<1x1x128xf32>
    %43 = vector.shape_cast %42 : vector<1x1x128xf32> to vector<1x128xf32>
    %44 = vector.broadcast %43 : vector<1x128xf32> to vector<128x128xf32>
    %45 = arith.addf %41, %44 : vector<128x128xf32>
    %cst_28 = arith.constant 0.000000e+00 : f32
    %46 = vector.broadcast %cst_28 : f32 to vector<128x128xf32>
    %47 = arith.maximumf %45, %46 : vector<128x128xf32>
    %cst_29 = arith.constant dense<0.000000e+00> : vector<128xf32>
    %48 = vector.multi_reduction <add>, %47, %cst_29 [1] : vector<128x128xf32> to vector<128xf32>
    %49 = vector.shape_cast %48 : vector<128xf32> to vector<128x1xf32>
    %cst_30 = arith.constant 1.280000e+02 : f32
    %50 = vector.broadcast %cst_30 : f32 to vector<128x1xf32>
    %51 = arith.divf %49, %50 : vector<128x1xf32>
    %52 = vector.broadcast %51 : vector<128x1xf32> to vector<128x128xf32>
    %53 = arith.subf %47, %52 : vector<128x128xf32>
    %54 = arith.mulf %53, %53 : vector<128x128xf32>
    %cst_31 = arith.constant dense<0.000000e+00> : vector<128xf32>
    %55 = vector.multi_reduction <add>, %54, %cst_31 [1] : vector<128x128xf32> to vector<128xf32>
    %56 = vector.shape_cast %55 : vector<128xf32> to vector<128x1xf32>
    %cst_32 = arith.constant 1.280000e+02 : f32
    %57 = vector.broadcast %cst_32 : f32 to vector<128x1xf32>
    %58 = arith.divf %56, %57 : vector<128x1xf32>
    %59 = vector.broadcast %51 : vector<128x1xf32> to vector<128x128xf32>
    %60 = arith.subf %47, %59 : vector<128x128xf32>
    %cst_33 = arith.constant 9.99999974E-6 : f32
    %61 = vector.broadcast %cst_33 : f32 to vector<128x1xf32>
    %62 = arith.addf %58, %61 : vector<128x1xf32>
    %63 = math.rsqrt %62 : vector<128x1xf32>
    %64 = vector.broadcast %63 : vector<128x1xf32> to vector<128x128xf32>
    %65 = arith.mulf %60, %64 : vector<128x128xf32>
    %c1_34 = arith.constant 1 : index
    %c0_35 = arith.constant 0 : index
    %c0_36 = arith.constant 0 : index
    %66 = vector.load %arg16[%c1_34, %c0_35, %c0_36] : memref<3x128x128xf32, #tpu.memory_space<vmem>>, vector<1x128x128xf32>
    %67 = vector.shape_cast %66 : vector<1x128x128xf32> to vector<128x128xf32>
    %68 = vector.shape_cast %65 : vector<128x128xf32> to vector<1x128x128xf32>
    tpu.vector_store %arg16[%c1_34, %c0_35, %c0_36], %68 {strides = array<i32>} : memref<3x128x128xf32, #tpu.memory_space<vmem>>, vector<1x128x128xf32>,
    %c1_37 = arith.constant 1 : index
    %69 = memref.load %arg12[%c1_37] : memref<6xf32, #tpu.memory_space<smem>>
    %c0_38 = arith.constant 0 : index
    %c0_39 = arith.constant 0 : index
    %c0_40 = arith.constant 0 : index
    %70 = vector.load %arg16[%c0_38, %c0_39, %c0_40] : memref<3x128x128xf32, #tpu.memory_space<vmem>>, vector<1x128x128xf32>
    %71 = vector.shape_cast %70 : vector<1x128x128xf32> to vector<128x128xf32>
    %72 = vector.broadcast %69 : f32 to vector<128x128xf32>
    %73 = arith.mulf %72, %71 : vector<128x128xf32>
    %c2_41 = arith.constant 2 : index
    %74 = memref.load %arg12[%c2_41] : memref<6xf32, #tpu.memory_space<smem>>
    %c1_42 = arith.constant 1 : index
    %c0_43 = arith.constant 0 : index
    %c0_44 = arith.constant 0 : index
    %75 = vector.load %arg16[%c1_42, %c0_43, %c0_44] : memref<3x128x128xf32, #tpu.memory_space<vmem>>, vector<1x128x128xf32>
    %76 = vector.shape_cast %75 : vector<1x128x128xf32> to vector<128x128xf32>
    %77 = vector.broadcast %74 : f32 to vector<128x128xf32>
    %78 = arith.mulf %77, %76 : vector<128x128xf32>
    %79 = arith.addf %73, %78 : vector<128x128xf32>
    %80 = arith.maximumf %73, %78 : vector<128x128xf32>
    %cst_45 = arith.constant 5.000000e-01 : f32
    %81 = vector.broadcast %cst_45 : f32 to vector<128x128xf32>
    %82 = arith.mulf %79, %81 : vector<128x128xf32>
    %c3 = arith.constant 3 : index
    %83 = memref.load %arg13[%c3] : memref<9xf32, #tpu.memory_space<smem>>
    %cst_46 = arith.constant 0.000000e+00 : f32
    %84 = vector.broadcast %cst_46 : f32 to vector<128x128xf32>
    %85 = arith.maximumf %79, %84 : vector<128x128xf32>
    %86 = vector.broadcast %83 : f32 to vector<128x128xf32>
    %87 = arith.mulf %86, %85 : vector<128x128xf32>
    %c4 = arith.constant 4 : index
    %88 = memref.load %arg13[%c4] : memref<9xf32, #tpu.memory_space<smem>>
    %cst_47 = arith.constant 0.000000e+00 : f32
    %89 = vector.broadcast %cst_47 : f32 to vector<128x128xf32>
    %90 = arith.maximumf %82, %89 : vector<128x128xf32>
    %91 = vector.broadcast %88 : f32 to vector<128x128xf32>
    %92 = arith.mulf %91, %90 : vector<128x128xf32>
    %93 = arith.addf %87, %92 : vector<128x128xf32>
    %c5 = arith.constant 5 : index
    %94 = memref.load %arg13[%c5] : memref<9xf32, #tpu.memory_space<smem>>
    %cst_48 = arith.constant 0.000000e+00 : f32
    %95 = vector.broadcast %cst_48 : f32 to vector<128x128xf32>
    %96 = arith.maximumf %80, %95 : vector<128x128xf32>
    %97 = vector.broadcast %94 : f32 to vector<128x128xf32>
    %98 = arith.mulf %97, %96 : vector<128x128xf32>
    %99 = arith.addf %93, %98 : vector<128x128xf32>
    %100 = arith.truncf %99 : vector<128x128xf32> to vector<128x128xbf16>
    %c1_49 = arith.constant 1 : index
    %c0_50 = arith.constant 0 : index
    %c0_51 = arith.constant 0 : index
    %101 = vector.load %arg4[%c1_49, %c0_50, %c0_51] : memref<2x128x128xbf16, #tpu.memory_space<vmem>>, vector<1x128x128xbf16>
    %102 = vector.shape_cast %101 : vector<1x128x128xbf16> to vector<128x128xbf16>
    %cst_52 = arith.constant dense<0.000000e+00> : vector<128x128xf32>
    %103 = tpu.matmul %100, %102, %cst_52 {dimension_numbers = #tpu.dot_dimension_numbers<[1], [0], [0], [1], [0, 0, 1, 1], [], []>} : vector<128x128xbf16>, vector<128x128xbf16>, vector<128x128xf32> -> vector<128x128xf32>
    %104 = arith.truncf %103 : vector<128x128xf32> to vector<128x128xbf16>
    %cst_53 = arith.constant dense<0.000000e+00> : vector<128x128xf32>
    %105 = tpu.matmul %11, %104, %cst_53 {dimension_numbers = #tpu.dot_dimension_numbers<[1], [0], [0], [1], [0, 0, 1, 1], [], []>} : vector<128x128xbf16>, vector<128x128xbf16>, vector<128x128xf32> -> vector<128x128xf32>
    %c1_54 = arith.constant 1 : index
    %c0_55 = arith.constant 0 : index
    %c0_56 = arith.constant 0 : index
    %106 = vector.load %arg5[%c1_54, %c0_55, %c0_56] : memref<2x1x128xf32, #tpu.memory_space<vmem>>, vector<1x1x128xf32>
    %107 = vector.shape_cast %106 : vector<1x1x128xf32> to vector<1x128xf32>
    %108 = vector.broadcast %107 : vector<1x128xf32> to vector<128x128xf32>
    %109 = arith.addf %105, %108 : vector<128x128xf32>
    %cst_57 = arith.constant 0.000000e+00 : f32
    %110 = vector.broadcast %cst_57 : f32 to vector<128x128xf32>
    %111 = arith.maximumf %109, %110 : vector<128x128xf32>
    %cst_58 = arith.constant dense<0.000000e+00> : vector<128xf32>
    %112 = vector.multi_reduction <add>, %111, %cst_58 [1] : vector<128x128xf32> to vector<128xf32>
    %113 = vector.shape_cast %112 : vector<128xf32> to vector<128x1xf32>
    %cst_59 = arith.constant 1.280000e+02 : f32
    %114 = vector.broadcast %cst_59 : f32 to vector<128x1xf32>
    %115 = arith.divf %113, %114 : vector<128x1xf32>
    %116 = vector.broadcast %115 : vector<128x1xf32> to vector<128x128xf32>
    %117 = arith.subf %111, %116 : vector<128x128xf32>
    %118 = arith.mulf %117, %117 : vector<128x128xf32>
    %cst_60 = arith.constant dense<0.000000e+00> : vector<128xf32>
    %119 = vector.multi_reduction <add>, %118, %cst_60 [1] : vector<128x128xf32> to vector<128xf32>
    %120 = vector.shape_cast %119 : vector<128xf32> to vector<128x1xf32>
    %cst_61 = arith.constant 1.280000e+02 : f32
    %121 = vector.broadcast %cst_61 : f32 to vector<128x1xf32>
    %122 = arith.divf %120, %121 : vector<128x1xf32>
    %123 = vector.broadcast %115 : vector<128x1xf32> to vector<128x128xf32>
    %124 = arith.subf %111, %123 : vector<128x128xf32>
    %cst_62 = arith.constant 9.99999974E-6 : f32
    %125 = vector.broadcast %cst_62 : f32 to vector<128x1xf32>
    %126 = arith.addf %122, %125 : vector<128x1xf32>
    %127 = math.rsqrt %126 : vector<128x1xf32>
    %128 = vector.broadcast %127 : vector<128x1xf32> to vector<128x128xf32>
    %129 = arith.mulf %124, %128 : vector<128x128xf32>
    %c2_63 = arith.constant 2 : index
    %c0_64 = arith.constant 0 : index
    %c0_65 = arith.constant 0 : index
    %130 = vector.load %arg16[%c2_63, %c0_64, %c0_65] : memref<3x128x128xf32, #tpu.memory_space<vmem>>, vector<1x128x128xf32>
    %131 = vector.shape_cast %130 : vector<1x128x128xf32> to vector<128x128xf32>
    %132 = vector.shape_cast %129 : vector<128x128xf32> to vector<1x128x128xf32>
    tpu.vector_store %arg16[%c2_63, %c0_64, %c0_65], %132 {strides = array<i32>} : memref<3x128x128xf32, #tpu.memory_space<vmem>>, vector<1x128x128xf32>,
    %c3_66 = arith.constant 3 : index
    %133 = memref.load %arg12[%c3_66] : memref<6xf32, #tpu.memory_space<smem>>
    %c0_67 = arith.constant 0 : index
    %c0_68 = arith.constant 0 : index
    %c0_69 = arith.constant 0 : index
    %134 = vector.load %arg16[%c0_67, %c0_68, %c0_69] : memref<3x128x128xf32, #tpu.memory_space<vmem>>, vector<1x128x128xf32>
    %135 = vector.shape_cast %134 : vector<1x128x128xf32> to vector<128x128xf32>
    %136 = vector.broadcast %133 : f32 to vector<128x128xf32>
    %137 = arith.mulf %136, %135 : vector<128x128xf32>
    %c4_70 = arith.constant 4 : index
    %138 = memref.load %arg12[%c4_70] : memref<6xf32, #tpu.memory_space<smem>>
    %c1_71 = arith.constant 1 : index
    %c0_72 = arith.constant 0 : index
    %c0_73 = arith.constant 0 : index
    %139 = vector.load %arg16[%c1_71, %c0_72, %c0_73] : memref<3x128x128xf32, #tpu.memory_space<vmem>>, vector<1x128x128xf32>
    %140 = vector.shape_cast %139 : vector<1x128x128xf32> to vector<128x128xf32>
    %141 = vector.broadcast %138 : f32 to vector<128x128xf32>
    %142 = arith.mulf %141, %140 : vector<128x128xf32>
    %143 = arith.addf %137, %142 : vector<128x128xf32>
    %144 = arith.maximumf %137, %142 : vector<128x128xf32>
    %c5_74 = arith.constant 5 : index
    %145 = memref.load %arg12[%c5_74] : memref<6xf32, #tpu.memory_space<smem>>
    %c2_75 = arith.constant 2 : index
    %c0_76 = arith.constant 0 : index
    %c0_77 = arith.constant 0 : index
    %146 = vector.load %arg16[%c2_75, %c0_76, %c0_77] : memref<3x128x128xf32, #tpu.memory_space<vmem>>, vector<1x128x128xf32>
    %147 = vector.shape_cast %146 : vector<1x128x128xf32> to vector<128x128xf32>
    %148 = vector.broadcast %145 : f32 to vector<128x128xf32>
    %149 = arith.mulf %148, %147 : vector<128x128xf32>
    %150 = arith.addf %143, %149 : vector<128x128xf32>
    %151 = arith.maximumf %144, %149 : vector<128x128xf32>
    %cst_78 = arith.constant 0.333333343 : f32
    %152 = vector.broadcast %cst_78 : f32 to vector<128x128xf32>
    %153 = arith.mulf %150, %152 : vector<128x128xf32>
    %c6 = arith.constant 6 : index
    %154 = memref.load %arg13[%c6] : memref<9xf32, #tpu.memory_space<smem>>
    %cst_79 = arith.constant 0.000000e+00 : f32
    %155 = vector.broadcast %cst_79 : f32 to vector<128x128xf32>
    %156 = arith.maximumf %150, %155 : vector<128x128xf32>
    %157 = vector.broadcast %154 : f32 to vector<128x128xf32>
    %158 = arith.mulf %157, %156 : vector<128x128xf32>
    %c7 = arith.constant 7 : index
    %159 = memref.load %arg13[%c7] : memref<9xf32, #tpu.memory_space<smem>>
    %cst_80 = arith.constant 0.000000e+00 : f32
    %160 = vector.broadcast %cst_80 : f32 to vector<128x128xf32>
    %161 = arith.maximumf %153, %160 : vector<128x128xf32>
    %162 = vector.broadcast %159 : f32 to vector<128x128xf32>
    %163 = arith.mulf %162, %161 : vector<128x128xf32>
    %164 = arith.addf %158, %163 : vector<128x128xf32>
    %c8 = arith.constant 8 : index
    %165 = memref.load %arg13[%c8] : memref<9xf32, #tpu.memory_space<smem>>
    %cst_81 = arith.constant 0.000000e+00 : f32
    %166 = vector.broadcast %cst_81 : f32 to vector<128x128xf32>
    %167 = arith.maximumf %151, %166 : vector<128x128xf32>
    %168 = vector.broadcast %165 : f32 to vector<128x128xf32>
    %169 = arith.mulf %168, %167 : vector<128x128xf32>
    %170 = arith.addf %164, %169 : vector<128x128xf32>
    %171 = arith.truncf %170 : vector<128x128xf32> to vector<128x128xbf16>
    %c0_82 = arith.constant 0 : index
    %c0_83 = arith.constant 0 : index
    %c0_84 = arith.constant 0 : index
    %172 = vector.load %arg6[%c0_82, %c0_83, %c0_84] : memref<1x128x128xbf16, #tpu.memory_space<vmem>>, vector<1x128x128xbf16>
    %173 = vector.shape_cast %172 : vector<1x128x128xbf16> to vector<128x128xbf16>
    %cst_85 = arith.constant dense<0.000000e+00> : vector<128x128xf32>
    %174 = tpu.matmul %171, %173, %cst_85 {dimension_numbers = #tpu.dot_dimension_numbers<[1], [0], [0], [1], [0, 0, 1, 1], [], []>} : vector<128x128xbf16>, vector<128x128xbf16>, vector<128x128xf32> -> vector<128x128xf32>
    %c0_86 = arith.constant 0 : index
    %c0_87 = arith.constant 0 : index
    %c0_88 = arith.constant 0 : index
    %175 = vector.load %arg7[%c0_86, %c0_87, %c0_88] : memref<1x1x128xf32, #tpu.memory_space<vmem>>, vector<1x1x128xf32>
    %176 = vector.shape_cast %175 : vector<1x1x128xf32> to vector<1x128xf32>
    %177 = vector.broadcast %176 : vector<1x128xf32> to vector<128x128xf32>
    %178 = arith.addf %174, %177 : vector<128x128xf32>
    %cst_89 = arith.constant 0.000000e+00 : f32
    %179 = vector.broadcast %cst_89 : f32 to vector<128x128xf32>
    %180 = arith.maximumf %178, %179 : vector<128x128xf32>
    %c0_90 = arith.constant 0 : index
    %c0_91 = arith.constant 0 : index
    %c0_92 = arith.constant 0 : index
    %181 = vector.load %arg16[%c0_90, %c0_91, %c0_92] : memref<3x128x128xf32, #tpu.memory_space<vmem>>, vector<1x128x128xf32>
    %182 = vector.shape_cast %181 : vector<1x128x128xf32> to vector<128x128xf32>
    %183 = vector.shape_cast %180 : vector<128x128xf32> to vector<1x128x128xf32>
    tpu.vector_store %arg16[%c0_90, %c0_91, %c0_92], %183 {strides = array<i32>} : memref<3x128x128xf32, #tpu.memory_space<vmem>>, vector<1x128x128xf32>,
    %184 = vector.extract_strided_slice %180 {offsets = [0, 0], sizes = [16, 128], strides = [1, 1]} : vector<128x128xf32> to vector<16x128xf32>
    %185 = vector.shape_cast %184 : vector<16x128xf32> to vector<2x8x128xf32>
    %cst_93 = arith.constant dense<0.000000e+00> : vector<2x128xf32>
    %186 = vector.multi_reduction <add>, %185, %cst_93 [1] : vector<2x8x128xf32> to vector<2x128xf32>
    %cst_94 = arith.constant dense<0xFF800000> : vector<2x128xf32>
    %187 = vector.multi_reduction <maximumf>, %185, %cst_94 [1] : vector<2x8x128xf32> to vector<2x128xf32>
    %cst_95 = arith.constant 1.250000e-01 : f32
    %188 = vector.broadcast %cst_95 : f32 to vector<2x128xf32>
    %189 = arith.mulf %186, %188 : vector<2x128xf32>
    %c0_96 = arith.constant 0 : index
    %190 = memref.load %arg14[%c0_96] : memref<3xf32, #tpu.memory_space<smem>>
    %191 = vector.broadcast %190 : f32 to vector<2x128xf32>
    %192 = arith.mulf %191, %189 : vector<2x128xf32>
    %c1_97 = arith.constant 1 : index
    %193 = memref.load %arg14[%c1_97] : memref<3xf32, #tpu.memory_space<smem>>
    %194 = vector.broadcast %193 : f32 to vector<2x128xf32>
    %195 = arith.mulf %194, %187 : vector<2x128xf32>
    %196 = arith.addf %192, %195 : vector<2x128xf32>
    %c2_98 = arith.constant 2 : index
    %197 = memref.load %arg14[%c2_98] : memref<3xf32, #tpu.memory_space<smem>>
    %198 = vector.broadcast %197 : f32 to vector<2x128xf32>
    %199 = arith.mulf %198, %186 : vector<2x128xf32>
    %200 = arith.addf %196, %199 : vector<2x128xf32>
    %201 = arith.truncf %200 : vector<2x128xf32> to vector<2x128xbf16>
    %c0_99 = arith.constant 0 : index
    %c0_100 = arith.constant 0 : index
    %202 = vector.load %arg8[%c0_99, %c0_100] : memref<128x128xbf16, #tpu.memory_space<vmem>>, vector<128x128xbf16>
    %cst_101 = arith.constant dense<0.000000e+00> : vector<2x128xf32>
    %203 = tpu.matmul %201, %202, %cst_101 {dimension_numbers = #tpu.dot_dimension_numbers<[1], [0], [0], [1], [0, 0, 1, 1], [], []>} : vector<2x128xbf16>, vector<128x128xbf16>, vector<2x128xf32> -> vector<2x128xf32>
    %c0_102 = arith.constant 0 : index
    %c0_103 = arith.constant 0 : index
    %204 = vector.load %arg9[%c0_102, %c0_103] : memref<1x128xf32, #tpu.memory_space<vmem>>, vector<1x128xf32>
    %205 = vector.broadcast %204 : vector<1x128xf32> to vector<2x128xf32>
    %206 = arith.addf %203, %205 : vector<2x128xf32>
    %cst_104 = arith.constant 0.000000e+00 : f32
    %207 = vector.broadcast %cst_104 : f32 to vector<2x128xf32>
    %208 = arith.maximumf %206, %207 : vector<2x128xf32>
    %209 = arith.truncf %208 : vector<2x128xf32> to vector<2x128xbf16>
    %c0_105 = arith.constant 0 : index
    %c0_106 = arith.constant 0 : index
    %210 = vector.load %arg10[%c0_105, %c0_106] : memref<128x128xbf16, #tpu.memory_space<vmem>>, vector<128x128xbf16>
    %cst_107 = arith.constant dense<0.000000e+00> : vector<2x128xf32>
    %211 = tpu.matmul %209, %210, %cst_107 {dimension_numbers = #tpu.dot_dimension_numbers<[1], [0], [0], [1], [0, 0, 1, 1], [], []>} : vector<2x128xbf16>, vector<128x128xbf16>, vector<2x128xf32> -> vector<2x128xf32>
    %c0_108 = arith.constant 0 : index
    %c0_109 = arith.constant 0 : index
    %212 = vector.load %arg11[%c0_108, %c0_109] : memref<1x128xf32, #tpu.memory_space<vmem>>, vector<1x128xf32>
    %213 = vector.broadcast %212 : vector<1x128xf32> to vector<2x128xf32>
    %214 = arith.addf %211, %213 : vector<2x128xf32>
    %c0_110 = arith.constant 0 : index
    %c0_111 = arith.constant 0 : index
    %215 = vector.load %arg15[%c0_110, %c0_111] : memref<2x128xf32, #tpu.memory_space<vmem>>, vector<2x128xf32>
    tpu.vector_store %arg15[%c0_110, %c0_111], %214 {strides = array<i32>} : memref<2x128xf32, #tpu.memory_space<vmem>>, vector<2x128xf32>,
    return
  }
}

</mosaic_0001>

<bundles_post_ra>
// kernel: tpu_custom_call.1
= control target key start
LH: loop header
LB: loop body
LE: loop exit
PB: predicated region body
PF: predicated region fallthrough
CT: control target
= control target key end

     0   :  { %s4879_s0 = inlined_call_operand.hbm [shape: bf16[128,128], index: 0, kind: input, shape index: {}]   ;;  %s4880_s1 = inlined_call_operand.hbm [shape: bf16[128,128], index: 1, kind: input, shape index: {}]   ;;  %s4881_s2 = inlined_call_operand.hbm [shape: bf16[128,128], index: 2, kind: input, shape index: {}]   ;;  %s4882_s3 = inlined_call_operand.vmem [shape: f32[1,128], index: 3, kind: input, shape index: {}]   ;;  %s4883_s4 = inlined_call_operand.hbm [shape: bf16[2,128,128], index: 4, kind: input, shape index: {}]   ;;  %s4884_s5 = inlined_call_operand.vmem [shape: f32[2,1,128], index: 5, kind: input, shape index: {}]   ;;  %s4885_s6 = inlined_call_operand.hbm [shape: bf16[1,128,128], index: 6, kind: input, shape index: {}]   ;;  %s4886_s7 = inlined_call_operand.vmem [shape: f32[1,1,128], index: 7, kind: input, shape index: {}]   ;;  %s4887_s8 = inlined_call_operand.hbm [shape: bf16[128,128], index: 8, kind: input, shape index: {}]   ;;  %s4888_s9 = inlined_call_operand.vmem [shape: f32[1,128], index: 9, kind: input, shape index: {}]   ;;  %s4889_s10 = inlined_call_operand.hbm [shape: bf16[128,128], index: 10, kind: input, shape index: {}]   ;;  %s4890_s11 = inlined_call_operand.vmem [shape: f32[1,128], index: 11, kind: input, shape index: {}]   ;;  %s4891_s12 = inlined_call_operand.vmem [shape: f32[6], index: 12, kind: input, shape index: {}]   ;;  %s4892_s13 = inlined_call_operand.vmem [shape: f32[9], index: 13, kind: input, shape index: {}]   ;;  %s4893_s14 = inlined_call_operand.vmem [shape: f32[3], index: 14, kind: input, shape index: {}]   ;;  %s4894_s15 = inlined_call_operand.hbm [shape: f32[2,128], index: 15, kind: output, shape index: {}]  }
   0x1   :  { %4947 = sst [smem:[#allocation53_spill]] %s4894_s15 }
   0x2   :  { %20 = vsyncpa [#allocation4], 0 }
   0x3   :  { %21 = vsyncpa [#allocation8], 0 }
   0x4   :  { %22 = vsyncpa [#allocation11], 0 }
   0x5   :  { %23 = vsyncpa [#allocation14], 0 }
   0x6   :  { %24 = vsyncpa [#allocation6], 0 }
   0x7   :  { %25 = vsyncpa [#allocation18], 0 }
   0x8   :  { %26 = vsyncpa [#allocation5], 0  ;;  %s3509_s18 = smov [#allocation7]   ;;  %s3510_s20 = smov [#allocation10]  }
   0x9   :  { %s44_s19 = sshll.u32 %s3509_s18, 4  ;;  %s70_s21 = sshll.u32 %s3510_s20, 4  ;;  %s45_s19 = int_to_ptr.vmem [resolvable:$true] %s44_s19  ;;  %s3604_s21 = int_to_ptr.vmem [resolvable:$true] %s70_s21 }
   0xa   :  { %s3283_s24 = scalar_lea.hbm %s4880_s1, 1024 }
   0xb   :  { %p3284_p0 = scmp.ne.s32.totalorder %s4880_s1, %s3283_s24  ;;  %p3287_p1 = scmp.lt.u32.totalorder %s3283_s24, %s4880_s1 }
   0xd   :  { %p3289_p2 = pnand %p3287_p1, %p3284_p0 }
   0xf   :  { %3292 = shalt.err (!%p3289_p2)
}
  0x10   :  { %s3293_s29 = scalar_lea.vmem %s45_s19, 1024  ;;  %p3298_p4 = scmp.lt.s32.totalorder %s45_s19, %s45_s19 }
  0x11   :  { %p3294_p3 = scmp.ne.s32.totalorder %s45_s19, %s3293_s29  ;;  %p3299_p5 = scmp.lt.s32.totalorder %s3293_s29, %s3293_s29 }
  0x13   :  { %p3300_p6 = por %p3299_p5, %p3298_p4 }
  0x15   :  { %p3301_p7 = pnand %p3300_p6, %p3294_p3 }
  0x17   :  { %3304 = shalt.err (!%p3301_p7)
}
  0x18   :  { %s3511_s30 = smov 64   ;;  %s3512_s16 = smov 4  }
  0x19   :  { %50 = dma.hbm_to_vmem [thread:$0]  %s4880_s1, 1024, %s45_s19, [#allocation8], %s3511_s30, %s3511_s30, %s3512_s16  }
  0x1a   :  { %s3305_s23 = scalar_lea.hbm %s4883_s4, 2048 }
  0x1b   :  { %p3306_p8 = scmp.ne.s32.totalorder %s4883_s4, %s3305_s23  ;;  %p3309_p9 = scmp.lt.u32.totalorder %s3305_s23, %s4883_s4 }
  0x1d   :  { %p3311_p10 = pnand %p3309_p9, %p3306_p8 }
  0x1f   :  { %3314 = shalt.err (!%p3311_p10)
}
  0x20   :  { %s3315_s28 = scalar_lea.vmem %s3604_s21, 2048  ;;  %p3320_p12 = scmp.lt.s32.totalorder %s3604_s21, %s3604_s21 }
  0x21   :  { %p3316_p11 = scmp.ne.s32.totalorder %s3604_s21, %s3315_s28  ;;  %p3321_p13 = scmp.lt.s32.totalorder %s3315_s28, %s3315_s28 }
  0x23   :  { %p3322_p0 = por %p3321_p13, %p3320_p12 }
  0x25   :  { %p3323_p1 = pnand %p3322_p0, %p3316_p11 }
  0x27   :  { %3326 = shalt.err (!%p3323_p1)
}
  0x28   :  { %76 = dma.hbm_to_vmem [thread:$0]  %s4883_s4, 2048, %s3604_s21, [#allocation11], %s3511_s30, %s3511_s30, %s3512_s16  }
  0x29   :  { %s137_s18 = sshll.u32 %s4892_s13, 4  ;;  %s3513_s20 = smov [#allocation13]   ;;  %s138_s18 = int_to_ptr.vmem [resolvable:$true] %s137_s18 }
  0x2a   :  { %s98_s22 = sshll.u32 %s3513_s20, 4  ;;  %s3327_s25 = scalar_lea.hbm %s4887_s8, 1024  ;;  %s99_s22 = int_to_ptr.vmem [resolvable:$true] %s98_s22 }
  0x2b   :  { %p3328_p2 = scmp.ne.s32.totalorder %s4887_s8, %s3327_s25  ;;  %p3331_p3 = scmp.lt.u32.totalorder %s3327_s25, %s4887_s8 }
  0x2d   :  { %p3333_p4 = pnand %p3331_p3, %p3328_p2 }
  0x2f   :  { %3336 = shalt.err (!%p3333_p4)
}
  0x30   :  { %s3337_s4 = scalar_lea.vmem %s99_s22, 1024  ;;  %p3342_p6 = scmp.lt.s32.totalorder %s99_s22, %s99_s22 }
  0x31   :  { %p3338_p5 = scmp.ne.s32.totalorder %s99_s22, %s3337_s4  ;;  %p3343_p7 = scmp.lt.s32.totalorder %s3337_s4, %s3337_s4 }
  0x33   :  { %p3344_p8 = por %p3343_p7, %p3342_p6 }
  0x35   :  { %p3345_p9 = pnand %p3344_p8, %p3338_p5 }
  0x37   :  { %3348 = shalt.err (!%p3345_p9)
}
  0x38   :  { %104 = dma.hbm_to_vmem [thread:$0]  %s4887_s8, 1024, %s99_s22, [#allocation14], %s3511_s30, %s3511_s30, %s3512_s16  }
  0x39   :  { %s3349_s1 = scalar_lea.vmem %s138_s18, 16  ;;  %p3354_p11 = scmp.lt.s32.totalorder %s138_s18, %s138_s18 }
  0x3a   :  { %p3350_p10 = scmp.ne.s32.totalorder %s138_s18, %s3349_s1  ;;  %p3355_p12 = scmp.lt.s32.totalorder %s3349_s1, %s3349_s1 }
  0x3c   :  { %p3356_p13 = por %p3355_p12, %p3354_p11 }
  0x3e   :  { %p3357_p0 = pnand %p3356_p13, %p3350_p10 }
  0x40   :  { %3360 = shalt.err (!%p3357_p0)
}
  0x41   :  { %s3514_s15 = smov [#allocation17]   ;;  %s3515_s19 = smov [#allocation3]  }
  0x42   :  { %140 = dma.vmem_to_smem %s138_s18, 16, %s3514_s15, [#allocation18]  }
  0x43   :  { %s32_s29 = sshll.u32 %s3515_s19, 4  ;;  %s3516_s17 = smov [#allocation9]   ;;  %s33_s29 = int_to_ptr.vmem [resolvable:$true] %s32_s29 }
  0x44   :  { %s56_s20 = sshll.u32 %s3516_s17, 4  ;;  %s3361_s8 = scalar_lea.hbm %s4879_s0, 1024  ;;  %s3659_s20 = int_to_ptr.vmem [resolvable:$true] %s56_s20 }
  0x45   :  { %p3362_p1 = scmp.ne.s32.totalorder %s4879_s0, %s3361_s8  ;;  %p3365_p2 = scmp.lt.u32.totalorder %s3361_s8, %s4879_s0 }
  0x47   :  { %p3367_p3 = pnand %p3365_p2, %p3362_p1 }
  0x49   :  { %3370 = shalt.err (!%p3367_p3)
}
  0x4a   :  { %s3371_s18 = scalar_lea.vmem %s33_s29, 1024  ;;  %p3376_p5 = scmp.lt.s32.totalorder %s33_s29, %s33_s29 }
  0x4b   :  { %p3372_p4 = scmp.ne.s32.totalorder %s33_s29, %s3371_s18  ;;  %p3377_p6 = scmp.lt.s32.totalorder %s3371_s18, %s3371_s18 }
  0x4d   :  { %p3378_p7 = por %p3377_p6, %p3376_p5 }
  0x4f   :  { %p3379_p8 = pnand %p3378_p7, %p3372_p4 }
  0x51   :  { %3382 = shalt.err (!%p3379_p8)
}
  0x52   :  { %38 = dma.hbm_to_vmem [thread:$0]  %s4879_s0, 1024, %s33_s29, [#allocation4], %s3511_s30, %s3511_s30, %s3512_s16  }
  0x53   :  { %s3383_s1 = scalar_lea.hbm %s4881_s2, 1024 }
  0x54   :  { %p3384_p9 = scmp.ne.s32.totalorder %s4881_s2, %s3383_s1  ;;  %p3387_p10 = scmp.lt.u32.totalorder %s3383_s1, %s4881_s2 }
  0x56   :  { %p3389_p11 = pnand %p3387_p10, %p3384_p9 }
  0x58   :  { %3392 = shalt.err (!%p3389_p11)
}
  0x59   :  { %s3393_s24 = scalar_lea.vmem %s3659_s20, 1024  ;;  %p3398_p13 = scmp.lt.s32.totalorder %s3659_s20, %s3659_s20 }
  0x5a   :  { %p3394_p12 = scmp.ne.s32.totalorder %s3659_s20, %s3393_s24  ;;  %p3399_p0 = scmp.lt.s32.totalorder %s3393_s24, %s3393_s24 }
  0x5c   :  { %p3400_p1 = por %p3399_p0, %p3398_p13 }
  0x5e   :  { %p3401_p2 = pnand %p3400_p1, %p3394_p12 }
  0x60   :  { %3404 = shalt.err (!%p3401_p2)
}
  0x61   :  { %62 = dma.hbm_to_vmem [thread:$0]  %s4881_s2, 1024, %s3659_s20, [#allocation8], %s3511_s30, %s3511_s30, %s3512_s16  }
  0x62   :  { %s3517_s8 = smov [#allocation12]   ;;  %s3518_s25 = smov [#allocation15]  }
  0x63   :  { %s84_s22 = sshll.u32 %s3517_s8, 4  ;;  %s112_s26 = sshll.u32 %s3518_s25, 4  ;;  %s85_s22 = int_to_ptr.vmem [resolvable:$true] %s84_s22  ;;  %s3696_s26 = int_to_ptr.vmem [resolvable:$true] %s112_s26 }
  0x64   :  { %s3405_s28 = scalar_lea.hbm %s4885_s6, 1024 }
  0x65   :  { %p3406_p3 = scmp.ne.s32.totalorder %s4885_s6, %s3405_s28  ;;  %p3409_p4 = scmp.lt.u32.totalorder %s3405_s28, %s4885_s6 }
  0x67   :  { %p3411_p5 = pnand %p3409_p4, %p3406_p3 }
  0x69   :  { %3414 = shalt.err (!%p3411_p5)
}
  0x6a   :  { %s3415_s2 = scalar_lea.vmem %s85_s22, 1024  ;;  %p3420_p7 = scmp.lt.s32.totalorder %s85_s22, %s85_s22 }
  0x6b   :  { %p3416_p6 = scmp.ne.s32.totalorder %s85_s22, %s3415_s2  ;;  %p3421_p8 = scmp.lt.s32.totalorder %s3415_s2, %s3415_s2 }
  0x6d   :  { %p3422_p9 = por %p3421_p8, %p3420_p7 }
  0x6f   :  { %p3423_p10 = pnand %p3422_p9, %p3416_p6 }
  0x71   :  { %3426 = shalt.err (!%p3423_p10)
}
  0x72   :  { %90 = dma.hbm_to_vmem [thread:$0]  %s4885_s6, 1024, %s85_s22, [#allocation11], %s3511_s30, %s3511_s30, %s3512_s16  }
  0x73   :  { %s3427_s23 = scalar_lea.hbm %s4889_s10, 1024 }
  0x74   :  { %p3428_p11 = scmp.ne.s32.totalorder %s4889_s10, %s3427_s23  ;;  %p3431_p12 = scmp.lt.u32.totalorder %s3427_s23, %s4889_s10 }
  0x76   :  { %p3433_p13 = pnand %p3431_p12, %p3428_p11 }
  0x78   :  { %3436 = shalt.err (!%p3433_p13)
}
  0x79   :  { %s3437_s25 = scalar_lea.vmem %s3696_s26, 1024  ;;  %p3442_p1 = scmp.lt.s32.totalorder %s3696_s26, %s3696_s26 }
  0x7a   :  { %p3438_p0 = scmp.ne.s32.totalorder %s3696_s26, %s3437_s25  ;;  %p3443_p2 = scmp.lt.s32.totalorder %s3437_s25, %s3437_s25 }
  0x7c   :  { %p3444_p3 = por %p3443_p2, %p3442_p1 }
  0x7e   :  { %p3445_p4 = pnand %p3444_p3, %p3438_p0 }
  0x80   :  { %3448 = shalt.err (!%p3445_p4)
}
  0x81   :  { %118 = dma.hbm_to_vmem [thread:$0]  %s4889_s10, 1024, %s3696_s26, [#allocation14], %s3511_s30, %s3511_s30, %s3512_s16  }
  0x82   :  { %s127_s28 = sshll.u32 %s4891_s12, 4  ;;  %s147_s21 = sshll.u32 %s4893_s14, 4  ;;  %s128_s28 = int_to_ptr.vmem [resolvable:$true] %s127_s28  ;;  %s148_s21 = int_to_ptr.vmem [resolvable:$true] %s147_s21 }
  0x83   :  { %s3449_s1 = scalar_lea.vmem %s128_s28, 16  ;;  %p3454_p6 = scmp.lt.s32.totalorder %s128_s28, %s128_s28 }
  0x84   :  { %p3450_p5 = scmp.ne.s32.totalorder %s128_s28, %s3449_s1  ;;  %p3455_p7 = scmp.lt.s32.totalorder %s3449_s1, %s3449_s1 }
  0x86   :  { %p3456_p8 = por %p3455_p7, %p3454_p6 }
  0x88   :  { %p3457_p9 = pnand %p3456_p8, %p3450_p5 }
  0x8a   :  { %3460 = shalt.err (!%p3457_p9)
}
  0x8b   :  { %s3519_s2 = smov [#allocation16]   ;;  %s3461_s10 = scalar_lea.vmem %s148_s21, 16 }
  0x8c   :  { %130 = dma.vmem_to_smem %s128_s28, 16, %s3519_s2, [#allocation6]  }
  0x8d   :  { %p3462_p10 = scmp.ne.s32.totalorder %s148_s21, %s3461_s10  ;;  %p3466_p11 = scmp.lt.s32.totalorder %s148_s21, %s148_s21 }
  0x8e   :  { %p3467_p12 = scmp.lt.s32.totalorder %s3461_s10, %s3461_s10 }
  0x90   :  { %p3468_p13 = por %p3467_p12, %p3466_p11 }
  0x92   :  { %p3469_p0 = pnand %p3468_p13, %p3462_p10 }
  0x94   :  { %3472 = shalt.err (!%p3469_p0)
}
  0x95   :  { %s3520_s12 = smov [#allocation19]  }
  0x96   :  { %150 = dma.vmem_to_smem %s148_s21, 16, %s3520_s12, [#allocation18]  }
  0x97   :  { %3495 = dma.done.wait [#allocation4], 1024  }
  0x98   :  { %3496 = vsyncadd [#allocation4], 4294966272 }
  0x99   :  { %3497 = dma.done.wait [#allocation8], 2048  }
  0x9a   :  { %3498 = vsyncadd [#allocation8], 4294965248 }
  0x9b   :  { %3499 = dma.done.wait [#allocation11], 3072  }
  0x9c   :  { %3500 = vsyncadd [#allocation11], 4294964224 }
  0x9d   :  { %3501 = dma.done.wait [#allocation14], 2048  }
  0x9e   :  { %3502 = vsyncadd [#allocation14], 4294965248 }
  0x9f   :  { %3503 = dma.done.wait [#allocation6], 16  }
  0xa0   :  { %3504 = vsyncadd [#allocation6], 4294967280 }
  0xa1   :  { %3505 = dma.done.wait [#allocation18], 32  }
  0xa2   :  { %3506 = vsyncadd [#allocation18], 4294967264 }
  0xa3   :  { %181 = sfence }
  0xa4   :  { %v3148_v0 = vld [vmem:[#allocation9] sm:$0xff]   ;;  %v3149_v1 = vld [vmem:[#allocation9 + $0x8] sm:$0xff]   ;;  %v3150_v2 = vld [vmem:[#allocation9 + $0x10] sm:$0xff]   ;;  %s463_s14 = sld [smem:[#allocation16]]  ;;  %s2752_s26 = sld [smem:[#allocation16 + $0x3]]  ;;  %vm3522_vm0 = vmmov 0  }
  0xa5   :  { %2901 = vmatprep.subr.bf16.mxu0 %v3148_v0  ;;  %v3151_v3 = vld [vmem:[#allocation9 + $0x18] sm:$0xff]   ;;  %v3156_v4 = vld [vmem:[#allocation7] sm:$0xff]   ;;  %v3153_v6 = vld [vmem:[#allocation9 + $0x28] sm:$0xff]   ;;  %s497_s20 = sld [smem:[#allocation17]]  ;;  %s2718_s15 = sld [smem:[#allocation17 + $0x1]]  ;;  %vm2475_vm1 = vcmask 1041409  }
  0xa6   :  { %2902 = vmatpush3.bf16.msra.mxu0 %v3148_v0  ;;  %2917 = vmatprep.mubr.bf16.mxu0 %v3156_v4  ;;  %v3152_v5 = vld [vmem:[#allocation9 + $0x20] sm:$0xff]   ;;  %v3165_v8 = vld [vmem:[#allocation10 + $0x8] sm:$0xff]   ;;  %v3154_v9 = vld [vmem:[#allocation9 + $0x30] sm:$0xff]   ;;  %s2719_s19 = sld [smem:[#allocation17 + $0x2]]  ;;  %s2737_s23 = sld [smem:[#allocation16 + $0x1]] }
  0xa7   :  { %2903 = vmatprep.subr.bf16.mxu0 %v3149_v1  ;;  %v3164_v7 = vld [vmem:[#allocation10] sm:$0xff]   ;;  %v3166_v10 = vld [vmem:[#allocation10 + $0x10] sm:$0xff]   ;;  %v3155_v11 = vld [vmem:[#allocation9 + $0x38] sm:$0xff]   ;;  %s4112_s24 = sld [smem:[#allocation16 + $0x2]]  ;;  %s4114_s0 = sld [smem:[#allocation16 + $0x4]] }
  0xa8   :  { %2933 = vmatprep.subr.bf16.mxu1 %v3164_v7  ;;  %v3157_v12 = vld [vmem:[#allocation7 + $0x8] sm:$0xff]   ;;  %v3158_v13 = vld [vmem:[#allocation7 + $0x10] sm:$0xff]   ;;  %v3159_v14 = vld [vmem:[#allocation7 + $0x18] sm:$0xff]   ;;  %s4137_s29 = sld [smem:[#allocation17 + $0x3]]  ;;  %s4139_s8 = sld [smem:[#allocation17 + $0x4]] }
  0xa9   :  { %2934 = vmatpush3.bf16.msra.mxu1 %v3164_v7  ;;  %v3160_v15 = vld [vmem:[#allocation7 + $0x20] sm:$0xff]   ;;  %v3161_v16 = vld [vmem:[#allocation7 + $0x28] sm:$0xff]   ;;  %v3162_v17 = vld [vmem:[#allocation7 + $0x30] sm:$0xff]   ;;  %s4148_s25 = sld [smem:[#allocation17 + $0x5]]  ;;  %s2755_s27 = sld [smem:[#allocation17 + $0x6]] }
  0xaa   :  { %2904 = vmatpush3.bf16.msra.mxu0 %v3149_v1  ;;  %2935 = vmatprep.subr.bf16.mxu1 %v3165_v8  ;;  %v3163_v18 = vld [vmem:[#allocation7 + $0x38] sm:$0xff]   ;;  %v3168_v20 = vld [vmem:[#allocation10 + $0x20] sm:$0xff]   ;;  %v3169_v21 = vld [vmem:[#allocation10 + $0x28] sm:$0xff]   ;;  %v3746_v30 = vstv %s463_s14  ;;  %v3766_v43 = vstv %s2752_s26  ;;  %s4609_s18 = sld [smem:[#allocation17 + $0x7]]  ;;  %s4617_s28 = sld [smem:[#allocation17 + $0x8]] }
  0xab   :  { %2905 = vmatprep.subr.bf16.mxu0 %v3150_v2  ;;  %v3167_v19 = vld [vmem:[#allocation10 + $0x18] sm:$0xff]   ;;  %v3170_v22 = vld [vmem:[#allocation10 + $0x30] sm:$0xff]   ;;  %v3742_v24 = vld [vmem:[%s4882_s3] ss:$0 sm:$0xff]  ;;  %v3770_v50 = vstv %s497_s20  ;;  %v3775_v54 = vstv %s2718_s15  ;;  %s2430_s21 = sld [smem:[#allocation19]]  ;;  %s2767_s1 = sld [smem:[#allocation19 + $0x1]] }
  0xac   :  { %v3171_v23 = vld [vmem:[#allocation10 + $0x38] sm:$0xff]   ;;  %v3777_v55 = vstv %s2719_s19  ;;  %s2768_s2 = sld [smem:[#allocation19 + $0x2]]  ;;  %s3523_s30 = smov [#allocation20]  }
  0xad   :  { %2936 = vmatpush3.bf16.msra.mxu1 %v3165_v8  ;;  %s2687_s16 = sshll.u32 %s3523_s30, 4  ;;  %s2688_s16 = int_to_ptr.vmem [resolvable:$true] %s2687_s16 }
  0xae   :  { %2906 = vmatpush3.bf16.msra.mxu0 %v3150_v2  ;;  %2937 = vmatprep.subr.bf16.mxu1 %v3166_v10  ;;  %p3478_p2 = scmp.lt.s32.totalorder %s2688_s16, %s2688_s16 }
  0xaf   :  { %2907 = vmatprep.subr.bf16.mxu0 %v3151_v3 }
  0xb1   :  { %2938 = vmatpush3.bf16.msra.mxu1 %v3166_v10 }
  0xb2   :  { %2908 = vmatpush3.bf16.msra.mxu0 %v3151_v3  ;;  %2939 = vmatprep.subr.bf16.mxu1 %v3167_v19 }
  0xb3   :  { %2909 = vmatprep.subr.bf16.mxu0 %v3152_v5 }
  0xb5   :  { %2940 = vmatpush3.bf16.msra.mxu1 %v3167_v19 }
  0xb6   :  { %2910 = vmatpush3.bf16.msra.mxu0 %v3152_v5  ;;  %2941 = vmatprep.subr.bf16.mxu1 %v3168_v20 }
  0xb7   :  { %2911 = vmatprep.subr.bf16.mxu0 %v3153_v6 }
  0xb9   :  { %2942 = vmatpush3.bf16.msra.mxu1 %v3168_v20 }
  0xba   :  { %2912 = vmatpush3.bf16.msra.mxu0 %v3153_v6  ;;  %2943 = vmatprep.subr.bf16.mxu1 %v3169_v21 }
  0xbb   :  { %2913 = vmatprep.subr.bf16.mxu0 %v3154_v9 }
  0xbd   :  { %2944 = vmatpush3.bf16.msra.mxu1 %v3169_v21 }
  0xbe   :  { %2914 = vmatpush3.bf16.msra.mxu0 %v3154_v9  ;;  %2945 = vmatprep.subr.bf16.mxu1 %v3170_v22 }
  0xbf   :  { %2915 = vmatprep.subr.bf16.mxu0 %v3155_v11 }
  0xc1   :  { %2946 = vmatpush3.bf16.msra.mxu1 %v3170_v22 }
  0xc2   :  { %2916 = vmatpush3.bf16.msra.mxu0 %v3155_v11  ;;  %2947 = vmatprep.subr.bf16.mxu1 %v3171_v23 }
  0xc5   :  { %2918 = vmatmul.mubr.bf16.vlgmr.msra.gmra.mrb[0].mxu0 %v3157_v12  ;;  %2948 = vmatpush3.bf16.msra.mxu1 %v3171_v23 }
  0xc6   :  { %2921 = vmatprep.mubr.bf16.mxu0 %v3158_v13 }
  0xcd   :  { %2922 = vmatmul.mubr.bf16.gmra.mrb[4].mxu0 %v3159_v14 }
  0xce   :  { %2925 = vmatprep.mubr.bf16.mxu0 %v3160_v15 }
  0xd5   :  { %2926 = vmatmul.mubr.bf16.gmra.mrb[8].mxu0 %v3161_v16 }
  0xd6   :  { %2929 = vmatprep.mubr.bf16.mxu0 %v3162_v17 }
  0xdd   :  { %2930 = vmatmul.mubr.bf16.gmra.mrb[12].mxu0 %v3163_v18 }
 0x198   :  { %v2919_v25 = vpop.f32.mrb[0].mxu0 }
 0x199   :  { %v361_v26 = vadd.f32 %v2919_v25, %v3742_v24  ;;  %v352_v27 = vpop.f32.mrb[1].mxu0 }
 0x19a   :  { %v353_v28 = vadd.f32 %v3742_v24, %v352_v27  ;;  %v2920_v29 = vpop.f32.mrb[2].mxu0 }
 0x19b   :  { %v364_v31 = vadd.f32 %v2920_v29, %v3742_v24  ;;  %v355_v32 = vpop.f32.mrb[3].mxu0  ;;  %v3749_v33 = vmax.f32 %v361_v26, 0.0 }
 0x19c   :  { %v3751_v34 = vmax.f32 %v353_v28, 0.0  ;;  %v356_v35 = vadd.f32 %v3742_v24, %v355_v32 }
 0x19d   :  { %v3754_v36 = vmax.f32 %v364_v31, 0.0  ;;  %v483_v39 = vmul.f32 %v3746_v30, %v3749_v33 }
 0x19e   :  { %v481_v37 = vmul.f32 %v3746_v30, %v3751_v34  ;;  %v3758_v38 = vmax.f32 %v356_v35, 0.0 }
 0x19f   :  { %v484_v40 = vmul.f32 %v3746_v30, %v3754_v36  ;;  %v500_v56 = vmax.f32 %v483_v39, 0.0 }
 0x1a0   :  { %v482_v41 = vmul.f32 %v3746_v30, %v3758_v38  ;;  %v2923_v42 = vpop.f32.mrb[4].mxu0  ;;  %v498_v46 = vmax.f32 %v481_v37, 0.0 }
 0x1a1   :  { %v377_v44 = vadd.f32 %v2923_v42, %v3742_v24  ;;  %v368_v45 = vpop.f32.mrb[5].mxu0  ;;  %v501_v57 = vmax.f32 %v484_v40, 0.0  ;;  %v517_v7 = vmul.f32 %v3770_v50, %v500_v56  ;;  %v535_v8 = vmul.f32 %v3775_v54, %v500_v56 }
 0x1a2   :  { %v499_v47 = vmax.f32 %v482_v41, 0.0  ;;  %v369_v48 = vadd.f32 %v3742_v24, %v368_v45  ;;  %v2924_v49 = vpop.f32.mrb[6].mxu0  ;;  %v515_v2 = vmul.f32 %v3770_v50, %v498_v46  ;;  %v533_v3 = vmul.f32 %v3775_v54, %v498_v46 }
 0x1a3   :  { %v3772_v51 = vmax.f32 %v377_v44, 0.0  ;;  %v380_v52 = vadd.f32 %v2924_v49, %v3742_v24  ;;  %v371_v53 = vpop.f32.mrb[7].mxu0  ;;  %v567_v12 = vmul.f32 %v3777_v55, %v498_v46  ;;  %v518_v13 = vmul.f32 %v3770_v50, %v501_v57 }
 0x1a4   :  { %v3779_v58 = vmax.f32 %v369_v48, 0.0  ;;  %v372_v59 = vadd.f32 %v3742_v24, %v371_v53  ;;  %v516_v62 = vmul.f32 %v3770_v50, %v499_v47  ;;  %v534_v63 = vmul.f32 %v3775_v54, %v499_v47 }
 0x1a5   :  { %v3784_v60 = vmul.f32 %v3766_v43, %v3772_v51  ;;  %v3786_v61 = vmax.f32 %v380_v52, 0.0  ;;  %v487_v14 = vmul.f32 %v3746_v30, %v3772_v51  ;;  %v549_v18 = vadd.f32 %v533_v3, %v515_v2 }
 0x1a6   :  { %v3792_v0 = vmul.f32 %v3766_v43, %v3779_v58  ;;  %v3794_v1 = vmax.f32 %v372_v59, 0.0  ;;  %v550_v11 = vadd.f32 %v534_v63, %v516_v62  ;;  %v485_v15 = vmul.f32 %v3746_v30, %v3779_v58 }
 0x1a7   :  { %4948 = vst [vmem:[#allocation28_spill] sm:$0xff] %v3784_v60  ;;  %v3800_v4 = vmul.f32 %v3766_v43, %v3786_v61  ;;  %v568_v22 = vmul.f32 %v3777_v55, %v499_v47  ;;  %v536_v23 = vmul.f32 %v3775_v54, %v501_v57  ;;  %v488_v25 = vmul.f32 %v3746_v30, %v3786_v61 }
 0x1a8   :  { %4949 = vst [vmem:[#allocation29_spill] sm:$0xff] %v3792_v0  ;;  %v3804_v5 = vmul.f32 %v3766_v43, %v3794_v1  ;;  %v2927_v6 = vpop.f32.mrb[8].mxu0  ;;  %v486_v26 = vmul.f32 %v3746_v30, %v3794_v1  ;;  %v3836_v37 = vmax.f32 %v487_v14, 0.0  ;;  %v502_v39 = vmax.f32 %v485_v15, 0.0 }
 0x1a9   :  { %4950 = vst [vmem:[#allocation30_spill] sm:$0xff] %v3800_v4  ;;  %v393_v9 = vadd.f32 %v2927_v6, %v3742_v24  ;;  %v384_v10 = vpop.f32.mrb[9].mxu0  ;;  %v584_v35 = vadd.f32 %v568_v22, %v550_v11  ;;  %v583_v44 = vadd.f32 %v567_v12, %v549_v18  ;;  %v551_v45 = vadd.f32 %v535_v8, %v517_v7 }
 0x1aa   :  { %4951 = vst [vmem:[#allocation31_spill] sm:$0xff] %v3804_v5  ;;  %v385_v16 = vadd.f32 %v3742_v24, %v384_v10  ;;  %v2928_v17 = vpop.f32.mrb[10].mxu0  ;;  %v552_v46 = vadd.f32 %v536_v23, %v518_v13  ;;  %v505_v47 = vmax.f32 %v488_v25, 0.0  ;;  %v503_v48 = vmax.f32 %v486_v26, 0.0 }
 0x1ab   :  { %v3816_v19 = vmax.f32 %v393_v9, 0.0  ;;  %v396_v20 = vadd.f32 %v2928_v17, %v3742_v24  ;;  %v387_v21 = vpop.f32.mrb[11].mxu0  ;;  %v599_v62 = vpack.c.bf16 %v584_v35, %v583_v44  ;;  %v569_v63 = vmul.f32 %v3777_v55, %v500_v56 }
 0x1ac   :  { %v3825_v27 = vmax.f32 %v385_v16, 0.0  ;;  %v388_v28 = vadd.f32 %v3742_v24, %v387_v21  ;;  %v570_v2 = vmul.f32 %v3777_v55, %v501_v57  ;;  %v519_v57 = vmul.f32 %v3770_v50, %v502_v39 }
 0x1ad   :  { %v491_v29 = vmul.f32 %v3746_v30, %v3816_v19  ;;  %v3832_v31 = vmul.f32 %v3766_v43, %v3816_v19  ;;  %v3834_v32 = vmax.f32 %v396_v20, 0.0  ;;  %2949 = vmatprep.mubr.bf16.mxu1 %v599_v62  ;;  %v585_v11 = vadd.f32 %v569_v63, %v551_v45 }
 0x1ae   :  { %v3840_v40 = vmul.f32 %v3766_v43, %v3825_v27  ;;  %v3842_v41 = vmax.f32 %v388_v28, 0.0  ;;  %v489_v49 = vmul.f32 %v3746_v30, %v3825_v27  ;;  %v586_v12 = vadd.f32 %v570_v2, %v552_v46 }
 0x1af   :  { %4952 = vst [vmem:[#allocation32_spill] sm:$0xff] %v3832_v31  ;;  %v3846_v42 = vmul.f32 %v3766_v43, %v3834_v32  ;;  %v3854_v59 = vmax.f32 %v491_v29, 0.0  ;;  %v492_v6 = vmul.f32 %v3746_v30, %v3834_v32  ;;  %v520_v17 = vmul.f32 %v3770_v50, %v503_v48 }
 0x1b0   :  { %4953 = vst [vmem:[#allocation33_spill] sm:$0xff] %v3840_v40  ;;  %v3852_v52 = vmul.f32 %v3766_v43, %v3842_v41  ;;  %v2931_v53 = vpop.f32.mrb[12].mxu0  ;;  %v490_v7 = vmul.f32 %v3746_v30, %v3842_v41  ;;  %v600_v18 = vpack.c.bf16 %v586_v12, %v585_v11  ;;  %v537_v21 = vmul.f32 %v3775_v54, %v502_v39 }
 0x1b1   :  { %4954 = vst [vmem:[#allocation34_spill] sm:$0xff] %v3846_v42  ;;  %v400_v3 = vpop.f32.mrb[13].mxu0  ;;  %v409_v8 = vadd.f32 %v2931_v53, %v3742_v24  ;;  %v538_v22 = vmul.f32 %v3775_v54, %v503_v48  ;;  %v506_v23 = vmax.f32 %v489_v49, 0.0  ;;  %v509_v28 = vmax.f32 %v492_v6, 0.0 }
 0x1b2   :  { %4955 = vst [vmem:[#allocation35_spill] sm:$0xff] %v3852_v52  ;;  %v401_v9 = vadd.f32 %v3742_v24, %v400_v3  ;;  %v2932_v10 = vpop.f32.mrb[14].mxu0  ;;  %v507_v29 = vmax.f32 %v490_v7, 0.0  ;;  %2950 = vmatmul.mubr.bf16.vlgmr.msra.gmra.mrb[0].mxu1 %v600_v18  ;;  %v571_v53 = vmul.f32 %v3777_v55, %v502_v39  ;;  %v553_v63 = vadd.f32 %v537_v21, %v519_v57 }
 0x1b3   :  { %v412_v13 = vadd.f32 %v2932_v10, %v3742_v24  ;;  %v403_v56 = vpop.f32.mrb[15].mxu0  ;;  %v3866_v14 = vmax.f32 %v409_v8, 0.0  ;;  %v554_v2 = vadd.f32 %v538_v22, %v520_v17  ;;  %v572_v3 = vmul.f32 %v3777_v55, %v503_v48 }
 0x1b4   :  { %v3868_v15 = vmax.f32 %v401_v9, 0.0  ;;  %v404_v16 = vadd.f32 %v3742_v24, %v403_v56  ;;  %v521_v9 = vmul.f32 %v3770_v50, %v3836_v37  ;;  %v587_v10 = vadd.f32 %v571_v53, %v553_v63 }
 0x1b5   :  { %v3872_v20 = vmax.f32 %v412_v13, 0.0  ;;  %v495_v25 = vmul.f32 %v3746_v30, %v3866_v14  ;;  %v3880_v26 = vmul.f32 %v3766_v43, %v3866_v14  ;;  %v588_v11 = vadd.f32 %v572_v3, %v554_v2 }
 0x1b6   :  { %v493_v24 = vmul.f32 %v3746_v30, %v3868_v15  ;;  %v3886_v35 = vmul.f32 %v3766_v43, %v3868_v15  ;;  %v3896_v49 = vmax.f32 %v404_v16, 0.0  ;;  %v522_v39 = vmul.f32 %v3770_v50, %v505_v47 }
 0x1b7   :  { %4956 = vst [vmem:[#allocation36_spill] sm:$0xff] %v3880_v26  ;;  %v496_v44 = vmul.f32 %v3746_v30, %v3872_v20  ;;  %v3890_v45 = vmax.f32 %v495_v25, 0.0  ;;  %v3894_v46 = vmul.f32 %v3766_v43, %v3872_v20  ;;  %v539_v12 = vmul.f32 %v3775_v54, %v3836_v37 }
 0x1b8   :  { %4957 = vst [vmem:[#allocation37_spill] sm:$0xff] %v3886_v35  ;;  %v510_v62 = vmax.f32 %v493_v24, 0.0  ;;  %v494_v7 = vmul.f32 %v3746_v30, %v3896_v49  ;;  %v3904_v8 = vmul.f32 %v3766_v43, %v3896_v49  ;;  %v540_v48 = vmul.f32 %v3775_v54, %v505_v47 }
 0x1b9   :  { %4958 = vst [vmem:[#allocation38_spill] sm:$0xff] %v3894_v46  ;;  %v513_v6 = vmax.f32 %v496_v44, 0.0  ;;  %v573_v30 = vmul.f32 %v3777_v55, %v3836_v37  ;;  %v574_v56 = vmul.f32 %v3777_v55, %v505_v47  ;;  %v601_v57 = vpack.c.bf16 %v588_v11, %v587_v10 }
 0x1ba   :  { %4959 = vst [vmem:[#allocation39_spill] sm:$0xff] %v3904_v8  ;;  %v511_v13 = vmax.f32 %v494_v7, 0.0  ;;  %v555_v16 = vadd.f32 %v539_v12, %v521_v9  ;;  %v523_v17 = vmul.f32 %v3770_v50, %v506_v23  ;;  %v524_v18 = vmul.f32 %v3770_v50, %v507_v29 }
 0x1bb   :  { %v556_v21 = vadd.f32 %v540_v48, %v522_v39  ;;  %v541_v22 = vmul.f32 %v3775_v54, %v506_v23  ;;  %v542_v25 = vmul.f32 %v3775_v54, %v507_v29  ;;  %v575_v24 = vmul.f32 %v3777_v55, %v506_v23  ;;  %2953 = vmatprep.mubr.bf16.mxu1 %v601_v57 }
 0x1bc   :  { %v589_v44 = vadd.f32 %v573_v30, %v555_v16  ;;  %v576_v53 = vmul.f32 %v3777_v55, %v507_v29  ;;  %v525_v37 = vmul.f32 %v3770_v50, %v3854_v59  ;;  %v526_v47 = vmul.f32 %v3770_v50, %v509_v28 }
 0x1bd   :  { %v590_v63 = vadd.f32 %v574_v56, %v556_v21  ;;  %v557_v2 = vadd.f32 %v541_v22, %v523_v17  ;;  %v558_v3 = vadd.f32 %v542_v25, %v524_v18  ;;  %v543_v7 = vmul.f32 %v3775_v54, %v3854_v59 }
 0x1be   :  { %v544_v9 = vmul.f32 %v3775_v54, %v509_v28  ;;  %v577_v23 = vmul.f32 %v3777_v55, %v3854_v59  ;;  %v578_v10 = vmul.f32 %v3777_v55, %v509_v28  ;;  %v527_v29 = vmul.f32 %v3770_v50, %v510_v62 }
 0x1bf   :  { %v602_v11 = vpack.c.bf16 %v590_v63, %v589_v44  ;;  %v591_v39 = vadd.f32 %v575_v24, %v557_v2  ;;  %v592_v12 = vadd.f32 %v576_v53, %v558_v3  ;;  %v559_v48 = vadd.f32 %v543_v7, %v525_v37 }
 0x1c0   :  { %v560_v30 = vadd.f32 %v544_v9, %v526_v47  ;;  %v528_v56 = vmul.f32 %v3770_v50, %v511_v13  ;;  %v545_v57 = vmul.f32 %v3775_v54, %v510_v62  ;;  %v546_v16 = vmul.f32 %v3775_v54, %v511_v13 }
 0x1c1   :  { %2954 = vmatmul.mubr.bf16.gmra.mrb[4].mxu1 %v602_v11  ;;  %v603_v17 = vpack.c.bf16 %v592_v12, %v591_v39  ;;  %v593_v18 = vadd.f32 %v577_v23, %v559_v48  ;;  %v579_v59 = vmul.f32 %v3777_v55, %v510_v62  ;;  %v580_v28 = vmul.f32 %v3777_v55, %v511_v13 }
 0x1c2   :  { %v594_v21 = vadd.f32 %v578_v10, %v560_v30  ;;  %v561_v22 = vadd.f32 %v545_v57, %v527_v29  ;;  %v562_v25 = vadd.f32 %v546_v16, %v528_v56  ;;  %v529_v24 = vmul.f32 %v3770_v50, %v3890_v45  ;;  %v3172_v29 = vld [vmem:[#allocation3] sm:$0xff]  }
 0x1c3   :  { %2957 = vmatprep.mubr.bf16.mxu1 %v603_v17  ;;  %v530_v44 = vmul.f32 %v3770_v50, %v513_v6  ;;  %v547_v53 = vmul.f32 %v3775_v54, %v3890_v45  ;;  %v548_v37 = vmul.f32 %v3775_v54, %v513_v6  ;;  %v581_v13 = vmul.f32 %v3777_v55, %v3890_v45 }
 0x1c4   :  { %v604_v47 = vpack.c.bf16 %v594_v21, %v593_v18  ;;  %v595_v63 = vadd.f32 %v579_v59, %v561_v22  ;;  %v596_v2 = vadd.f32 %v580_v28, %v562_v25  ;;  %v582_v7 = vmul.f32 %v3777_v55, %v513_v6  ;;  %2981 = vmatprep.mubr.bf16.mxu0 %v3172_v29 }
 0x1c5   :  { %v563_v62 = vadd.f32 %v547_v53, %v529_v24  ;;  %v564_v3 = vadd.f32 %v548_v37, %v530_v44  ;;  %v4206_v26 = vstv %s4148_s25 }
 0x1c6   :  { %v605_v9 = vpack.c.bf16 %v596_v2, %v595_v63  ;;  %v3173_v63 = vld [vmem:[#allocation3 + $0x8] sm:$0xff]   ;;  %v3174_v2 = vld [vmem:[#allocation3 + $0x10] sm:$0xff]  }
 0x1c7   :  { %v597_v23 = vadd.f32 %v581_v13, %v563_v62  ;;  %v598_v10 = vadd.f32 %v582_v7, %v564_v3  ;;  %v3175_v62 = vld [vmem:[#allocation3 + $0x18] sm:$0xff]   ;;  %v3176_v3 = vld [vmem:[#allocation3 + $0x20] sm:$0xff]   ;;  %v3177_v13 = vld [vmem:[#allocation3 + $0x28] sm:$0xff]  }
 0x1c8   :  { %v3178_v7 = vld [vmem:[#allocation3 + $0x30] sm:$0xff]  }
 0x1c9   :  { %2958 = vmatmul.mubr.bf16.gmra.mrb[8].mxu1 %v604_v47  ;;  %v606_v50 = vpack.c.bf16 %v598_v10, %v597_v23  ;;  %v2728_v23 = vld [vmem:[%s4884_s5] ss:$0 sm:$0xff] }
 0x1ca   :  { %2961 = vmatprep.mubr.bf16.mxu1 %v605_v9  ;;  %v3179_v9 = vld [vmem:[#allocation3 + $0x38] sm:$0xff]  }
 0x1d1   :  { %2962 = vmatmul.mubr.bf16.gmra.mrb[12].mxu1 %v606_v50 }
 0x285   :  { %v2951_v54 = vpop.f32.mrb[0].mxu1 }
 0x286   :  { %v705_v11 = vpop.f32.mrb[1].mxu1 }
 0x287   :  { %v2952_v39 = vpop.f32.mrb[2].mxu1 }
 0x288   :  { %v769_v12 = vpack.c.bf16 %v2952_v39, %v2951_v54  ;;  %v708_v48 = vpop.f32.mrb[3].mxu1 }
 0x289   :  { %v768_v30 = vpack.c.bf16 %v708_v48, %v705_v11 }
 0x28b   :  { %2965 = vmatprep.subr.bf16.mxu0 %v768_v30 }
 0x28c   :  { %2966 = vmatpush3.bf16.msra.mxu0 %v768_v30 }
 0x28d   :  { %2967 = vmatprep.subr.bf16.mxu0 %v769_v12 }
 0x290   :  { %2968 = vmatpush3.bf16.msra.mxu0 %v769_v12 }
 0x294   :  { %v2955_v55 = vpop.f32.mrb[4].mxu1 }
 0x295   :  { %v721_v45 = vpop.f32.mrb[5].mxu1 }
 0x296   :  { %v2956_v6 = vpop.f32.mrb[6].mxu1 }
 0x297   :  { %v771_v56 = vpack.c.bf16 %v2956_v6, %v2955_v55  ;;  %v724_v57 = vpop.f32.mrb[7].mxu1 }
 0x298   :  { %v770_v16 = vpack.c.bf16 %v724_v57, %v721_v45 }
 0x29a   :  { %2969 = vmatprep.subr.bf16.mxu0 %v770_v16 }
 0x29b   :  { %2970 = vmatpush3.bf16.msra.mxu0 %v770_v16 }
 0x29c   :  { %v2959_v17 = vpop.f32.mrb[8].mxu1  ;;  %2971 = vmatprep.subr.bf16.mxu0 %v771_v56 }
 0x29d   :  { %v737_v18 = vpop.f32.mrb[9].mxu1 }
 0x29e   :  { %v2960_v59 = vpop.f32.mrb[10].mxu1 }
 0x29f   :  { %v773_v28 = vpack.c.bf16 %v2960_v59, %v2959_v17  ;;  %v740_v21 = vpop.f32.mrb[11].mxu1  ;;  %2972 = vmatpush3.bf16.msra.mxu0 %v771_v56 }
 0x2a0   :  { %v772_v22 = vpack.c.bf16 %v740_v21, %v737_v18 }
 0x2a2   :  { %2973 = vmatprep.subr.bf16.mxu0 %v772_v22 }
 0x2a3   :  { %2974 = vmatpush3.bf16.msra.mxu0 %v772_v22 }
 0x2a4   :  { %v2963_v25 = vpop.f32.mrb[12].mxu1  ;;  %2975 = vmatprep.subr.bf16.mxu0 %v773_v28 }
 0x2a5   :  { %v753_v24 = vpop.f32.mrb[13].mxu1 }
 0x2a6   :  { %v2964_v44 = vpop.f32.mrb[14].mxu1 }
 0x2a7   :  { %v775_v53 = vpack.c.bf16 %v2964_v44, %v2963_v25  ;;  %v756_v37 = vpop.f32.mrb[15].mxu1  ;;  %2976 = vmatpush3.bf16.msra.mxu0 %v773_v28 }
 0x2a8   :  { %v774_v47 = vpack.c.bf16 %v756_v37, %v753_v24 }
 0x2aa   :  { %2977 = vmatprep.subr.bf16.mxu0 %v774_v47 }
 0x2ab   :  { %2978 = vmatpush3.bf16.msra.mxu0 %v774_v47 }
 0x2ac   :  { %2979 = vmatprep.subr.bf16.mxu0 %v775_v53 }
 0x2af   :  { %2980 = vmatpush3.bf16.msra.mxu0 %v775_v53 }
 0x2b2   :  { %2982 = vmatmul.mubr.bf16.vlgmr.msra.gmra.mrb[16].mxu0 %v3173_v63 }
 0x2b3   :  { %2985 = vmatprep.mubr.bf16.mxu0 %v3174_v2 }
 0x2ba   :  { %2986 = vmatmul.mubr.bf16.gmra.mrb[20].mxu0 %v3175_v62 }
 0x2bb   :  { %2989 = vmatprep.mubr.bf16.mxu0 %v3176_v3 }
 0x2c2   :  { %2990 = vmatmul.mubr.bf16.gmra.mrb[24].mxu0 %v3177_v13 }
 0x2c3   :  { %2993 = vmatprep.mubr.bf16.mxu0 %v3178_v7 }
 0x2ca   :  { %2994 = vmatmul.mubr.bf16.gmra.mrb[28].mxu0 %v3179_v9 }
 0x2cb   :  { %3045 = vmatprep.mubr.bf16.mxu0 %v3172_v29 }
 0x385   :  { %v2983_v10 = vpop.f32.mrb[16].mxu0 }
 0x386   :  { %v3948_v50 = vadd.f32 %v2983_v10, %v2728_v23  ;;  %v865_v54 = vpop.f32.mrb[17].mxu0 }
 0x387   :  { %v3950_v11 = vadd.f32 %v2728_v23, %v865_v54  ;;  %v2984_v39 = vpop.f32.mrb[18].mxu0 }
 0x388   :  { %v930_v12 = vmax.f32 %v3948_v50, 0.0  ;;  %v3953_v48 = vadd.f32 %v2984_v39, %v2728_v23  ;;  %v868_v30 = vpop.f32.mrb[19].mxu0 }
 0x389   :  { %v928_v55 = vmax.f32 %v3950_v11, 0.0  ;;  %v3956_v45 = vadd.f32 %v2728_v23, %v868_v30 }
 0x38a   :  { %948 = vadd.xlane.f32.xlu1 %v930_v12  ;;  %v931_v29 = vmax.f32 %v3953_v48, 0.0 }
 0x38b   :  { %944 = vadd.xlane.f32.xlu0 %v928_v55  ;;  %v929_v6 = vmax.f32 %v3956_v45, 0.0 }
 0x38d   :  { %v2987_v56 = vpop.f32.mrb[20].mxu0 }
 0x38e   :  { %950 = vadd.xlane.f32.xlu1 %v931_v29  ;;  %v881_v57 = vpop.f32.mrb[21].mxu0  ;;  %v3966_v59 = vadd.f32 %v2987_v56, %v2728_v23 }
 0x38f   :  { %v3964_v16 = vadd.f32 %v2728_v23, %v881_v57  ;;  %v2988_v17 = vpop.f32.mrb[22].mxu0  ;;  %946 = vadd.xlane.f32.xlu0 %v929_v6 }
 0x390   :  { %v884_v18 = vpop.f32.mrb[23].mxu0  ;;  %v3971_v22 = vadd.f32 %v2988_v17, %v2728_v23  ;;  %v934_v24 = vmax.f32 %v3966_v59, 0.0 }
 0x391   :  { %v932_v28 = vmax.f32 %v3964_v16, 0.0  ;;  %v3969_v21 = vadd.f32 %v2728_v23, %v884_v18 }
 0x392   :  { %v935_v37 = vmax.f32 %v3971_v22, 0.0 }
 0x393   :  { %v933_v25 = vmax.f32 %v3969_v21, 0.0  ;;  %952 = vadd.xlane.f32.xlu0 %v932_v28 }
 0x395   :  { %v2991_v44 = vpop.f32.mrb[24].mxu0  ;;  %954 = vadd.xlane.f32.xlu1 %v933_v25 }
 0x396   :  { %v897_v53 = vpop.f32.mrb[25].mxu0  ;;  %v3982_v62 = vadd.f32 %v2991_v44, %v2728_v23 }
 0x397   :  { %v3978_v47 = vadd.f32 %v2728_v23, %v897_v53  ;;  %v2992_v63 = vpop.f32.mrb[26].mxu0  ;;  %956 = vadd.xlane.f32.xlu0 %v934_v24 }
 0x398   :  { %v900_v2 = vpop.f32.mrb[27].mxu0  ;;  %v3989_v7 = vadd.f32 %v2992_v63, %v2728_v23  ;;  %v4899_v10 = vmax.f32 %v3982_v62, 0.0 }
 0x399   :  { %v936_v3 = vmax.f32 %v3978_v47, 0.0  ;;  %v3985_v13 = vadd.f32 %v2728_v23, %v900_v2  ;;  %958 = vadd.xlane.f32.xlu1 %v935_v37  ;;  %v4961_v47 = vmax.f32 %v3982_v62, 0.0 }
 0x39a   :  { %v4897_v39 = vmax.f32 %v3989_v7, 0.0 }
 0x39b   :  { %v4901_v9 = vmax.f32 %v3985_v13, 0.0  ;;  %960 = vadd.xlane.f32.xlu0 %v936_v3  ;;  %v4960_v22 = vmax.f32 %v3985_v13, 0.0  ;;  %v4962_v13 = vmax.f32 %v3989_v7, 0.0 }
 0x39d   :  { %v2995_v54 = vpop.f32.mrb[28].mxu0  ;;  %962 = vadd.xlane.f32.xlu1 %v4901_v9 }
 0x39e   :  { %v913_v11 = vpop.f32.mrb[29].mxu0  ;;  %v4002_v57 = vadd.f32 %v2995_v54, %v2728_v23 }
 0x39f   :  { %v3998_v30 = vadd.f32 %v2728_v23, %v913_v11  ;;  %v2996_v45 = vpop.f32.mrb[30].mxu0  ;;  %964 = vadd.xlane.f32.xlu0 %v4899_v10 }
 0x3a0   :  { %v916_v56 = vpop.f32.mrb[31].mxu0  ;;  %v4009_v18 = vadd.f32 %v2996_v45, %v2728_v23  ;;  %v4900_v53 = vmax.f32 %v4002_v57, 0.0 }
 0x3a1   :  { %v4896_v16 = vmax.f32 %v3998_v30, 0.0  ;;  %v4005_v17 = vadd.f32 %v2728_v23, %v916_v56  ;;  %966 = vadd.xlane.f32.xlu1 %v4897_v39  ;;  %v4963_v62 = vmax.f32 %v3998_v30, 0.0  ;;  %v4965_v30 = vmax.f32 %v4002_v57, 0.0  ;;  %v3181_v57 = vld [vmem:[#allocation10 + $0x48] sm:$0xff]  }
 0x3a2   :  { %v4902_v63 = vmax.f32 %v4009_v18, 0.0 }
 0x3a3   :  { %v4898_v44 = vmax.f32 %v4005_v17, 0.0  ;;  %968 = vadd.xlane.f32.xlu0 %v4896_v16  ;;  %v4964_v7 = vmax.f32 %v4005_v17, 0.0  ;;  %v4966_v17 = vmax.f32 %v4009_v18, 0.0  ;;  %v3182_v18 = vld [vmem:[#allocation10 + $0x50] sm:$0xff]  }
 0x3a5   :  { %970 = vadd.xlane.f32.xlu1 %v4898_v44 }
 0x3a7   :  { %972 = vadd.xlane.f32.xlu0 %v4900_v53 }
 0x3a9   :  { %974 = vadd.xlane.f32.xlu1 %v4902_v63 }
 0x417   :  { %v949_v23 = vpop.xlane.xlu1 %948 }
 0x418   :  { %v945_v2 = vpop.xlane.xlu0 %944  ;;  %v979_v54 = vmul.f32 0.0078125, %v949_v23 }
 0x419   :  { %v977_v11 = vmul.f32 0.0078125, %v945_v2 }
 0x41a   :  { %v4026_v39 = vsub.f32 %v930_v12, %v979_v54 }
 0x41b   :  { %v4022_v45 = vsub.f32 %v928_v55, %v977_v11  ;;  %v951_v56 = vpop.xlane.xlu1 %950 }
 0x41c   :  { %v947_v16 = vpop.xlane.xlu0 %946  ;;  %v980_v44 = vmul.f32 0.0078125, %v951_v56  ;;  %v1011_v2 = vmul.f32 %v4026_v39, %v4026_v39 }
 0x41d   :  { %v978_v10 = vmul.f32 0.0078125, %v947_v16  ;;  %v1009_v53 = vmul.f32 %v4022_v45, %v4022_v45 }
 0x41e   :  { %v4034_v23 = vsub.f32 %v931_v29, %v980_v44 }
 0x41f   :  { %v4030_v9 = vsub.f32 %v929_v6, %v978_v10  ;;  %1025 = vadd.xlane.f32.xlu0 %v1009_v53 }
 0x420   :  { %v953_v63 = vpop.xlane.xlu0 %952  ;;  %v1012_v29 = vmul.f32 %v4034_v23, %v4034_v23 }
 0x421   :  { %v981_v55 = vmul.f32 0.0078125, %v953_v63  ;;  %v1010_v50 = vmul.f32 %v4030_v9, %v4030_v9 }
 0x422   :  { %v955_v12 = vpop.xlane.xlu1 %954 }
 0x423   :  { %v4040_v16 = vsub.f32 %v932_v28, %v981_v55  ;;  %v982_v54 = vmul.f32 0.0078125, %v955_v12  ;;  %1029 = vadd.xlane.f32.xlu0 %v1011_v2  ;;  %1027 = vadd.xlane.f32.xlu1 %v1010_v50 }
 0x424   :  { %v957_v6 = vpop.xlane.xlu0 %956 }
 0x425   :  { %v4044_v10 = vsub.f32 %v933_v25, %v982_v54  ;;  %v983_v48 = vmul.f32 0.0078125, %v957_v6  ;;  %v1013_v44 = vmul.f32 %v4040_v16, %v4040_v16 }
 0x426   :  { %v959_v53 = vpop.xlane.xlu1 %958 }
 0x427   :  { %v4052_v28 = vsub.f32 %v934_v24, %v983_v48  ;;  %v984_v63 = vmul.f32 0.0078125, %v959_v53  ;;  %1031 = vadd.xlane.f32.xlu1 %v1012_v29  ;;  %1033 = vadd.xlane.f32.xlu0 %v1013_v44  ;;  %v1014_v56 = vmul.f32 %v4044_v10, %v4044_v10 }
 0x428   :  { %v961_v11 = vpop.xlane.xlu0 %960 }
 0x429   :  { %v4056_v21 = vsub.f32 %v935_v37, %v984_v63  ;;  %v985_v25 = vmul.f32 0.0078125, %v961_v11  ;;  %v1015_v55 = vmul.f32 %v4052_v28, %v4052_v28 }
 0x42a   :  { %v963_v2 = vpop.xlane.xlu1 %962 }
 0x42b   :  { %v4064_v59 = vsub.f32 %v936_v3, %v985_v25  ;;  %v986_v24 = vmul.f32 0.0078125, %v963_v2  ;;  %1035 = vadd.xlane.f32.xlu1 %v1014_v56  ;;  %1037 = vadd.xlane.f32.xlu0 %v1015_v55  ;;  %v1016_v54 = vmul.f32 %v4056_v21, %v4056_v21 }
 0x42c   :  { %v965_v50 = vpop.xlane.xlu0 %964 }
 0x42d   :  { %v4068_v37 = vsub.f32 %v4960_v22, %v986_v24  ;;  %v987_v12 = vmul.f32 0.0078125, %v965_v50  ;;  %v1017_v6 = vmul.f32 %v4064_v59, %v4064_v59 }
 0x42e   :  { %v967_v48 = vpop.xlane.xlu1 %966 }
 0x42f   :  { %v4076_v3 = vsub.f32 %v4961_v47, %v987_v12  ;;  %v988_v29 = vmul.f32 0.0078125, %v967_v48  ;;  %1039 = vadd.xlane.f32.xlu1 %v1016_v54  ;;  %1041 = vadd.xlane.f32.xlu0 %v1017_v6  ;;  %v1018_v11 = vmul.f32 %v4068_v37, %v4068_v37 }
 0x430   :  { %v969_v44 = vpop.xlane.xlu0 %968 }
 0x431   :  { %v4080_v53 = vsub.f32 %v4962_v13, %v988_v29  ;;  %v989_v63 = vmul.f32 0.0078125, %v969_v44  ;;  %v1019_v25 = vmul.f32 %v4076_v3, %v4076_v3  ;;  %v3180_v29 = vld [vmem:[#allocation10 + $0x40] sm:$0xff]  }
 0x432   :  { %v971_v56 = vpop.xlane.xlu1 %970  ;;  %2997 = vmatprep.subr.bf16.mxu1 %v3180_v29 }
 0x433   :  { %v4088_v55 = vsub.f32 %v4963_v62, %v989_v63  ;;  %v990_v2 = vmul.f32 0.0078125, %v971_v56  ;;  %1043 = vadd.xlane.f32.xlu1 %v1018_v11  ;;  %1045 = vadd.xlane.f32.xlu0 %v1019_v25  ;;  %v1020_v12 = vmul.f32 %v4080_v53, %v4080_v53  ;;  %v3183_v25 = vld [vmem:[#allocation10 + $0x58] sm:$0xff]   ;;  %v3184_v56 = vld [vmem:[#allocation10 + $0x60] sm:$0xff]   ;;  %v3185_v62 = vld [vmem:[#allocation10 + $0x68] sm:$0xff]  }
 0x434   :  { %v973_v24 = vpop.xlane.xlu0 %972  ;;  %2998 = vmatpush3.bf16.msra.mxu1 %v3180_v29 }
 0x435   :  { %v4092_v50 = vsub.f32 %v4964_v7, %v990_v2  ;;  %v991_v22 = vmul.f32 0.0078125, %v973_v24  ;;  %v1021_v54 = vmul.f32 %v4088_v55, %v4088_v55  ;;  %2999 = vmatprep.subr.bf16.mxu1 %v3181_v57  ;;  %v3186_v2 = vld [vmem:[#allocation10 + $0x70] sm:$0xff]   ;;  %v3187_v24 = vld [vmem:[#allocation10 + $0x78] sm:$0xff]  }
 0x436   :  { %v975_v6 = vpop.xlane.xlu1 %974 }
 0x437   :  { %v4100_v48 = vsub.f32 %v4965_v30, %v991_v22  ;;  %v992_v47 = vmul.f32 0.0078125, %v975_v6  ;;  %1047 = vadd.xlane.f32.xlu1 %v1020_v12  ;;  %1049 = vadd.xlane.f32.xlu0 %v1021_v54  ;;  %v1022_v13 = vmul.f32 %v4092_v50, %v4092_v50  ;;  %v1155_v30 = vstv %s2737_s23 }
 0x438   :  { %3000 = vmatpush3.bf16.msra.mxu1 %v3181_v57  ;;  %v4121_v57 = vmul.f32 %v3766_v43, %v3749_v33 }
 0x439   :  { %v4104_v44 = vsub.f32 %v4966_v17, %v992_v47  ;;  %v1023_v63 = vmul.f32 %v4100_v48, %v4100_v48  ;;  %3001 = vmatprep.subr.bf16.mxu1 %v3182_v18 }
 0x43a   :  { %4967 = vst [vmem:[#allocation40_spill] sm:$0xff] %v4121_v57 }
 0x43b   :  { %1051 = vadd.xlane.f32.xlu1 %v1022_v13  ;;  %1053 = vadd.xlane.f32.xlu0 %v1023_v63  ;;  %v1024_v11 = vmul.f32 %v4104_v44, %v4104_v44  ;;  %v4117_v63 = vmul.f32 %v1155_v30, %v3749_v33  ;;  %v4142_v33 = vmul.f32 %v1155_v30, %v3758_v38 }
 0x43c   :  { %3002 = vmatpush3.bf16.msra.mxu1 %v3182_v18 }
 0x43d   :  { %3003 = vmatprep.subr.bf16.mxu1 %v3183_v25 }
 0x43f   :  { %1055 = vadd.xlane.f32.xlu1 %v1024_v11 }
 0x440   :  { %3004 = vmatpush3.bf16.msra.mxu1 %v3183_v25  ;;  %v4124_v25 = vmul.f32 %v1155_v30, %v3751_v34 }
 0x441   :  { %3005 = vmatprep.subr.bf16.mxu1 %v3184_v56 }
 0x444   :  { %3006 = vmatpush3.bf16.msra.mxu1 %v3184_v56 }
 0x445   :  { %3007 = vmatprep.subr.bf16.mxu1 %v3185_v62 }
 0x448   :  { %3008 = vmatpush3.bf16.msra.mxu1 %v3185_v62 }
 0x449   :  { %3009 = vmatprep.subr.bf16.mxu1 %v3186_v2 }
 0x44c   :  { %3010 = vmatpush3.bf16.msra.mxu1 %v3186_v2  ;;  %v4128_v2 = vmul.f32 %v3766_v43, %v3751_v34 }
 0x44d   :  { %3011 = vmatprep.subr.bf16.mxu1 %v3187_v24 }
 0x44e   :  { %4968 = vst [vmem:[#allocation41_spill] sm:$0xff] %v4128_v2 }
 0x450   :  { %3012 = vmatpush3.bf16.msra.mxu1 %v3187_v24  ;;  %v4131_v24 = vmul.f32 %v1155_v30, %v3754_v36 }
 0x4ac   :  { %v1026_v7 = vpop.xlane.xlu0 %1025 }
 0x4ad   :  { %v1057_v22 = vmul.f32 0.0078125, %v1026_v7  ;;  %v4135_v7 = vmul.f32 %v3766_v43, %v3754_v36  ;;  %v4151_v36 = vmul.f32 %v1155_v30, %v3772_v51  ;;  %v4166_v51 = vmul.f32 %v1155_v30, %v3825_v27 }
 0x4ae   :  { %v4184_v27 = vmul.f32 %v1155_v30, %v3868_v15  ;;  %v4197_v15 = vstv %s4137_s29 }
 0x4af   :  { %v1073_v12 = vadd.f32 1e-05, %v1057_v22  ;;  %4969 = vst [vmem:[#allocation42_spill] sm:$0xff] %v4135_v7  ;;  %v4146_v22 = vmul.f32 %v3766_v43, %v3758_v38 }
 0x4b0   :  { %v1028_v54 = vpop.xlane.xlu1 %1027  ;;  %v1030_v6 = vpop.xlane.xlu0 %1029 }
 0x4b1   :  { %3212 = vrsqrt.f32 %v1073_v12  ;;  %v1058_v47 = vmul.f32 0.0078125, %v1028_v54  ;;  %v1059_v29 = vmul.f32 0.0078125, %v1030_v6  ;;  %v4154_v54 = vmul.f32 %v1155_v30, %v3779_v58 }
 0x4b2   :  { %v4157_v6 = vmul.f32 %v1155_v30, %v3786_v61  ;;  %v4169_v58 = vmul.f32 %v1155_v30, %v3834_v32  ;;  %v4172_v61 = vmul.f32 %v1155_v30, %v3842_v41  ;;  %v4187_v32 = vmul.f32 %v1155_v30, %v3872_v20 }
 0x4b3   :  { %v1074_v17 = vadd.f32 1e-05, %v1058_v47  ;;  %v1075_v13 = vadd.f32 1e-05, %v1059_v29  ;;  %v4160_v47 = vmul.f32 %v1155_v30, %v3794_v1  ;;  %v4163_v29 = vmul.f32 %v1155_v30, %v3816_v19 }
 0x4b4   :  { %v1032_v11 = vpop.xlane.xlu1 %1031  ;;  %v1034_v18 = vpop.xlane.xlu0 %1033 }
 0x4b5   :  { %3214 = vrsqrt.f32 %v1074_v17  ;;  %v1060_v56 = vmul.f32 0.0078125, %v1032_v11  ;;  %v1061_v62 = vmul.f32 0.0078125, %v1034_v18  ;;  %v4175_v11 = vstv %s4112_s24 }
 0x4b6   :  { %3216 = vrsqrt.f32 %v1075_v13  ;;  %v4178_v18 = vstv %s4114_s0 }
 0x4b7   :  { %v1076_v34 = vadd.f32 1e-05, %v1060_v56  ;;  %v1077_v12 = vadd.f32 1e-05, %v1061_v62  ;;  %v4181_v62 = vmul.f32 %v1155_v30, %v3866_v14 }
 0x4b8   :  { %v1036_v38 = vpop.xlane.xlu1 %1035  ;;  %v1038_v43 = vpop.xlane.xlu0 %1037 }
 0x4b9   :  { %3218 = vrsqrt.f32 %v1076_v34  ;;  %v1062_v17 = vmul.f32 0.0078125, %v1036_v38  ;;  %v1063_v13 = vmul.f32 0.0078125, %v1038_v43  ;;  %v4191_v38 = vmul.f32 %v1155_v30, %v3896_v49 }
 0x4ba   :  { %3220 = vrsqrt.f32 %v1077_v12 }
 0x4bb   :  { %v3213_v1 = vpop.eup %3212  ;;  %v1078_v19 = vadd.f32 1e-05, %v1062_v17  ;;  %v1079_v56 = vadd.f32 1e-05, %v1063_v13 }
 0x4bc   :  { %v1105_v41 = vmul.f32 %v3213_v1, %v4022_v45  ;;  %v1040_v34 = vpop.xlane.xlu1 %1039  ;;  %v1042_v12 = vpop.xlane.xlu0 %1041  ;;  %v4203_v1 = vstv %s4139_s8 }
 0x4bd   :  { %3222 = vrsqrt.f32 %v1078_v19  ;;  %v1064_v43 = vmul.f32 0.0078125, %v1040_v34  ;;  %v1065_v17 = vmul.f32 0.0078125, %v1042_v12 }
 0x4be   :  { %3224 = vrsqrt.f32 %v1079_v56  ;;  %v4194_v14 = vmul.f32 %v4175_v11, %v1105_v41  ;;  %v4200_v20 = vmul.f32 %v4178_v18, %v1105_v41 }
 0x4bf   :  { %v3215_v13 = vpop.eup %3214  ;;  %v1080_v46 = vadd.f32 1e-05, %v1064_v43  ;;  %v1081_v45 = vadd.f32 1e-05, %v1065_v17 }
 0x4c0   :  { %4970 = vst [vmem:[#allocation43_spill] sm:$0xff] %v4200_v20  ;;  %v3217_v49 = vpop.eup %3216  ;;  %v4209_v30 = vmul.f32 %v3215_v13, %v4030_v9  ;;  %v1044_v19 = vpop.xlane.xlu1 %1043  ;;  %v1206_v34 = vadd.f32 %v4194_v14, %v4124_v25  ;;  %v4217_v12 = vadd.f32 %v4200_v20, %v4128_v2 }
 0x4c1   :  { %v1046_v56 = vpop.xlane.xlu0 %1045  ;;  %v1107_v43 = vmul.f32 %v3217_v49, %v4026_v39  ;;  %3226 = vrsqrt.f32 %v1080_v46  ;;  %v1066_v17 = vmul.f32 0.0078125, %v1044_v19 }
 0x4c2   :  { %4971 = vst [vmem:[#allocation44_spill] sm:$0xff] %v4217_v12  ;;  %v1067_v8 = vmul.f32 0.0078125, %v1046_v56  ;;  %3228 = vrsqrt.f32 %v1081_v45  ;;  %v4222_v9 = vmul.f32 %v4175_v11, %v4209_v30  ;;  %v4224_v13 = vmul.f32 0.5, %v1206_v34 }
 0x4c3   :  { %v1255_v35 = vmax.f32 %v1206_v34, 0.0  ;;  %v3219_v42 = vpop.eup %3218  ;;  %v1192_v41 = vmul.f32 %v4175_v11, %v1107_v43  ;;  %v4228_v31 = vmul.f32 %v4178_v18, %v1107_v43  ;;  %v1082_v12 = vadd.f32 1e-05, %v1066_v17 }
 0x4c4   :  { %v1083_v52 = vadd.f32 1e-05, %v1067_v8  ;;  %v3221_v39 = vpop.eup %3220  ;;  %v1108_v46 = vmul.f32 %v3219_v42, %v4034_v23  ;;  %v1048_v49 = vpop.xlane.xlu1 %1047  ;;  %v1207_v19 = vadd.f32 %v4222_v9, %v4142_v33  ;;  %v1223_v56 = vmax.f32 %v4142_v33, %v4222_v9 }
 0x4c5   :  { %4972 = vst [vmem:[#allocation45_spill] sm:$0xff] %v4228_v31  ;;  %v1050_v45 = vpop.xlane.xlu0 %1049  ;;  %v4236_v34 = vmul.f32 %v4197_v15, %v1255_v35  ;;  %v1208_v40 = vadd.f32 %v1192_v41, %v4117_v63  ;;  %v1224_v43 = vmax.f32 %v4117_v63, %v1192_v41  ;;  %v4242_v8 = vadd.f32 %v4228_v31, %v4121_v57 }
 0x4c6   :  { %v1193_v23 = vmul.f32 %v4175_v11, %v1108_v46  ;;  %v4248_v17 = vmul.f32 %v4178_v18, %v1108_v46  ;;  %v4251_v33 = vmul.f32 %v3221_v39, %v4040_v16  ;;  %3230 = vrsqrt.f32 %v1082_v12 }
 0x4c7   :  { %4973 = vst [vmem:[#allocation46_spill] sm:$0xff] %v4242_v8  ;;  %v3223_v35 = vpop.eup %3222  ;;  %v1240_v9 = vmul.f32 0.5, %v1208_v40  ;;  %v1257_v4 = vmax.f32 %v1208_v40, 0.0  ;;  %v1341_v63 = vmax.f32 %v1224_v43, 0.0  ;;  %3232 = vrsqrt.f32 %v1083_v52 }
 0x4c8   :  { %4974 = vst [vmem:[#allocation47_spill] sm:$0xff] %v4248_v17  ;;  %v3225_v41 = vpop.eup %3224  ;;  %v1209_v8 = vadd.f32 %v1193_v23, %v4131_v24  ;;  %v1225_v60 = vmax.f32 %v4131_v24, %v1193_v23  ;;  %v4257_v42 = vadd.f32 %v4248_v17, %v4135_v7  ;;  %v1052_v16 = vpop.xlane.xlu1 %1051  ;;  %v4262_v31 = vmul.f32 %v3223_v35, %v4044_v10 }
 0x4c9   :  { %v1054_v39 = vpop.xlane.xlu0 %1053  ;;  %v1291_v12 = vmax.f32 %v1240_v9, 0.0  ;;  %v4265_v40 = vmul.f32 %v3225_v41, %v4052_v28  ;;  %v1068_v52 = vmul.f32 0.0078125, %v1048_v49  ;;  %v1069_v23 = vmul.f32 0.0078125, %v1050_v45 }
 0x4ca   :  { %4975 = vst [vmem:[#allocation48_spill] sm:$0xff] %v4257_v42  ;;  %v1241_v43 = vmul.f32 0.5, %v1209_v8  ;;  %v1258_v57 = vmax.f32 %v1209_v8, 0.0  ;;  %v1342_v24 = vmax.f32 %v1225_v60, 0.0  ;;  %v1070_v42 = vmul.f32 0.0078125, %v1052_v16 }
 0x4cb   :  { %v3227_v5 = vpop.eup %3226  ;;  %v1084_v0 = vadd.f32 1e-05, %v1068_v52  ;;  %v1071_v2 = vmul.f32 0.0078125, %v1054_v39  ;;  %v1239_v20 = vmul.f32 0.5, %v1207_v19  ;;  %v1085_v10 = vadd.f32 1e-05, %v1069_v23 }
 0x4cc   :  { %v3229_v46 = vpop.eup %3228  ;;  %v1292_v17 = vmax.f32 %v1241_v43, 0.0  ;;  %v4268_v9 = vmul.f32 %v3227_v5, %v4056_v21  ;;  %v1056_v35 = vpop.xlane.xlu1 %1055  ;;  %v1256_v7 = vmax.f32 %v1207_v19, 0.0  ;;  %v1086_v49 = vadd.f32 1e-05, %v1070_v42 }
 0x4cd   :  { %v4271_v28 = vmul.f32 %v3229_v46, %v4064_v59  ;;  %3234 = vrsqrt.f32 %v1084_v0  ;;  %v1087_v60 = vadd.f32 1e-05, %v1071_v2  ;;  %v1072_v45 = vmul.f32 0.0078125, %v1056_v35 }
 0x4ce   :  { %3236 = vrsqrt.f32 %v1085_v10  ;;  %v1273_v8 = vmul.f32 %v4197_v15, %v1256_v7  ;;  %v1289_v41 = vmax.f32 %v4224_v13, 0.0  ;;  %v1290_v16 = vmax.f32 %v1239_v20, 0.0 }
 0x4cf   :  { %3238 = vrsqrt.f32 %v1086_v49  ;;  %v4976_v5 = vmax.f32 %v4124_v25, %v4194_v14  ;;  %v1340_v39 = vmax.f32 %v1223_v56, 0.0  ;;  %v1088_v59 = vadd.f32 1e-05, %v1072_v45 }
 0x4d0   :  { %v3231_v19 = vpop.eup %3230  ;;  %3240 = vrsqrt.f32 %v1087_v60  ;;  %v1306_v0 = vmul.f32 %v4203_v1, %v1289_v41  ;;  %v1274_v2 = vmul.f32 %v4197_v15, %v1257_v4  ;;  %v1307_v7 = vmul.f32 %v4203_v1, %v1290_v16 }
 0x4d1   :  { %v1339_v21 = vmax.f32 %v4976_v5, 0.0  ;;  %v3233_v42 = vpop.eup %3232  ;;  %v4281_v46 = vmul.f32 %v3231_v19, %v4068_v37  ;;  %v1357_v13 = vmul.f32 %v4206_v26, %v1340_v39  ;;  %3242 = vrsqrt.f32 %v1088_v59 }
 0x4d2   :  { %v4287_v25 = vmul.f32 %v3233_v42, %v4076_v3  ;;  %v1322_v14 = vadd.f32 %v1306_v0, %v4236_v34  ;;  %v1275_v56 = vmul.f32 %v4197_v15, %v1258_v57  ;;  %v1323_v52 = vadd.f32 %v1307_v7, %v1273_v8 }
 0x4d3   :  { %v1356_v20 = vmul.f32 %v4206_v26, %v1339_v21  ;;  %v1308_v4 = vmul.f32 %v4203_v1, %v1291_v12  ;;  %v1309_v37 = vmul.f32 %v4203_v1, %v1292_v17  ;;  %v1358_v43 = vmul.f32 %v4206_v26, %v1341_v63 }
 0x4d4   :  { %v1359_v10 = vmul.f32 %v4206_v26, %v1342_v24  ;;  %v1194_v35 = vmul.f32 %v4175_v11, %v4251_v33  ;;  %v1195_v3 = vmul.f32 %v4175_v11, %v4262_v31  ;;  %v1373_v49 = vadd.f32 %v1357_v13, %v1323_v52 }
 0x4d5   :  { %v1372_v23 = vadd.f32 %v1356_v20, %v1322_v14  ;;  %v1324_v34 = vadd.f32 %v1308_v4, %v1274_v2  ;;  %v1325_v60 = vadd.f32 %v1309_v37, %v1275_v56  ;;  %v1196_v57 = vmul.f32 %v4175_v11, %v4265_v40 }
 0x4d6   :  { %v1210_v12 = vadd.f32 %v1194_v35, %v4154_v54  ;;  %v1211_v17 = vadd.f32 %v1195_v3, %v4160_v47  ;;  %v1226_v63 = vmax.f32 %v4154_v54, %v1194_v35  ;;  %v1227_v24 = vmax.f32 %v4160_v47, %v1195_v3 }
 0x4d7   :  { %v3235_v45 = vpop.eup %3234  ;;  %v1388_v8 = vpack.c.bf16 %v1373_v49, %v1372_v23  ;;  %v1374_v41 = vadd.f32 %v1358_v43, %v1324_v34  ;;  %v1375_v16 = vadd.f32 %v1359_v10, %v1325_v60  ;;  %v1197_v5 = vmul.f32 %v4175_v11, %v4268_v9 }
 0x4d8   :  { %v3237_v21 = vpop.eup %3236  ;;  %v4308_v39 = vmul.f32 %v3235_v45, %v4080_v53  ;;  %v1242_v19 = vmul.f32 0.5, %v1210_v12  ;;  %v1243_v59 = vmul.f32 0.5, %v1211_v17  ;;  %v1259_v0 = vmax.f32 %v1210_v12, 0.0 }
 0x4d9   :  { %v3239_v2 = vpop.eup %3238  ;;  %v4311_v42 = vmul.f32 %v3237_v21, %v4088_v55  ;;  %3013 = vmatprep.mubr.bf16.mxu1 %v1388_v8  ;;  %v1389_v54 = vpack.c.bf16 %v1375_v16, %v1374_v41  ;;  %v1260_v47 = vmax.f32 %v1211_v17, 0.0  ;;  %v1343_v7 = vmax.f32 %v1226_v63, 0.0 }
 0x4da   :  { %v3241_v20 = vpop.eup %3240  ;;  %v4314_v13 = vmul.f32 %v3239_v2, %v4092_v50  ;;  %v1276_v14 = vmul.f32 %v4197_v15, %v1259_v0  ;;  %v1293_v56 = vmax.f32 %v1242_v19, 0.0  ;;  %v1294_v53 = vmax.f32 %v1243_v59, 0.0 }
 0x4db   :  { %v4318_v52 = vmul.f32 %v3241_v20, %v4100_v48  ;;  %3014 = vmatmul.mubr.bf16.vlgmr.msra.gmra.mrb[16].mxu1 %v1389_v54  ;;  %v1277_v4 = vmul.f32 %v4197_v15, %v1260_v47  ;;  %v1344_v55 = vmax.f32 %v1227_v24, 0.0  ;;  %v1360_v37 = vmul.f32 %v4206_v26, %v1343_v7  ;;  %v3243_v43 = vpop.eup %3242 }
 0x4dc   :  { %v1310_v23 = vmul.f32 %v4203_v1, %v1293_v56  ;;  %v1311_v10 = vmul.f32 %v4203_v1, %v1294_v53  ;;  %v1212_v50 = vadd.f32 %v1196_v57, %v4151_v36  ;;  %v1213_v35 = vadd.f32 %v1197_v5, %v4157_v6 }
 0x4dd   :  { %v4327_v3 = vmul.f32 %v3243_v43, %v4104_v44  ;;  %v1361_v48 = vmul.f32 %v4206_v26, %v1344_v55  ;;  %v1228_v49 = vmax.f32 %v4151_v36, %v1196_v57  ;;  %v1229_v34 = vmax.f32 %v4157_v6, %v1197_v5 }
 0x4de   :  { %v1326_v60 = vadd.f32 %v1310_v23, %v1276_v14  ;;  %v1327_v12 = vadd.f32 %v1311_v10, %v1277_v4  ;;  %v1244_v17 = vmul.f32 0.5, %v1212_v50  ;;  %v1245_v63 = vmul.f32 0.5, %v1213_v35 }
 0x4df   :  { %v1261_v24 = vmax.f32 %v1212_v50, 0.0  ;;  %v1262_v45 = vmax.f32 %v1213_v35, 0.0  ;;  %v1345_v8 = vmax.f32 %v1228_v49, 0.0  ;;  %v1346_v41 = vmax.f32 %v1229_v34, 0.0 }
 0x4e0   :  { %v1376_v16 = vadd.f32 %v1360_v37, %v1326_v60  ;;  %v1377_v21 = vadd.f32 %v1361_v48, %v1327_v12  ;;  %v1295_v19 = vmax.f32 %v1244_v17, 0.0  ;;  %v1296_v59 = vmax.f32 %v1245_v63, 0.0 }
 0x4e1   :  { %v1278_v44 = vmul.f32 %v4197_v15, %v1261_v24  ;;  %v1279_v0 = vmul.f32 %v4197_v15, %v1262_v45  ;;  %v1362_v36 = vmul.f32 %v4206_v26, %v1345_v8  ;;  %v1363_v6 = vmul.f32 %v4206_v26, %v1346_v41 }
 0x4e2   :  { %v1390_v57 = vpack.c.bf16 %v1377_v21, %v1376_v16  ;;  %v1312_v5 = vmul.f32 %v4203_v1, %v1295_v19  ;;  %v1313_v2 = vmul.f32 %v4203_v1, %v1296_v59  ;;  %v1198_v54 = vmul.f32 %v4175_v11, %v4271_v28 }
 0x4e3   :  { %v1199_v47 = vmul.f32 %v4175_v11, %v4281_v46  ;;  %v1200_v7 = vmul.f32 %v4175_v11, %v4287_v25  ;;  %v1201_v20 = vmul.f32 %v4175_v11, %v4308_v39  ;;  %v1202_v14 = vmul.f32 %v4175_v11, %v4311_v42 }
 0x4e4   :  { %3017 = vmatprep.mubr.bf16.mxu1 %v1390_v57  ;;  %v1328_v56 = vadd.f32 %v1312_v5, %v1278_v44  ;;  %v1329_v53 = vadd.f32 %v1313_v2, %v1279_v0  ;;  %v1214_v4 = vadd.f32 %v1198_v54, %v4166_v51  ;;  %v1230_v55 = vmax.f32 %v4166_v51, %v1198_v54 }
 0x4e5   :  { %v1215_v37 = vadd.f32 %v1199_v47, %v4172_v61  ;;  %v1231_v43 = vmax.f32 %v4172_v61, %v1199_v47  ;;  %v1216_v23 = vadd.f32 %v1200_v7, %v4163_v29  ;;  %v1217_v10 = vadd.f32 %v1201_v20, %v4169_v58 }
 0x4e6   :  { %v1378_v50 = vadd.f32 %v1362_v36, %v1328_v56  ;;  %v1379_v35 = vadd.f32 %v1363_v6, %v1329_v53  ;;  %v1246_v48 = vmul.f32 0.5, %v1214_v4  ;;  %v1263_v49 = vmax.f32 %v1214_v4, 0.0 }
 0x4e7   :  { %v1247_v34 = vmul.f32 0.5, %v1215_v37  ;;  %v1264_v60 = vmax.f32 %v1215_v37, 0.0  ;;  %v1347_v12 = vmax.f32 %v1230_v55, 0.0  ;;  %v1348_v17 = vmax.f32 %v1231_v43, 0.0 }
 0x4e8   :  { %v1391_v63 = vpack.c.bf16 %v1379_v35, %v1378_v50  ;;  %v1280_v24 = vmul.f32 %v4197_v15, %v1263_v49  ;;  %v1297_v51 = vmax.f32 %v1246_v48, 0.0  ;;  %v1232_v45 = vmax.f32 %v4163_v29, %v1200_v7 }
 0x4e9   :  { %v1281_v61 = vmul.f32 %v4197_v15, %v1264_v60  ;;  %v1298_v8 = vmax.f32 %v1247_v34, 0.0  ;;  %v1364_v41 = vmul.f32 %v4206_v26, %v1347_v12  ;;  %v1365_v16 = vmul.f32 %v4206_v26, %v1348_v17 }
 0x4ea   :  { %3018 = vmatmul.mubr.bf16.gmra.mrb[20].mxu1 %v1391_v63  ;;  %v1314_v21 = vmul.f32 %v4203_v1, %v1297_v51  ;;  %v1233_v19 = vmax.f32 %v4169_v58, %v1201_v20  ;;  %v1248_v59 = vmul.f32 0.5, %v1216_v23  ;;  %v1249_v44 = vmul.f32 0.5, %v1217_v10 }
 0x4eb   :  { %v1315_v0 = vmul.f32 %v4203_v1, %v1298_v8  ;;  %v1265_v36 = vmax.f32 %v1216_v23, 0.0  ;;  %v1266_v6 = vmax.f32 %v1217_v10, 0.0  ;;  %v1349_v57 = vmax.f32 %v1232_v45, 0.0 }
 0x4ec   :  { %v1330_v29 = vadd.f32 %v1314_v21, %v1280_v24  ;;  %v1299_v5 = vmax.f32 %v1248_v59, 0.0  ;;  %v1300_v2 = vmax.f32 %v1249_v44, 0.0  ;;  %v1350_v54 = vmax.f32 %v1233_v19, 0.0 }
 0x4ed   :  { %v1331_v47 = vadd.f32 %v1315_v0, %v1281_v61  ;;  %v1282_v7 = vmul.f32 %v4197_v15, %v1265_v36  ;;  %v1283_v56 = vmul.f32 %v4197_v15, %v1266_v6  ;;  %v1366_v53 = vmul.f32 %v4206_v26, %v1349_v57 }
 0x4ee   :  { %v1380_v4 = vadd.f32 %v1364_v41, %v1330_v29  ;;  %v1316_v58 = vmul.f32 %v4203_v1, %v1299_v5  ;;  %v1317_v20 = vmul.f32 %v4203_v1, %v1300_v2  ;;  %v1367_v55 = vmul.f32 %v4206_v26, %v1350_v54 }
 0x4ef   :  { %v1381_v37 = vadd.f32 %v1365_v16, %v1331_v47  ;;  %v1203_v43 = vmul.f32 %v4175_v11, %v4314_v13  ;;  %v1218_v23 = vadd.f32 %v1202_v14, %v4184_v27  ;;  %v1234_v10 = vmax.f32 %v4184_v27, %v1202_v14 }
 0x4f0   :  { %v1332_v50 = vadd.f32 %v1316_v58, %v1282_v7  ;;  %v1333_v35 = vadd.f32 %v1317_v20, %v1283_v56  ;;  %v1204_v48 = vmul.f32 %v4175_v11, %v4318_v52  ;;  %v1205_v49 = vmul.f32 %v4175_v11, %v4327_v3 }
 0x4f1   :  { %v1392_v34 = vpack.c.bf16 %v1381_v37, %v1380_v4  ;;  %v1219_v60 = vadd.f32 %v1203_v43, %v4191_v38  ;;  %v1235_v12 = vmax.f32 %v4191_v38, %v1203_v43  ;;  %v1250_v17 = vmul.f32 0.5, %v1218_v23 }
 0x4f2   :  { %v1382_v63 = vadd.f32 %v1366_v53, %v1332_v50  ;;  %v1383_v24 = vadd.f32 %v1367_v55, %v1333_v35  ;;  %v1267_v51 = vmax.f32 %v1218_v23, 0.0  ;;  %v1351_v45 = vmax.f32 %v1234_v10, 0.0  ;;  %v4977_v50 = vld [vmem:[#allocation43_spill] sm:$0xff]  ;;  %v4978_v35 = vld [vmem:[#allocation41_spill] sm:$0xff] }
 0x4f3   :  { %3021 = vmatprep.mubr.bf16.mxu1 %v1392_v34  ;;  %v1251_v27 = vmul.f32 0.5, %v1219_v60  ;;  %v1268_v14 = vmax.f32 %v1219_v60, 0.0  ;;  %v1301_v61 = vmax.f32 %v1250_v17, 0.0  ;;  %v1352_v8 = vmax.f32 %v1235_v12, 0.0 }
 0x4f4   :  { %v1393_v41 = vpack.c.bf16 %v1383_v24, %v1382_v63  ;;  %v1284_v16 = vmul.f32 %v4197_v15, %v1267_v51  ;;  %v1368_v11 = vmul.f32 %v4206_v26, %v1351_v45  ;;  %v1220_v21 = vadd.f32 %v1204_v48, %v4181_v62  ;;  %v4979_v51 = vld [vmem:[#allocation29_spill] sm:$0xff] }
 0x4f5   :  { %v1285_v19 = vmul.f32 %v4197_v15, %v1268_v14  ;;  %v1302_v38 = vmax.f32 %v1251_v27, 0.0  ;;  %v1318_v59 = vmul.f32 %v4203_v1, %v1301_v61  ;;  %v1369_v44 = vmul.f32 %v4206_v26, %v1352_v8  ;;  %v4981_v14 = vld [vmem:[#allocation28_spill] sm:$0xff]  ;;  %v4982_v61 = vld [vmem:[#allocation30_spill] sm:$0xff] }
 0x4f6   :  { %3022 = vmatmul.mubr.bf16.gmra.mrb[24].mxu1 %v1393_v41  ;;  %v1221_v0 = vadd.f32 %v1205_v49, %v4187_v32  ;;  %v1236_v36 = vmax.f32 %v4181_v62, %v1204_v48  ;;  %v1237_v6 = vmax.f32 %v4187_v32, %v1205_v49  ;;  %v1252_v57 = vmul.f32 0.5, %v1220_v21 }
 0x4f7   :  { %v1319_v29 = vmul.f32 %v4203_v1, %v1302_v38  ;;  %v1334_v5 = vadd.f32 %v1318_v59, %v1284_v16  ;;  %v1269_v2 = vmax.f32 %v1220_v21, 0.0  ;;  %v4390_v54 = vmul.f32 %v4178_v18, %v4209_v30 }
 0x4f8   :  { %v1253_v47 = vmul.f32 0.5, %v1221_v0  ;;  %v1270_v7 = vmax.f32 %v1221_v0, 0.0  ;;  %v1303_v56 = vmax.f32 %v1252_v57, 0.0  ;;  %v1353_v53 = vmax.f32 %v1236_v36, 0.0  ;;  %v4986_v36 = vld [vmem:[#allocation33_spill] sm:$0xff]  ;;  %v4989_v57 = vld [vmem:[#allocation32_spill] sm:$0xff] }
 0x4f9   :  { %v1335_v4 = vadd.f32 %v1319_v29, %v1285_v19  ;;  %v1384_v58 = vadd.f32 %v1368_v11, %v1334_v5  ;;  %v1286_v20 = vmul.f32 %v4197_v15, %v1269_v2  ;;  %v1354_v62 = vmax.f32 %v1237_v6, 0.0  ;;  %v4988_v6 = vld [vmem:[#allocation35_spill] sm:$0xff]  ;;  %v4991_v5 = vld [vmem:[#allocation34_spill] sm:$0xff] }
 0x4fa   :  { %v1287_v32 = vmul.f32 %v4197_v15, %v1270_v7  ;;  %v1304_v55 = vmax.f32 %v1253_v47, 0.0  ;;  %v1320_v37 = vmul.f32 %v4203_v1, %v1303_v56  ;;  %v1370_v43 = vmul.f32 %v4206_v26, %v1353_v53  ;;  %v4993_v7 = vld [vmem:[#allocation37_spill] sm:$0xff]  ;;  %v4995_v53 = vld [vmem:[#allocation39_spill] sm:$0xff] }
 0x4fb   :  { %v1385_v23 = vadd.f32 %v1369_v44, %v1335_v4  ;;  %v1371_v30 = vmul.f32 %v4206_v26, %v1354_v62  ;;  %v4399_v10 = vadd.f32 %v4390_v54, %v4146_v22  ;;  %v4408_v60 = vmul.f32 %v4178_v18, %v4251_v33 }
 0x4fc   :  { %v1321_v49 = vmul.f32 %v4203_v1, %v1304_v55  ;;  %v1336_v34 = vadd.f32 %v1320_v37, %v1286_v20  ;;  %v4412_v26 = vmul.f32 %v4178_v18, %v4262_v31  ;;  %v4416_v17 = vmul.f32 %v4178_v18, %v4265_v40  ;;  %v4980_v31 = vld [vmem:[#allocation31_spill] sm:$0xff]  ;;  %v4999_v55 = vld [vmem:[#allocation36_spill] sm:$0xff] }
 0x4fd   :  { %v1394_v12 = vpack.c.bf16 %v1385_v23, %v1384_v58  ;;  %v4420_v1 = vmul.f32 %v4178_v18, %v4268_v9  ;;  %v4424_v45 = vadd.f32 %v4408_v60, %v4979_v51  ;;  %v4448_v21 = vmul.f32 %v4178_v18, %v4271_v28 }
 0x4fe   :  { %v1337_v63 = vadd.f32 %v1321_v49, %v1287_v32  ;;  %v1386_v24 = vadd.f32 %v1370_v43, %v1336_v34  ;;  %v4430_v27 = vadd.f32 %v4412_v26, %v4980_v31  ;;  %v4436_v9 = vadd.f32 %v4416_v17, %v4981_v14  ;;  %v5001_v43 = vld [vmem:[#allocation38_spill] sm:$0xff] }
 0x4ff   :  { %3025 = vmatprep.mubr.bf16.mxu1 %v1394_v12  ;;  %v4440_v8 = vadd.f32 %v4420_v1, %v4982_v61  ;;  %v4452_v19 = vmul.f32 %v4178_v18, %v4281_v46  ;;  %v4456_v38 = vmul.f32 %v4178_v18, %v4287_v25  ;;  %v4460_v59 = vmul.f32 %v4178_v18, %v4308_v39 }
 0x500   :  { %v1387_v41 = vadd.f32 %v1371_v30, %v1337_v63  ;;  %v4464_v44 = vmul.f32 %v4178_v18, %v4311_v42  ;;  %v4468_v28 = vadd.f32 %v4448_v21, %v4986_v36  ;;  %v4474_v25 = vmul.f32 %v4178_v18, %v4314_v13 }
 0x501   :  { %4983 = vst [vmem:[#allocation43_spill] sm:$0xff] %v4456_v38  ;;  %4984 = vst [vmem:[#allocation41_spill] sm:$0xff] %v4460_v59  ;;  %v4478_v39 = vadd.f32 %v4452_v19, %v4988_v6  ;;  %v4484_v29 = vadd.f32 %v4456_v38, %v4989_v57  ;;  %v4488_v2 = vadd.f32 %v4460_v59, %v4991_v5  ;;  %v5015_v59 = vld [vmem:[#allocation45_spill] sm:$0xff] }
 0x502   :  { %4985 = vst [vmem:[#allocation29_spill] sm:$0xff] %v4464_v44  ;;  %v1395_v0 = vpack.c.bf16 %v1387_v41, %v1386_v24  ;;  %4987 = vst [vmem:[#allocation31_spill] sm:$0xff] %v4474_v25  ;;  %v4496_v56 = vadd.f32 %v4464_v44, %v4993_v7  ;;  %v4500_v4 = vadd.f32 %v4474_v25, %v4995_v53  ;;  %v4657_v44 = vstv %s4617_s28 }
 0x503   :  { %4990 = vst [vmem:[#allocation28_spill] sm:$0xff] %v4484_v29  ;;  %4992 = vst [vmem:[#allocation30_spill] sm:$0xff] %v4488_v2  ;;  %v4508_v62 = vmul.f32 %v4178_v18, %v4318_v52  ;;  %v4512_v32 = vmul.f32 %v4178_v18, %v4327_v3  ;;  %v5010_v7 = vmax.f32 %v4978_v35, %v4977_v50 }
 0x504   :  { %3026 = vmatmul.mubr.bf16.gmra.mrb[28].mxu1 %v1395_v0  ;;  %4994 = vst [vmem:[#allocation33_spill] sm:$0xff] %v4496_v56  ;;  %4996 = vst [vmem:[#allocation35_spill] sm:$0xff] %v4500_v4 }
 0x505   :  { %4997 = vst [vmem:[#allocation49_spill] sm:$0xff] %v4508_v62  ;;  %4998 = vst [vmem:[#allocation50_spill] sm:$0xff] %v4512_v32  ;;  %v4516_v37 = vadd.f32 %v4508_v62, %v4999_v55  ;;  %v4520_v23 = vadd.f32 %v4512_v32, %v5001_v43 }
 0x507   :  { %5000 = vst [vmem:[#allocation51_spill] sm:$0xff] %v4516_v37  ;;  %5002 = vst [vmem:[#allocation52_spill] sm:$0xff] %v4520_v23 }
 0x5ae   :  { %v3015_v52 = vpop.f32.mrb[16].mxu1 }
 0x5af   :  { %v1495_v34 = vpop.f32.mrb[17].mxu1 }
 0x5b0   :  { %v3016_v12 = vpop.f32.mrb[18].mxu1 }
 0x5b1   :  { %v1559_v63 = vpack.c.bf16 %v3016_v12, %v3015_v52  ;;  %v1498_v18 = vpop.f32.mrb[19].mxu1 }
 0x5b2   :  { %v1558_v3 = vpack.c.bf16 %v1498_v18, %v1495_v34 }
 0x5b4   :  { %3029 = vmatprep.subr.bf16.mxu0 %v1558_v3 }
 0x5b5   :  { %3030 = vmatpush3.bf16.msra.mxu0 %v1558_v3 }
 0x5b6   :  { %3031 = vmatprep.subr.bf16.mxu0 %v1559_v63 }
 0x5b9   :  { %3032 = vmatpush3.bf16.msra.mxu0 %v1559_v63 }
 0x5bd   :  { %v3019_v24 = vpop.f32.mrb[20].mxu1 }
 0x5be   :  { %v1511_v41 = vpop.f32.mrb[21].mxu1 }
 0x5bf   :  { %v3020_v0 = vpop.f32.mrb[22].mxu1 }
 0x5c0   :  { %v1561_v20 = vpack.c.bf16 %v3020_v0, %v3019_v24  ;;  %v1514_v58 = vpop.f32.mrb[23].mxu1 }
 0x5c1   :  { %v1560_v47 = vpack.c.bf16 %v1514_v58, %v1511_v41  ;;  %v3281_v41 = vld [vmem:[#allocation3 + $0x30] sm:$0xff]  }
 0x5c3   :  { %3033 = vmatprep.subr.bf16.mxu0 %v1560_v47 }
 0x5c4   :  { %3034 = vmatpush3.bf16.msra.mxu0 %v1560_v47  ;;  %v3276_v47 = vld [vmem:[#allocation3 + $0x8] sm:$0xff]  }
 0x5c5   :  { %3035 = vmatprep.subr.bf16.mxu0 %v1561_v20 }
 0x5c8   :  { %3036 = vmatpush3.bf16.msra.mxu0 %v1561_v20  ;;  %v3277_v20 = vld [vmem:[#allocation3 + $0x10] sm:$0xff]  }
 0x5c9   :  { %v3023_v49 = vpop.f32.mrb[24].mxu1 }
 0x5ca   :  { %v1527_v30 = vpop.f32.mrb[25].mxu1 }
 0x5cb   :  { %v3024_v13 = vpop.f32.mrb[26].mxu1 }
 0x5cc   :  { %v1563_v52 = vpack.c.bf16 %v3024_v13, %v3023_v49  ;;  %v1530_v12 = vpop.f32.mrb[27].mxu1  ;;  %v3278_v13 = vld [vmem:[#allocation3 + $0x18] sm:$0xff]   ;;  %v3280_v49 = vld [vmem:[#allocation3 + $0x28] sm:$0xff]  }
 0x5cd   :  { %v1562_v34 = vpack.c.bf16 %v1530_v12, %v1527_v30  ;;  %v3279_v30 = vld [vmem:[#allocation3 + $0x20] sm:$0xff]  }
 0x5ce   :  { %v2751_v12 = vld [vmem:[%s4884_s5 + $0x1] ss:$0 sm:$0xff]  ;;  %s2754_s5 = sld [smem:[#allocation16 + $0x5]] }
 0x5cf   :  { %3037 = vmatprep.subr.bf16.mxu0 %v1562_v34 }
 0x5d0   :  { %3038 = vmatpush3.bf16.msra.mxu0 %v1562_v34 }
 0x5d1   :  { %3039 = vmatprep.subr.bf16.mxu0 %v1563_v52 }
 0x5d4   :  { %3040 = vmatpush3.bf16.msra.mxu0 %v1563_v52  ;;  %v3282_v52 = vld [vmem:[#allocation3 + $0x38] sm:$0xff]  }
 0x5d7   :  { %v3027_v63 = vpop.f32.mrb[28].mxu1 }
 0x5d8   :  { %v1543_v18 = vpop.f32.mrb[29].mxu1 }
 0x5d9   :  { %v3028_v3 = vpop.f32.mrb[30].mxu1 }
 0x5da   :  { %v1565_v24 = vpack.c.bf16 %v3028_v3, %v3027_v63  ;;  %v1546_v0 = vpop.f32.mrb[31].mxu1 }
 0x5db   :  { %v1564_v58 = vpack.c.bf16 %v1546_v0, %v1543_v18 }
 0x5dd   :  { %3041 = vmatprep.subr.bf16.mxu0 %v1564_v58 }
 0x5de   :  { %3042 = vmatpush3.bf16.msra.mxu0 %v1564_v58 }
 0x5df   :  { %3043 = vmatprep.subr.bf16.mxu0 %v1565_v24 }
 0x5e2   :  { %3044 = vmatpush3.bf16.msra.mxu0 %v1565_v24 }
 0x5e5   :  { %3046 = vmatmul.mubr.bf16.vlgmr.msra.gmra.mrb[32].mxu0 %v3276_v47 }
 0x5e6   :  { %3049 = vmatprep.mubr.bf16.mxu0 %v3277_v20 }
 0x5ed   :  { %3050 = vmatmul.mubr.bf16.gmra.mrb[36].mxu0 %v3278_v13 }
 0x5ee   :  { %3053 = vmatprep.mubr.bf16.mxu0 %v3279_v30 }
 0x5f5   :  { %3054 = vmatmul.mubr.bf16.gmra.mrb[40].mxu0 %v3280_v49 }
 0x5f6   :  { %3057 = vmatprep.mubr.bf16.mxu0 %v3281_v41 }
 0x5fd   :  { %3058 = vmatmul.mubr.bf16.gmra.mrb[44].mxu0 %v3282_v52 }
 0x6b8   :  { %v3047_v34 = vpop.f32.mrb[32].mxu0 }
 0x6b9   :  { %v1608_v63 = vpop.f32.mrb[33].mxu0  ;;  %v1617_v0 = vadd.f32 %v3047_v34, %v2751_v12 }
 0x6ba   :  { %v1609_v18 = vadd.f32 %v2751_v12, %v1608_v63  ;;  %v3048_v3 = vpop.f32.mrb[34].mxu0 }
 0x6bb   :  { %v1611_v24 = vpop.f32.mrb[35].mxu0  ;;  %v1620_v20 = vadd.f32 %v3048_v3, %v2751_v12  ;;  %v1673_v30 = vmax.f32 %v1617_v0, 0.0 }
 0x6bc   :  { %v1671_v58 = vmax.f32 %v1609_v18, 0.0  ;;  %v1612_v47 = vadd.f32 %v2751_v12, %v1611_v24 }
 0x6bd   :  { %v1674_v49 = vmax.f32 %v1620_v20, 0.0 }
 0x6be   :  { %v1672_v13 = vmax.f32 %v1612_v47, 0.0  ;;  %1687 = vadd.xlane.f32.xlu0 %v1671_v58 }
 0x6c0   :  { %1689 = vadd.xlane.f32.xlu1 %v1672_v13  ;;  %v3051_v41 = vpop.f32.mrb[36].mxu0 }
 0x6c1   :  { %v4529_v52 = vadd.f32 %v3051_v41, %v2751_v12  ;;  %v1624_v42 = vpop.f32.mrb[37].mxu0 }
 0x6c2   :  { %1691 = vadd.xlane.f32.xlu0 %v1673_v30  ;;  %v4531_v46 = vadd.f32 %v2751_v12, %v1624_v42  ;;  %v3052_v63 = vpop.f32.mrb[38].mxu0 }
 0x6c3   :  { %v4533_v11 = vadd.f32 %v3052_v63, %v2751_v12  ;;  %v1627_v34 = vpop.f32.mrb[39].mxu0 }
 0x6c4   :  { %1693 = vadd.xlane.f32.xlu1 %v1674_v49  ;;  %v4535_v18 = vadd.f32 %v2751_v12, %v1627_v34 }
 0x6c8   :  { %v3055_v3 = vpop.f32.mrb[40].mxu0 }
 0x6c9   :  { %v4537_v24 = vadd.f32 %v3055_v3, %v2751_v12  ;;  %v1640_v0 = vpop.f32.mrb[41].mxu0 }
 0x6ca   :  { %v4539_v47 = vadd.f32 %v2751_v12, %v1640_v0  ;;  %v3056_v20 = vpop.f32.mrb[42].mxu0 }
 0x6cb   :  { %v4541_v16 = vadd.f32 %v3056_v20, %v2751_v12  ;;  %v1643_v41 = vpop.f32.mrb[43].mxu0 }
 0x6cc   :  { %v4543_v40 = vadd.f32 %v2751_v12, %v1643_v41 }
 0x6d0   :  { %v3059_v42 = vpop.f32.mrb[44].mxu0 }
 0x6d1   :  { %v4545_v33 = vadd.f32 %v3059_v42, %v2751_v12  ;;  %v1656_v63 = vpop.f32.mrb[45].mxu0 }
 0x6d2   :  { %v4547_v15 = vadd.f32 %v2751_v12, %v1656_v63  ;;  %v3060_v34 = vpop.f32.mrb[46].mxu0 }
 0x6d3   :  { %v4549_v48 = vadd.f32 %v3060_v34, %v2751_v12  ;;  %v1659_v3 = vpop.f32.mrb[47].mxu0 }
 0x6d4   :  { %v4551_v32 = vadd.f32 %v2751_v12, %v1659_v3 }
 0x74b   :  { %v1688_v0 = vpop.xlane.xlu0 %1687 }
 0x74c   :  { %v1719_v43 = vmul.f32 0.0078125, %v1688_v0  ;;  %v4930_v0 = vmax.f32 %v4537_v24, 0.0 }
 0x74d   :  { %v1690_v62 = vpop.xlane.xlu1 %1689 }
 0x74e   :  { %v4553_v20 = vsub.f32 %v1671_v58, %v1719_v43  ;;  %v1720_v55 = vmul.f32 0.0078125, %v1690_v62  ;;  %v4938_v58 = vmax.f32 %v4535_v18, 0.0 }
 0x74f   :  { %v1692_v41 = vpop.xlane.xlu0 %1691 }
 0x750   :  { %v4555_v23 = vsub.f32 %v1672_v13, %v1720_v55  ;;  %v1721_v42 = vmul.f32 0.0078125, %v1692_v41  ;;  %v1751_v63 = vmul.f32 %v4553_v20, %v4553_v20  ;;  %v4939_v55 = vmax.f32 %v4531_v46, 0.0 }
 0x751   :  { %v1694_v37 = vpop.xlane.xlu1 %1693  ;;  %v4936_v13 = vmax.f32 %v4533_v11, 0.0  ;;  %v4928_v41 = vmax.f32 %v4541_v16, 0.0 }
 0x752   :  { %v4559_v25 = vsub.f32 %v1673_v30, %v1721_v42  ;;  %v1722_v34 = vmul.f32 0.0078125, %v1694_v37  ;;  %1767 = vadd.xlane.f32.xlu0 %v1751_v63  ;;  %v1752_v12 = vmul.f32 %v4555_v23, %v4555_v23  ;;  %v4937_v37 = vmax.f32 %v4529_v52, 0.0 }
 0x753   :  { %v4935_v30 = vmax.f32 %v4539_v47, 0.0  ;;  %v4929_v42 = vmax.f32 %v4547_v15, 0.0  ;;  %v4931_v63 = vmax.f32 %v4551_v32, 0.0 }
 0x754   :  { %v4563_v3 = vsub.f32 %v1674_v49, %v1722_v34  ;;  %1769 = vadd.xlane.f32.xlu1 %v1752_v12  ;;  %v1753_v62 = vmul.f32 %v4559_v25, %v4559_v25  ;;  %v4934_v49 = vmax.f32 %v4543_v40, 0.0  ;;  %v3188_v34 = vld [vmem:[#allocation12] sm:$0xff]   ;;  %v4932_v12 = vmax.f32 %v4545_v33, 0.0 }
 0x755   :  { %3061 = vmatprep.subr.bf16.mxu1 %v3188_v34 }
 0x756   :  { %1771 = vadd.xlane.f32.xlu0 %v1753_v62  ;;  %v1754_v43 = vmul.f32 %v4563_v3, %v4563_v3  ;;  %v4933_v62 = vmax.f32 %v4549_v48, 0.0  ;;  %3062 = vmatpush3.bf16.msra.mxu1 %v3188_v34  ;;  %v3194_v34 = vld [vmem:[#allocation12 + $0x30] sm:$0xff]  }
 0x758   :  { %1773 = vadd.xlane.f32.xlu1 %v1754_v43  ;;  %v3189_v43 = vld [vmem:[#allocation12 + $0x8] sm:$0xff]  }
 0x759   :  { %3063 = vmatprep.subr.bf16.mxu1 %v3189_v43 }
 0x75a   :  { %1695 = vadd.xlane.f32.xlu0 %v4939_v55  ;;  %3064 = vmatpush3.bf16.msra.mxu1 %v3189_v43 }
 0x75c   :  { %1697 = vadd.xlane.f32.xlu1 %v4938_v58 }
 0x75e   :  { %1699 = vadd.xlane.f32.xlu0 %v4937_v37 }
 0x760   :  { %1701 = vadd.xlane.f32.xlu1 %v4936_v13 }
 0x762   :  { %1703 = vadd.xlane.f32.xlu0 %v4935_v30 }
 0x764   :  { %1705 = vadd.xlane.f32.xlu1 %v4934_v49 }
 0x766   :  { %1707 = vadd.xlane.f32.xlu0 %v4930_v0  ;;  %v3192_v0 = vld [vmem:[#allocation12 + $0x20] sm:$0xff]  }
 0x768   :  { %1709 = vadd.xlane.f32.xlu1 %v4928_v41  ;;  %v3190_v41 = vld [vmem:[#allocation12 + $0x10] sm:$0xff]  }
 0x769   :  { %3065 = vmatprep.subr.bf16.mxu1 %v3190_v41 }
 0x76a   :  { %1711 = vadd.xlane.f32.xlu0 %v4929_v42  ;;  %3066 = vmatpush3.bf16.msra.mxu1 %v3190_v41  ;;  %v3191_v42 = vld [vmem:[#allocation12 + $0x18] sm:$0xff]  }
 0x76b   :  { %3067 = vmatprep.subr.bf16.mxu1 %v3191_v42 }
 0x76c   :  { %1713 = vadd.xlane.f32.xlu1 %v4931_v63  ;;  %v3193_v63 = vld [vmem:[#allocation12 + $0x28] sm:$0xff]  }
 0x76e   :  { %1715 = vadd.xlane.f32.xlu0 %v4932_v12  ;;  %3068 = vmatpush3.bf16.msra.mxu1 %v3191_v42  ;;  %v3195_v12 = vld [vmem:[#allocation12 + $0x38] sm:$0xff]  }
 0x76f   :  { %3069 = vmatprep.subr.bf16.mxu1 %v3192_v0 }
 0x770   :  { %1717 = vadd.xlane.f32.xlu1 %v4933_v62 }
 0x772   :  { %3070 = vmatpush3.bf16.msra.mxu1 %v3192_v0 }
 0x773   :  { %3071 = vmatprep.subr.bf16.mxu1 %v3193_v63 }
 0x776   :  { %3072 = vmatpush3.bf16.msra.mxu1 %v3193_v63 }
 0x777   :  { %3073 = vmatprep.subr.bf16.mxu1 %v3194_v34 }
 0x77a   :  { %3074 = vmatpush3.bf16.msra.mxu1 %v3194_v34 }
 0x77b   :  { %3075 = vmatprep.subr.bf16.mxu1 %v3195_v12 }
 0x77e   :  { %3076 = vmatpush3.bf16.msra.mxu1 %v3195_v12  ;;  %v5003_v12 = vmax.f32 %v4531_v46, 0.0  ;;  %v4619_v46 = vstv %s2754_s5 }
 0x7df   :  { %v1768_v62 = vpop.xlane.xlu0 %1767 }
 0x7e0   :  { %v1799_v43 = vmul.f32 0.0078125, %v1768_v62 }
 0x7e1   :  { %v1770_v49 = vpop.xlane.xlu1 %1769 }
 0x7e2   :  { %v1815_v30 = vadd.f32 1e-05, %v1799_v43  ;;  %v1800_v41 = vmul.f32 0.0078125, %v1770_v49 }
 0x7e3   :  { %v1772_v13 = vpop.xlane.xlu0 %1771 }
 0x7e4   :  { %3244 = vrsqrt.f32 %v1815_v30  ;;  %v1816_v42 = vadd.f32 1e-05, %v1800_v41  ;;  %v1801_v37 = vmul.f32 0.0078125, %v1772_v13  ;;  %v5004_v13 = vmax.f32 %v4535_v18, 0.0 }
 0x7e5   :  { %v1774_v58 = vpop.xlane.xlu1 %1773 }
 0x7e6   :  { %3246 = vrsqrt.f32 %v1816_v42  ;;  %v1817_v0 = vadd.f32 1e-05, %v1801_v37  ;;  %v1802_v63 = vmul.f32 0.0078125, %v1774_v58 }
 0x7e7   :  { %v1696_v55 = vpop.xlane.xlu0 %1695 }
 0x7e8   :  { %3248 = vrsqrt.f32 %v1817_v0  ;;  %v1818_v53 = vadd.f32 1e-05, %v1802_v63  ;;  %v1723_v34 = vmul.f32 0.0078125, %v1696_v55 }
 0x7e9   :  { %v1698_v4 = vpop.xlane.xlu1 %1697 }
 0x7ea   :  { %3250 = vrsqrt.f32 %v1818_v53  ;;  %v4607_v62 = vsub.f32 %v5003_v12, %v1723_v34  ;;  %v1724_v49 = vmul.f32 0.0078125, %v1698_v4  ;;  %v5005_v4 = vmax.f32 %v4529_v52, 0.0 }
 0x7eb   :  { %v1700_v30 = vpop.xlane.xlu0 %1699  ;;  %v5006_v12 = vmax.f32 %v4533_v11, 0.0 }
 0x7ec   :  { %v4613_v43 = vsub.f32 %v5004_v13, %v1724_v49  ;;  %v1725_v58 = vmul.f32 0.0078125, %v1700_v30  ;;  %v1755_v37 = vmul.f32 %v4607_v62, %v4607_v62 }
 0x7ed   :  { %v1702_v53 = vpop.xlane.xlu1 %1701 }
 0x7ee   :  { %v3245_v55 = vpop.eup %3244  ;;  %v4623_v41 = vsub.f32 %v5005_v4, %v1725_v58  ;;  %v1726_v42 = vmul.f32 0.0078125, %v1702_v53  ;;  %1775 = vadd.xlane.f32.xlu0 %v1755_v37  ;;  %v1756_v18 = vmul.f32 %v4613_v43, %v4613_v43 }
 0x7ef   :  { %v1847_v0 = vmul.f32 %v3245_v55, %v4553_v20  ;;  %v1704_v63 = vpop.xlane.xlu0 %1703  ;;  %v5007_v20 = vmax.f32 %v4539_v47, 0.0 }
 0x7f0   :  { %v3247_v34 = vpop.eup %3246  ;;  %v4630_v49 = vsub.f32 %v5006_v12, %v1726_v42  ;;  %v1727_v30 = vmul.f32 0.0078125, %v1704_v63  ;;  %1777 = vadd.xlane.f32.xlu1 %v1756_v18  ;;  %v1757_v52 = vmul.f32 %v4623_v41, %v4623_v41  ;;  %v4642_v42 = vstv %s2755_s27 }
 0x7f1   :  { %v1848_v13 = vmul.f32 %v3247_v34, %v4555_v23  ;;  %v1706_v58 = vpop.xlane.xlu1 %1705  ;;  %v1998_v37 = vmul.f32 %v4619_v46, %v1847_v0  ;;  %v5008_v34 = vld [vmem:[#allocation44_spill] sm:$0xff]  ;;  %v4648_v12 = vstv %s4609_s18 }
 0x7f2   :  { %v3249_v53 = vpop.eup %3248  ;;  %v4638_v55 = vsub.f32 %v5007_v20, %v1727_v30  ;;  %v1728_v11 = vmul.f32 0.0078125, %v1706_v58  ;;  %1779 = vadd.xlane.f32.xlu0 %v1757_v52  ;;  %v1758_v4 = vmul.f32 %v4630_v49, %v4630_v49  ;;  %v5009_v30 = vmax.f32 %v4543_v40, 0.0 }
 0x7f3   :  { %v1849_v18 = vmul.f32 %v3249_v53, %v4559_v25  ;;  %v1708_v63 = vpop.xlane.xlu0 %1707  ;;  %v1999_v23 = vmul.f32 %v4619_v46, %v1848_v13  ;;  %v2014_v0 = vadd.f32 %v1998_v37, %v5008_v34  ;;  %v2030_v40 = vmax.f32 %v5010_v7, %v1998_v37 }
 0x7f4   :  { %v3251_v47 = vpop.eup %3250  ;;  %v4652_v20 = vsub.f32 %v5009_v30, %v1728_v11  ;;  %v1729_v52 = vmul.f32 0.0078125, %v1708_v63  ;;  %1781 = vadd.xlane.f32.xlu1 %v1758_v4  ;;  %v1759_v58 = vmul.f32 %v4638_v55, %v4638_v55  ;;  %v5011_v11 = vmax.f32 %v4537_v24, 0.0 }
 0x7f5   :  { %v2000_v25 = vmul.f32 %v4619_v46, %v1849_v18  ;;  %v1850_v13 = vmul.f32 %v3251_v47, %v4563_v3  ;;  %v1710_v53 = vpop.xlane.xlu1 %1709  ;;  %v2015_v34 = vadd.f32 %v1999_v23, %v4399_v10  ;;  %v5012_v18 = vmax.f32 %v4146_v22, %v4390_v54  ;;  %v5013_v47 = vld [vmem:[#allocation46_spill] sm:$0xff]  ;;  %v5014_v10 = vld [vmem:[#allocation40_spill] sm:$0xff] }
 0x7f6   :  { %v4667_v63 = vsub.f32 %v5011_v11, %v1729_v52  ;;  %v1730_v4 = vmul.f32 0.0078125, %v1710_v53  ;;  %1783 = vadd.xlane.f32.xlu0 %v1759_v58  ;;  %v1760_v30 = vmul.f32 %v4652_v20, %v4652_v20  ;;  %v5016_v5 = vmax.f32 %v5014_v10, %v5015_v59  ;;  %v5018_v11 = vld [vmem:[#allocation48_spill] sm:$0xff] }
 0x7f7   :  { %v2031_v3 = vmax.f32 %v5012_v18, %v1999_v23  ;;  %v2016_v56 = vadd.f32 %v2000_v25, %v5013_v47  ;;  %v2001_v35 = vmul.f32 %v4619_v46, %v1850_v13  ;;  %v1712_v7 = vpop.xlane.xlu0 %1711  ;;  %v2046_v24 = vmul.f32 0.33333334, %v2014_v0  ;;  %v5020_v13 = vld [vmem:[#allocation47_spill] sm:$0xff] }
 0x7f8   :  { %v2032_v50 = vmax.f32 %v5016_v5, %v2000_v25  ;;  %v5017_v37 = vmax.f32 %v4541_v16, 0.0  ;;  %v1731_v58 = vmul.f32 0.0078125, %v1712_v7  ;;  %1785 = vadd.xlane.f32.xlu1 %v1760_v30  ;;  %v1761_v22 = vmul.f32 %v4667_v63, %v4667_v63  ;;  %v5019_v25 = vld [vmem:[#allocation42_spill] sm:$0xff] }
 0x7f9   :  { %v2047_v54 = vmul.f32 0.33333334, %v2015_v34  ;;  %v2048_v23 = vmul.f32 0.33333334, %v2016_v56  ;;  %v2065_v53 = vmax.f32 %v2016_v56, 0.0  ;;  %v2017_v18 = vadd.f32 %v2001_v35, %v5018_v11  ;;  %v1714_v59 = vpop.xlane.xlu1 %1713 }
 0x7fa   :  { %v4681_v52 = vsub.f32 %v5017_v37, %v1730_v4  ;;  %v2063_v5 = vmax.f32 %v2014_v0, 0.0  ;;  %v5021_v47 = vmax.f32 %v5019_v25, %v5020_v13  ;;  %v5022_v16 = vmax.f32 %v4547_v15, 0.0  ;;  %1787 = vadd.xlane.f32.xlu0 %v1761_v22 }
 0x7fb   :  { %v1732_v7 = vmul.f32 0.0078125, %v1714_v59  ;;  %v2099_v37 = vmax.f32 %v2048_v23, 0.0  ;;  %v2149_v2 = vmax.f32 %v2032_v50, 0.0  ;;  %v2049_v56 = vmul.f32 0.33333334, %v2017_v18  ;;  %v1716_v38 = vpop.xlane.xlu0 %1715 }
 0x7fc   :  { %v2033_v10 = vmax.f32 %v5021_v47, %v2001_v35  ;;  %v4691_v4 = vsub.f32 %v5022_v16, %v1731_v58  ;;  %v1762_v30 = vmul.f32 %v4681_v52, %v4681_v52  ;;  %v2064_v11 = vmax.f32 %v2015_v34, 0.0 }
 0x7fd   :  { %v2066_v57 = vmax.f32 %v2017_v18, 0.0  ;;  %v5023_v0 = vmax.f32 %v4551_v32, 0.0  ;;  %v1733_v35 = vmul.f32 0.0078125, %v1716_v38  ;;  %v2100_v58 = vmax.f32 %v2049_v56, 0.0  ;;  %v1718_v59 = vpop.xlane.xlu1 %1717 }
 0x7fe   :  { %1789 = vadd.xlane.f32.xlu1 %v1762_v30  ;;  %v1763_v15 = vmul.f32 %v4691_v4, %v4691_v4  ;;  %v2150_v22 = vmax.f32 %v2033_v10, 0.0  ;;  %v2080_v25 = vmul.f32 %v4642_v42, %v2063_v5  ;;  %v2097_v23 = vmax.f32 %v2046_v24, 0.0 }
 0x7ff   :  { %v4697_v29 = vsub.f32 %v5023_v0, %v1732_v7  ;;  %v5024_v50 = vmax.f32 %v4545_v33, 0.0  ;;  %v1734_v34 = vmul.f32 0.0078125, %v1718_v59  ;;  %v2098_v38 = vmax.f32 %v2047_v54, 0.0 }
 0x800   :  { %1791 = vadd.xlane.f32.xlu0 %v1763_v15  ;;  %v2081_v18 = vmul.f32 %v4642_v42, %v2064_v11  ;;  %v2114_v47 = vmul.f32 %v4648_v12, %v2097_v23  ;;  %v2147_v16 = vmax.f32 %v2030_v40, 0.0  ;;  %v2148_v10 = vmax.f32 %v2031_v3, 0.0 }
 0x801   :  { %v4704_v13 = vsub.f32 %v5024_v50, %v1733_v35  ;;  %v1764_v32 = vmul.f32 %v4697_v29, %v4697_v29  ;;  %v5025_v7 = vmax.f32 %v4549_v48, 0.0  ;;  %v2115_v24 = vmul.f32 %v4648_v12, %v2098_v38 }
 0x802   :  { %v2082_v30 = vmul.f32 %v4642_v42, %v2065_v53  ;;  %v2130_v56 = vadd.f32 %v2114_v47, %v2080_v25  ;;  %v2164_v54 = vmul.f32 %v4657_v44, %v2147_v16  ;;  %v2083_v11 = vmul.f32 %v4642_v42, %v2066_v57 }
 0x803   :  { %v4712_v5 = vsub.f32 %v5025_v7, %v1734_v34  ;;  %1793 = vadd.xlane.f32.xlu1 %v1764_v32  ;;  %v1765_v33 = vmul.f32 %v4704_v13, %v4704_v13  ;;  %v2116_v40 = vmul.f32 %v4648_v12, %v2099_v37  ;;  %v2131_v3 = vadd.f32 %v2115_v24, %v2081_v18  ;;  %v3196_v18 = vld [vmem:[#allocation13] sm:$0xff]  }
 0x804   :  { %v2165_v48 = vmul.f32 %v4657_v44, %v2148_v10  ;;  %v2117_v35 = vmul.f32 %v4648_v12, %v2100_v58  ;;  %v2180_v15 = vadd.f32 %v2164_v54, %v2130_v56  ;;  %v2166_v53 = vmul.f32 %v4657_v44, %v2149_v2  ;;  %v3197_v58 = vld [vmem:[#allocation13 + $0x8] sm:$0xff]   ;;  %v3198_v56 = vld [vmem:[#allocation13 + $0x10] sm:$0xff]  }
 0x805   :  { %1795 = vadd.xlane.f32.xlu0 %v1765_v33  ;;  %v1766_v0 = vmul.f32 %v4712_v5, %v4712_v5  ;;  %v2132_v59 = vadd.f32 %v2116_v40, %v2082_v30  ;;  %v2167_v57 = vmul.f32 %v4657_v44, %v2150_v22  ;;  %v3521_v16 = vmov 0.0  }
 0x806   :  { %v2181_v25 = vadd.f32 %v2165_v48, %v2131_v3  ;;  %v2133_v23 = vadd.f32 %v2117_v35, %v2083_v11  ;;  %3093 = vmatprep.subr.bf16.mxu0 %v3521_v16  ;;  %3109 = vmatprep.mubr.msk.bf16.mxu0 %vm3522_vm0, %v3521_v16  ;;  %v3199_v35 = vld [vmem:[#allocation13 + $0x18] sm:$0xff]  }
 0x807   :  { %1797 = vadd.xlane.f32.xlu1 %v1766_v0  ;;  %v2182_v50 = vadd.f32 %v2166_v53, %v2132_v59  ;;  %3094 = vmatpush3.bf16.msra.mxu0 %v3196_v18 }
 0x808   :  { %v2196_v37 = vpack.c.bf16 %v2181_v25, %v2180_v15  ;;  %v2183_v34 = vadd.f32 %v2167_v57, %v2133_v23  ;;  %3113 = vmatprep.subr.bf16.mxu1 %v3521_v16  ;;  %3095 = vmatprep.subr.bf16.mxu0 %v3521_v16 }
 0x80a   :  { %3077 = vmatprep.mubr.bf16.mxu1 %v2196_v37  ;;  %v2197_v32 = vpack.c.bf16 %v2183_v34, %v2182_v50  ;;  %v3200_v50 = vld [vmem:[#allocation13 + $0x20] sm:$0xff]  }
 0x80b   :  { %3096 = vmatpush3.bf16.msra.mxu0 %v3197_v58 }
 0x80c   :  { %3078 = vmatmul.mubr.bf16.vlgmr.msra.gmra.mrb[32].mxu1 %v2197_v32  ;;  %3097 = vmatprep.subr.bf16.mxu0 %v3521_v16 }
 0x80f   :  { %3098 = vmatpush3.bf16.msra.mxu0 %v3198_v56 }
 0x810   :  { %3099 = vmatprep.subr.bf16.mxu0 %v3521_v16 }
 0x813   :  { %3100 = vmatpush3.bf16.msra.mxu0 %v3199_v35 }
 0x814   :  { %3101 = vmatprep.subr.bf16.mxu0 %v3521_v16 }
 0x817   :  { %3102 = vmatpush3.bf16.msra.mxu0 %v3200_v50 }
 0x818   :  { %3103 = vmatprep.subr.bf16.mxu0 %v3521_v16 }
 0x87b   :  { %v1776_v38 = vpop.xlane.xlu0 %1775 }
 0x87c   :  { %v1803_v47 = vmul.f32 0.0078125, %v1776_v38 }
 0x87d   :  { %v1778_v2 = vpop.xlane.xlu1 %1777 }
 0x87e   :  { %v1819_v22 = vadd.f32 1e-05, %v1803_v47  ;;  %v1804_v10 = vmul.f32 0.0078125, %v1778_v2 }
 0x87f   :  { %v1780_v7 = vpop.xlane.xlu0 %1779 }
 0x880   :  { %3252 = vrsqrt.f32 %v1819_v22  ;;  %v1820_v33 = vadd.f32 1e-05, %v1804_v10  ;;  %v1805_v24 = vmul.f32 0.0078125, %v1780_v7 }
 0x881   :  { %v1782_v30 = vpop.xlane.xlu1 %1781 }
 0x882   :  { %3254 = vrsqrt.f32 %v1820_v33  ;;  %v1821_v54 = vadd.f32 1e-05, %v1805_v24  ;;  %v1806_v11 = vmul.f32 0.0078125, %v1782_v30  ;;  %v3201_v33 = vld [vmem:[#allocation13 + $0x28] sm:$0xff]  }
 0x883   :  { %v1784_v40 = vpop.xlane.xlu0 %1783  ;;  %3104 = vmatpush3.bf16.msra.mxu0 %v3201_v33 }
 0x884   :  { %3256 = vrsqrt.f32 %v1821_v54  ;;  %v1822_v3 = vadd.f32 1e-05, %v1806_v11  ;;  %v1807_v48 = vmul.f32 0.0078125, %v1784_v40  ;;  %3105 = vmatprep.subr.bf16.mxu0 %v3521_v16 }
 0x885   :  { %v1786_v0 = vpop.xlane.xlu1 %1785 }
 0x886   :  { %3258 = vrsqrt.f32 %v1822_v3  ;;  %v1823_v15 = vadd.f32 1e-05, %v1807_v48  ;;  %v1808_v59 = vmul.f32 0.0078125, %v1786_v0  ;;  %v5026_v48 = vmax.f32 %v4979_v51, %v4408_v60 }
 0x887   :  { %v1788_v53 = vpop.xlane.xlu0 %1787 }
 0x888   :  { %3260 = vrsqrt.f32 %v1823_v15  ;;  %v1824_v25 = vadd.f32 1e-05, %v1808_v59  ;;  %v1809_v23 = vmul.f32 0.0078125, %v1788_v53  ;;  %v5027_v53 = vmax.f32 %v4980_v31, %v4412_v26 }
 0x88a   :  { %v3253_v37 = vpop.eup %3252  ;;  %3262 = vrsqrt.f32 %v1824_v25  ;;  %v1825_v34 = vadd.f32 1e-05, %v1809_v23 }
 0x88b   :  { %v1790_v57 = vpop.xlane.xlu1 %1789  ;;  %v1851_v38 = vmul.f32 %v3253_v37, %v4607_v62 }
 0x88c   :  { %v1810_v32 = vmul.f32 0.0078125, %v1790_v57  ;;  %v3255_v47 = vpop.eup %3254  ;;  %3264 = vrsqrt.f32 %v1825_v34 }
 0x88d   :  { %v1792_v18 = vpop.xlane.xlu0 %1791  ;;  %v1852_v22 = vmul.f32 %v3255_v47, %v4613_v43  ;;  %v2002_v7 = vmul.f32 %v4619_v46, %v1851_v38 }
 0x88e   :  { %v1826_v2 = vadd.f32 1e-05, %v1810_v32  ;;  %v1811_v58 = vmul.f32 0.0078125, %v1792_v18  ;;  %v3257_v24 = vpop.eup %3256 }
 0x88f   :  { %v2003_v62 = vmul.f32 %v4619_v46, %v1852_v22  ;;  %v2018_v11 = vadd.f32 %v2002_v7, %v4424_v45  ;;  %v2034_v0 = vmax.f32 %v5026_v48, %v2002_v7  ;;  %v1853_v35 = vmul.f32 %v3257_v24, %v4623_v41  ;;  %v3202_v45 = vld [vmem:[#allocation13 + $0x30] sm:$0xff]   ;;  %v3203_v22 = vld [vmem:[#allocation13 + $0x38] sm:$0xff]  }
 0x890   :  { %v1794_v10 = vpop.xlane.xlu1 %1793  ;;  %3266 = vrsqrt.f32 %v1826_v2  ;;  %v1827_v30 = vadd.f32 1e-05, %v1811_v58  ;;  %v3259_v40 = vpop.eup %3258  ;;  %3106 = vmatpush3.bf16.msra.mxu0 %v3202_v45 }
 0x891   :  { %v1812_v56 = vmul.f32 0.0078125, %v1794_v10  ;;  %v2019_v59 = vadd.f32 %v2003_v62, %v4430_v27  ;;  %v2035_v25 = vmax.f32 %v5027_v53, %v2003_v62  ;;  %v2050_v23 = vmul.f32 0.33333334, %v2018_v11  ;;  %3107 = vmatprep.subr.bf16.mxu0 %v3521_v16 }
 0x892   :  { %v1796_v54 = vpop.xlane.xlu0 %1795  ;;  %3268 = vrsqrt.f32 %v1827_v30  ;;  %v3261_v57 = vpop.eup %3260  ;;  %v2067_v34 = vmax.f32 %v2018_v11, 0.0  ;;  %v1854_v60 = vmul.f32 %v3259_v40, %v4630_v49  ;;  %v2151_v31 = vmax.f32 %v2034_v0, 0.0 }
 0x893   :  { %v1828_v3 = vadd.f32 1e-05, %v1812_v56  ;;  %v1813_v43 = vmul.f32 0.0078125, %v1796_v54  ;;  %v2051_v51 = vmul.f32 0.33333334, %v2019_v59  ;;  %v2068_v41 = vmax.f32 %v2019_v59, 0.0 }
 0x894   :  { %v1798_v15 = vpop.xlane.xlu1 %1797  ;;  %v2101_v32 = vmax.f32 %v2050_v23, 0.0  ;;  %v3263_v27 = vpop.eup %3262  ;;  %v1855_v38 = vmul.f32 %v3261_v57, %v4638_v55  ;;  %v2084_v47 = vmul.f32 %v4642_v42, %v2067_v34  ;;  %v2152_v7 = vmax.f32 %v2035_v25, 0.0  ;;  %3108 = vmatpush3.bf16.msra.mxu0 %v3203_v22 }
 0x895   :  { %3270 = vrsqrt.f32 %v1828_v3  ;;  %v1829_v50 = vadd.f32 1e-05, %v1813_v43  ;;  %v1814_v37 = vmul.f32 0.0078125, %v1798_v15  ;;  %v1856_v18 = vmul.f32 %v3263_v27, %v4652_v20 }
 0x896   :  { %v2102_v2 = vmax.f32 %v2051_v51, 0.0  ;;  %v2118_v58 = vmul.f32 %v4648_v12, %v2101_v32  ;;  %v3265_v10 = vpop.eup %3264  ;;  %v2085_v49 = vmul.f32 %v4642_v42, %v2068_v41  ;;  %v2004_v33 = vmul.f32 %v4619_v46, %v1853_v35 }
 0x897   :  { %3272 = vrsqrt.f32 %v1829_v50  ;;  %v1830_v26 = vadd.f32 1e-05, %v1814_v37  ;;  %v2168_v20 = vmul.f32 %v4657_v44, %v2151_v31  ;;  %v2005_v30 = vmul.f32 %v4619_v46, %v1854_v60 }
 0x898   :  { %v2119_v55 = vmul.f32 %v4648_v12, %v2102_v2  ;;  %v2134_v24 = vadd.f32 %v2118_v58, %v2084_v47  ;;  %v1857_v54 = vmul.f32 %v3265_v10, %v4667_v63  ;;  %v2169_v62 = vmul.f32 %v4657_v44, %v2152_v7 }
 0x899   :  { %3274 = vrsqrt.f32 %v1830_v26  ;;  %v2020_v11 = vadd.f32 %v2004_v33, %v4436_v9  ;;  %v5028_v40 = vmax.f32 %v4981_v14, %v4416_v17  ;;  %v2021_v0 = vadd.f32 %v2005_v30, %v4440_v8 }
 0x89a   :  { %v3267_v56 = vpop.eup %3266  ;;  %v2135_v43 = vadd.f32 %v2119_v55, %v2085_v49  ;;  %v2184_v48 = vadd.f32 %v2168_v20, %v2134_v24  ;;  %v2006_v35 = vmul.f32 %v4619_v46, %v1855_v38  ;;  %v5029_v59 = vmax.f32 %v4982_v61, %v4420_v1 }
 0x89b   :  { %v2036_v3 = vmax.f32 %v5028_v40, %v2004_v33  ;;  %v2052_v53 = vmul.f32 0.33333334, %v2020_v11  ;;  %v2069_v25 = vmax.f32 %v2020_v11, 0.0  ;;  %v1858_v9 = vmul.f32 %v3267_v56, %v4681_v52 }
 0x89c   :  { %v3269_v15 = vpop.eup %3268  ;;  %v2037_v63 = vmax.f32 %v5029_v59, %v2005_v30  ;;  %v2185_v45 = vadd.f32 %v2169_v62, %v2135_v43  ;;  %v2053_v17 = vmul.f32 0.33333334, %v2021_v0  ;;  %v2070_v14 = vmax.f32 %v2021_v0, 0.0  ;;  %v5034_v0 = vld [vmem:[#allocation43_spill] sm:$0xff] }
 0x89d   :  { %v2153_v23 = vmax.f32 %v2036_v3, 0.0  ;;  %v1859_v50 = vmul.f32 %v3269_v15, %v4691_v4  ;;  %v2086_v8 = vmul.f32 %v4642_v42, %v2069_v25  ;;  %v2103_v37 = vmax.f32 %v2052_v53, 0.0  ;;  %v5032_v3 = vld [vmem:[#allocation28_spill] sm:$0xff]  ;;  %v5036_v53 = vld [vmem:[#allocation30_spill] sm:$0xff] }
 0x89e   :  { %v2154_v34 = vmax.f32 %v2037_v63, 0.0  ;;  %v2198_v51 = vpack.c.bf16 %v2185_v45, %v2184_v48  ;;  %v2104_v1 = vmax.f32 %v2053_v17, 0.0  ;;  %v2087_v32 = vmul.f32 %v4642_v42, %v2070_v14  ;;  %v5033_v48 = vld [vmem:[#allocation32_spill] sm:$0xff]  ;;  %v5038_v45 = vld [vmem:[#allocation41_spill] sm:$0xff] }
 0x89f   :  { %v3271_v57 = vpop.eup %3270  ;;  %v2170_v61 = vmul.f32 %v4657_v44, %v2153_v23  ;;  %v2120_v52 = vmul.f32 %v4648_v12, %v2103_v37  ;;  %v2007_v27 = vmul.f32 %v4619_v46, %v1856_v18  ;;  %v2022_v38 = vadd.f32 %v2006_v35, %v4468_v28  ;;  %v5037_v23 = vld [vmem:[#allocation34_spill] sm:$0xff] }
 0x8a0   :  { %v1860_v60 = vmul.f32 %v3271_v57, %v4697_v29  ;;  %3081 = vmatprep.mubr.bf16.mxu1 %v2198_v51  ;;  %v2121_v26 = vmul.f32 %v4648_v12, %v2104_v1  ;;  %v2171_v29 = vmul.f32 %v4657_v44, %v2154_v34  ;;  %v5030_v31 = vmax.f32 %v4986_v36, %v4448_v21 }
 0x8a1   :  { %v3273_v41 = vpop.eup %3272  ;;  %v2136_v58 = vadd.f32 %v2120_v52, %v2086_v8  ;;  %v2023_v22 = vadd.f32 %v2007_v27, %v4478_v39  ;;  %v5031_v18 = vmax.f32 %v4988_v6, %v4452_v19  ;;  %v2054_v10 = vmul.f32 0.33333334, %v2022_v38 }
 0x8a2   :  { %v4782_v4 = vmul.f32 %v3273_v41, %v4704_v13  ;;  %v2038_v47 = vmax.f32 %v5030_v31, %v2006_v35  ;;  %v2137_v13 = vadd.f32 %v2121_v26, %v2087_v32  ;;  %v2071_v49 = vmax.f32 %v2022_v38, 0.0 }
 0x8a3   :  { %v3275_v2 = vpop.eup %3274  ;;  %v2039_v28 = vmax.f32 %v5031_v18, %v2007_v27  ;;  %v2008_v33 = vmul.f32 %v4619_v46, %v1857_v54  ;;  %v2186_v55 = vadd.f32 %v2170_v61, %v2136_v58  ;;  %v2055_v24 = vmul.f32 0.33333334, %v2023_v22  ;;  %v5040_v58 = vld [vmem:[#allocation33_spill] sm:$0xff] }
 0x8a4   :  { %v2155_v7 = vmax.f32 %v2038_v47, 0.0  ;;  %v2072_v20 = vmax.f32 %v2023_v22, 0.0  ;;  %v2105_v30 = vmax.f32 %v2054_v10, 0.0  ;;  %v2187_v21 = vadd.f32 %v2171_v29, %v2137_v13  ;;  %v5041_v18 = vld [vmem:[#allocation37_spill] sm:$0xff] }
 0x8a5   :  { %v2088_v36 = vmul.f32 %v4642_v42, %v2071_v49  ;;  %v2156_v56 = vmax.f32 %v2039_v28, 0.0  ;;  %v2106_v19 = vmax.f32 %v2055_v24, 0.0  ;;  %v2009_v11 = vmul.f32 %v4619_v46, %v1858_v9  ;;  %v5042_v28 = vld [vmem:[#allocation29_spill] sm:$0xff]  ;;  %v5044_v49 = vld [vmem:[#allocation35_spill] sm:$0xff] }
 0x8a6   :  { %v2172_v39 = vmul.f32 %v4657_v44, %v2155_v7  ;;  %v2089_v62 = vmul.f32 %v4642_v42, %v2072_v20  ;;  %v2122_v6 = vmul.f32 %v4648_v12, %v2105_v30  ;;  %v2199_v40 = vpack.c.bf16 %v2187_v21, %v2186_v55  ;;  %v5046_v55 = vld [vmem:[#allocation31_spill] sm:$0xff] }
 0x8a7   :  { %v2173_v54 = vmul.f32 %v4657_v44, %v2156_v56  ;;  %v2024_v43 = vadd.f32 %v2008_v33, %v5032_v3  ;;  %v5035_v35 = vmax.f32 %v5033_v48, %v5034_v0  ;;  %v2123_v59 = vmul.f32 %v4648_v12, %v2106_v19 }
 0x8a8   :  { %v2138_v63 = vadd.f32 %v2122_v6, %v2088_v36  ;;  %v2025_v25 = vadd.f32 %v2009_v11, %v5036_v53  ;;  %v5039_v17 = vmax.f32 %v5037_v23, %v5038_v45  ;;  %3082 = vmatmul.mubr.bf16.gmra.mrb[36].mxu1 %v2199_v40  ;;  %v2010_v37 = vmul.f32 %v4619_v46, %v1859_v50  ;;  %v5048_v23 = vld [vmem:[#allocation51_spill] sm:$0xff] }
 0x8a9   :  { %v2040_v15 = vmax.f32 %v5035_v35, %v2008_v33  ;;  %v2056_v9 = vmul.f32 0.33333334, %v2024_v43  ;;  %v2073_v57 = vmax.f32 %v2024_v43, 0.0  ;;  %v2139_v34 = vadd.f32 %v2123_v59, %v2089_v62  ;;  %v5045_v33 = vld [vmem:[#allocation39_spill] sm:$0xff] }
 0x8aa   :  { %v2041_v14 = vmax.f32 %v5039_v17, %v2009_v11  ;;  %v2188_v51 = vadd.f32 %v2172_v39, %v2138_v63  ;;  %v2057_v1 = vmul.f32 0.33333334, %v2025_v25  ;;  %v2074_v61 = vmax.f32 %v2025_v25, 0.0  ;;  %v5049_v17 = vld [vmem:[#allocation52_spill] sm:$0xff] }
 0x8ab   :  { %v2157_v8 = vmax.f32 %v2040_v15, 0.0  ;;  %v1862_v41 = vmul.f32 %v3275_v2, %v4712_v5  ;;  %v2090_v32 = vmul.f32 %v4642_v42, %v2073_v57  ;;  %v2107_v52 = vmax.f32 %v2056_v9, 0.0  ;;  %v5050_v9 = vld [vmem:[#allocation36_spill] sm:$0xff]  ;;  %v5051_v57 = vld [vmem:[#allocation49_spill] sm:$0xff] }
 0x8ac   :  { %v2158_v27 = vmax.f32 %v2041_v14, 0.0  ;;  %v2189_v38 = vadd.f32 %v2173_v54, %v2139_v34  ;;  %v2108_v26 = vmax.f32 %v2057_v1, 0.0  ;;  %v2011_v31 = vmul.f32 %v4619_v46, %v1860_v60  ;;  %v5053_v34 = vld [vmem:[#allocation38_spill] sm:$0xff] }
 0x8ad   :  { %v2174_v29 = vmul.f32 %v4657_v44, %v2157_v8  ;;  %v2091_v47 = vmul.f32 %v4642_v42, %v2074_v61  ;;  %v2124_v50 = vmul.f32 %v4648_v12, %v2107_v52  ;;  %v2026_v22 = vadd.f32 %v2010_v37, %v5040_v58 }
 0x8ae   :  { %v5043_v10 = vmax.f32 %v5041_v18, %v5042_v28  ;;  %v2200_v2 = vpack.c.bf16 %v2189_v38, %v2188_v51  ;;  %v2125_v13 = vmul.f32 %v4648_v12, %v2108_v26  ;;  %v2027_v7 = vadd.f32 %v2011_v31, %v5044_v49  ;;  %v5054_v51 = vld [vmem:[#allocation50_spill] sm:$0xff] }
 0x8af   :  { %v5047_v24 = vmax.f32 %v5045_v33, %v5046_v55  ;;  %v2140_v60 = vadd.f32 %v2124_v50, %v2090_v32  ;;  %v2175_v30 = vmul.f32 %v4657_v44, %v2158_v27  ;;  %v2058_v21 = vmul.f32 0.33333334, %v2026_v22 }
 0x8b0   :  { %v2042_v5 = vmax.f32 %v5043_v10, %v2010_v37  ;;  %v2075_v36 = vmax.f32 %v2026_v22, 0.0  ;;  %3085 = vmatprep.mubr.bf16.mxu1 %v2200_v2  ;;  %v2141_v56 = vadd.f32 %v2125_v13, %v2091_v47  ;;  %v2059_v39 = vmul.f32 0.33333334, %v2027_v7 }
 0x8b1   :  { %v2043_v20 = vmax.f32 %v5047_v24, %v2011_v31  ;;  %v2076_v62 = vmax.f32 %v2027_v7, 0.0  ;;  %v2190_v6 = vadd.f32 %v2174_v29, %v2140_v60  ;;  %v2109_v11 = vmax.f32 %v2058_v21, 0.0 }
 0x8b2   :  { %v2159_v19 = vmax.f32 %v2042_v5, 0.0  ;;  %v2191_v40 = vadd.f32 %v2175_v30, %v2141_v56  ;;  %v2110_v54 = vmax.f32 %v2059_v39, 0.0  ;;  %v2092_v43 = vmul.f32 %v4642_v42, %v2075_v36 }
 0x8b3   :  { %v2160_v3 = vmax.f32 %v2043_v20, 0.0  ;;  %v2126_v48 = vmul.f32 %v4648_v12, %v2109_v11  ;;  %v2012_v0 = vmul.f32 %v4619_v46, %v4782_v4  ;;  %v2013_v35 = vmul.f32 %v4619_v46, %v1862_v41 }
 0x8b4   :  { %v2201_v15 = vpack.c.bf16 %v2191_v40, %v2190_v6  ;;  %v2093_v59 = vmul.f32 %v4642_v42, %v2076_v62  ;;  %v2127_v63 = vmul.f32 %v4648_v12, %v2110_v54  ;;  %v2176_v53 = vmul.f32 %v4657_v44, %v2159_v19 }
 0x8b5   :  { %v2142_v25 = vadd.f32 %v2126_v48, %v2092_v43  ;;  %v2028_v45 = vadd.f32 %v2012_v0, %v5048_v23  ;;  %v2029_v14 = vadd.f32 %v2013_v35, %v5049_v17  ;;  %v5052_v8 = vmax.f32 %v5050_v9, %v5051_v57 }
 0x8b6   :  { %3086 = vmatmul.mubr.bf16.gmra.mrb[40].mxu1 %v2201_v15  ;;  %v2143_v4 = vadd.f32 %v2127_v63, %v2093_v59  ;;  %v2177_v46 = vmul.f32 %v4657_v44, %v2160_v3  ;;  %v5055_v1 = vmax.f32 %v5053_v34, %v5054_v51  ;;  %v2431_v17 = vstv %s2430_s21 }
 0x8b7   :  { %v2044_v37 = vmax.f32 %v5052_v8, %v2012_v0  ;;  %v2192_v41 = vadd.f32 %v2176_v53, %v2142_v25  ;;  %v2060_v32 = vmul.f32 0.33333334, %v2028_v45  ;;  %v2061_v52 = vmul.f32 0.33333334, %v2029_v14 }
 0x8b8   :  { %v2045_v61 = vmax.f32 %v5055_v1, %v2013_v35  ;;  %v2077_v27 = vmax.f32 %v2028_v45, 0.0  ;;  %v2193_v38 = vadd.f32 %v2177_v46, %v2143_v4  ;;  %v2078_v26 = vmax.f32 %v2029_v14, 0.0 }
 0x8b9   :  { %v2111_v29 = vmax.f32 %v2060_v32, 0.0  ;;  %v2112_v31 = vmax.f32 %v2061_v52, 0.0  ;;  %v2161_v47 = vmax.f32 %v2044_v37, 0.0  ;;  %v2435_v14 = vstv %s2767_s1 }
 0x8ba   :  { %v2162_v50 = vmax.f32 %v2045_v61, 0.0  ;;  %v2202_v58 = vpack.c.bf16 %v2193_v38, %v2192_v41  ;;  %v2094_v22 = vmul.f32 %v4642_v42, %v2077_v27  ;;  %v2095_v18 = vmul.f32 %v4642_v42, %v2078_v26  ;;  %v2758_v42 = vld [vmem:[%s4886_s7] ss:$0 sm:$0xff] }
 0x8bb   :  { %v2128_v28 = vmul.f32 %v4648_v12, %v2111_v29  ;;  %v2129_v10 = vmul.f32 %v4648_v12, %v2112_v31  ;;  %v2178_v13 = vmul.f32 %v4657_v44, %v2161_v47  ;;  %v2441_v8 = vstv %s2768_s2 }
 0x8bc   :  { %3089 = vmatprep.mubr.bf16.mxu1 %v2202_v58  ;;  %v2179_v49 = vmul.f32 %v4657_v44, %v2162_v50 }
 0x8bd   :  { %v2144_v5 = vadd.f32 %v2128_v28, %v2094_v22  ;;  %v2145_v2 = vadd.f32 %v2129_v10, %v2095_v18  ;;  %v3204_v22 = vld [vmem:[#allocation15] sm:$0xff]   ;;  %v3205_v18 = vld [vmem:[#allocation15 + $0x8] sm:$0xff]   ;;  %v3206_v28 = vld [vmem:[#allocation15 + $0x10] sm:$0xff]  }
 0x8be   :  { %3114 = vmatpush3.bf16.msra.mxu1 %v3204_v22  ;;  %v3207_v10 = vld [vmem:[#allocation15 + $0x18] sm:$0xff]  }
 0x8bf   :  { %v2194_v7 = vadd.f32 %v2178_v13, %v2144_v5  ;;  %v2195_v33 = vadd.f32 %v2179_v49, %v2145_v2  ;;  %3115 = vmatprep.subr.bf16.mxu1 %v3521_v16  ;;  %v3208_v5 = vld [vmem:[#allocation15 + $0x20] sm:$0xff]   ;;  %v3209_v2 = vld [vmem:[#allocation15 + $0x28] sm:$0xff]   ;;  %v3210_v13 = vld [vmem:[#allocation15 + $0x30] sm:$0xff]  }
 0x8c0   :  { %v3211_v49 = vld [vmem:[#allocation15 + $0x38] sm:$0xff]  }
 0x8c1   :  { %v2203_v55 = vpack.c.bf16 %v2195_v33, %v2194_v7 }
 0x8c2   :  { %3116 = vmatpush3.bf16.msra.mxu1 %v3205_v18 }
 0x8c3   :  { %3090 = vmatmul.mubr.bf16.gmra.mrb[44].mxu1 %v2203_v55  ;;  %3117 = vmatprep.subr.bf16.mxu1 %v3521_v16 }
 0x8c4   :  { %3129 = vmatprep.mubr.msk.bf16.mxu1 %vm3522_vm0, %v3521_v16 }
 0x8c6   :  { %3118 = vmatpush3.bf16.msra.mxu1 %v3206_v28 }
 0x8c7   :  { %3119 = vmatprep.subr.bf16.mxu1 %v3521_v16 }
 0x8ca   :  { %3120 = vmatpush3.bf16.msra.mxu1 %v3207_v10 }
 0x8cb   :  { %3121 = vmatprep.subr.bf16.mxu1 %v3521_v16 }
 0x8ce   :  { %3122 = vmatpush3.bf16.msra.mxu1 %v3208_v5 }
 0x8cf   :  { %3123 = vmatprep.subr.bf16.mxu1 %v3521_v16 }
 0x8d2   :  { %3124 = vmatpush3.bf16.msra.mxu1 %v3209_v2 }
 0x8d3   :  { %3125 = vmatprep.subr.bf16.mxu1 %v3521_v16 }
 0x8d6   :  { %3126 = vmatpush3.bf16.msra.mxu1 %v3210_v13 }
 0x8d7   :  { %3127 = vmatprep.subr.bf16.mxu1 %v3521_v16 }
 0x8da   :  { %3128 = vmatpush3.bf16.msra.mxu1 %v3211_v49 }
 0x8df   :  { %v3079_v24 = vpop.f32.mrb[32].mxu1 }
 0x8e0   :  { %v2309_v12 = vpop.f32.mrb[33].mxu1 }
 0x8e1   :  { %v2310_v20 = vadd.f32 %v2758_v42, %v2309_v12  ;;  %v3080_v60 = vpop.f32.mrb[34].mxu1 }
 0x8e2   :  { %v2312_v30 = vpop.f32.mrb[35].mxu1 }
 0x8e3   :  { %v2372_v21 = vmax.f32 %v2310_v20, 0.0  ;;  %v2313_v36 = vadd.f32 %v2758_v42, %v2312_v30 }
 0x8e5   :  { %v2404_v56 = vrot.slane %v2372_v21, 4  ;;  %v2373_v44 = vmax.f32 %v2313_v36, 0.0 }
 0x8e7   :  { %v2405_v39 = vadd.f32 %v2404_v56, %v2372_v21  ;;  %v2417_v62 = vmax.f32 %v2372_v21, %v2404_v56  ;;  %v2410_v19 = vrot.slane %v2373_v44, 4 }
 0x8e9   :  { %v2406_v6 = vrot.slane %v2405_v39, 2  ;;  %v2418_v11 = vrot.slane %v2417_v62, 2  ;;  %v2411_v40 = vadd.f32 %v2410_v19, %v2373_v44  ;;  %v2423_v54 = vmax.f32 %v2373_v44, %v2410_v19  ;;  %v2769_v44 = vld [vmem:[%s4888_s9] ss:$0 sm:$0xff]  ;;  %s3473_s9 = scalar_lea.vmem %s2688_s16, 32 }
 0x8ea   :  { %p3474_p1 = scmp.ne.s32.totalorder %s2688_s16, %s3473_s9  ;;  %p3479_p3 = scmp.lt.s32.totalorder %s3473_s9, %s3473_s9 }
 0x8eb   :  { %v2407_v3 = vadd.f32 %v2406_v6, %v2405_v39  ;;  %v2419_v43 = vmax.f32 %v2417_v62, %v2418_v11  ;;  %v2412_v48 = vrot.slane %v2411_v40, 2  ;;  %v2424_v0 = vrot.slane %v2423_v54, 2 }
 0x8ec   :  { %p3480_p4 = por %p3479_p3, %p3478_p2 }
 0x8ed   :  { %v2408_v35 = vrot.slane %v2407_v3, 1  ;;  %v2420_v15 = vrot.slane %v2419_v43, 1  ;;  %v2413_v59 = vadd.f32 %v2412_v48, %v2411_v40  ;;  %v2425_v63 = vmax.f32 %v2423_v54, %v2424_v0  ;;  %v2778_v54 = vld [vmem:[%s4890_s11] ss:$0 sm:$0xff] }
 0x8ee   :  { %p3481_p5 = pnand %p3480_p4, %p3474_p1 }
 0x8ef   :  { %v2409_v53 = vadd.f32 %v2408_v35, %v2407_v3  ;;  %v2421_v25 = vmax.f32 %v2419_v43, %v2420_v15  ;;  %v2414_v23 = vrot.slane %v2413_v59, 1  ;;  %v2426_v45 = vrot.slane %v2425_v63, 1 }
 0x8f1   :  { %v2428_v9 = vmul.f32 0.125, %v2409_v53  ;;  %v2415_v57 = vadd.f32 %v2414_v23, %v2413_v59  ;;  %v2427_v37 = vmax.f32 %v2425_v63, %v2426_v45  ;;  %v2436_v46 = vmul.f32 %v2435_v14, %v2421_v25 }
 0x8f2   :  { %v2442_v1 = vmul.f32 %v2441_v8, %v2409_v53 }
 0x8f3   :  { %v2432_v4 = vmul.f32 %v2431_v17, %v2428_v9  ;;  %v2429_v34 = vmul.f32 0.125, %v2415_v57  ;;  %v2437_v41 = vmul.f32 %v2435_v14, %v2427_v37  ;;  %v2443_v27 = vmul.f32 %v2441_v8, %v2415_v57 }
 0x8f5   :  { %v2438_v51 = vadd.f32 %v2436_v46, %v2432_v4  ;;  %v2433_v61 = vmul.f32 %v2431_v17, %v2429_v34 }
 0x8f7   :  { %v2444_v32 = vadd.f32 %v2442_v1, %v2438_v51  ;;  %v2439_v52 = vadd.f32 %v2437_v41, %v2433_v61 }
 0x8f9   :  { %v2446_v38 = vpack.c.bf16 %v2444_v32, %v2444_v32  ;;  %v2445_v26 = vadd.f32 %v2443_v27, %v2439_v52 }
 0x8fb   :  { %v2447_v29 = vpack.c.bf16 %v2445_v26, %v2445_v26  ;;  %v2473_v31 = vunpack.c.l.b16 %v2446_v38 }
 0x8fd   :  { %v2474_v47 = vunpack.c.l.b16 %v2447_v29 }
 0x8ff   :  { %v2476_v50 = vsel %vm2475_vm1, %v2474_v47, %v2473_v31 }
 0x900   :  { %v2477_v58 = vpack.c.b16 %v2476_v50, %v2476_v50 }
 0x902   :  { %3110 = vmatmul.mubr.bf16.vlgmr.msra.gmra.mrb[48].mxu0 %v2477_v58 }
 0x97b   :  { %v3083_v7 = vpop.f32.mrb[36].mxu1 }
 0x97c   :  { %v2325_v33 = vpop.f32.mrb[37].mxu1 }
 0x97d   :  { %v3084_v55 = vpop.f32.mrb[38].mxu1 }
 0x97e   :  { %v2328_v42 = vpop.f32.mrb[39].mxu1 }
 0x989   :  { %v3087_v24 = vpop.f32.mrb[40].mxu1 }
 0x98a   :  { %v2341_v12 = vpop.f32.mrb[41].mxu1 }
 0x98b   :  { %v3088_v20 = vpop.f32.mrb[42].mxu1 }
 0x98c   :  { %v2344_v60 = vpop.f32.mrb[43].mxu1 }
 0x996   :  { %v3091_v30 = vpop.f32.mrb[44].mxu1 }
 0x997   :  { %v2357_v21 = vpop.f32.mrb[45].mxu1 }
 0x998   :  { %v3092_v36 = vpop.f32.mrb[46].mxu1 }
 0x999   :  { %v2360_v56 = vpop.f32.mrb[47].mxu1 }
 0x9d5   :  { %v2561_v39 = vpop.f32.mrb[48].mxu0 }
 0x9d6   :  { %v2562_v62 = vadd.f32 %v2769_v44, %v2561_v39  ;;  %v3111_v16 = vpop.f32.mrb[49].mxu0 }
 0x9d7   :  { %v2564_v19 = vpop.f32.mrb[50].mxu0 }
 0x9d8   :  { %v2567_v6 = vmax.f32 %v2562_v62, 0.0  ;;  %v3112_v11 = vpop.f32.mrb[51].mxu0 }
 0x9da   :  { %v2568_v40 = vpack.c.bf16 %v2567_v6, %v2567_v6 }
 0x9dc   :  { %3130 = vmatmul.mubr.bf16.vlgmr.msra.gmra.mrb[48].mxu1 %v2568_v40 }
 0xaaf   :  { %v2674_v3 = vpop.f32.mrb[48].mxu1 }
 0xab0   :  { %v2675_v43 = vadd.f32 %v2778_v54, %v2674_v3  ;;  %v3131_v48 = vpop.f32.mrb[49].mxu1 }
 0xab1   :  { %v2677_v0 = vpop.f32.mrb[50].mxu1 }
 0xab2   :  { %2680 = vst [vmem:[#allocation20] sm:$0x3] %v2675_v43  ;;  %v3132_v35 = vpop.f32.mrb[51].mxu1 }
 0xab3   :  { %3484 = shalt.err (!%p3481_p5)
}
 0xab4   :  { %s5056_s15 = sld [smem:[#allocation53_spill]] }
 0xaba   :  { %s3485_s11 = scalar_lea.hbm %s5056_s15, 32 }
 0xabb   :  { %p3486_p6 = scmp.ne.s32.totalorder %s5056_s15, %s3485_s11  ;;  %p3489_p7 = scmp.lt.u32.totalorder %s3485_s11, %s5056_s15 }
 0xabd   :  { %p3491_p8 = pnand %p3489_p7, %p3486_p6 }
 0xabf   :  { %3494 = shalt.err (!%p3491_p8)
}
 0xac0   :  { %2690 = dma.vmem_to_hbm [thread:$0]  %s2688_s16, 32, %s5056_s15, [#allocation5]  }
 0xac1   :  { %3507 = dma.done.wait [#allocation5], 32  }
 0xac2   :  { %3508 = vsyncadd [#allocation5], 4294967264 }
 0xac3   :  { %2694 = vsyncpa [#allocation4], 1 }
 0xac4   :  { %2695 = vsyncpa [#allocation8], 1 }
 0xac5   :  { %2696 = vsyncpa [#allocation11], 1 }
 0xac6   :  { %2697 = vsyncpa [#allocation14], 1 }
 0xac7   :  { %2698 = vsyncpa [#allocation5], 1 }
 0xac8   :  { %2699 = vsyncpa [#allocation6], 1 }
 0xac9   :  { %2700 = vsyncpa [#allocation18], 1 }

</bundles_post_ra>
